<compile_context>
chip_gen: v6e
topology: v6e:2x2x1
jax: 0.10.0
libtpu: 0.0.40
codegen_flags: <defaults>
</compile_context>

<pallas_src>
import functools
import math

import jax
import jax.numpy as jnp
from jax.experimental import pallas as pl
from jax.experimental.pallas import tpu as pltpu

# ----------------------------- config (small, lane-dense) ------------------
VOCAB = 64
HIDDEN = 128          # lane-dense hidden size
HEADS = 4
HEAD_DIM = HIDDEN // HEADS
FF = 512              # 4 * hidden, lane-dense
LAYERS = 2
MAX_POS = 64
NVEC = 8              # rows in the packed per-layer vector blob


# ----------------------------- fused Pallas kernel --------------------------
def _bert_fused_kernel(emb_ref, mask_ref, embln_ref,
                       wqkv_ref, wo_ref, w1_ref, w2_ref, vec_ref,
                       out_ref, h_ref, *, B, S, heads, eps):
    """One grid step = one full BERT encoder layer over the whole batch.

    Activation (B*S, H) lives in the VMEM scratch `h_ref` across grid steps;
    the embedding LayerNorm is folded into step 0 and the result is written
    to HBM only at the last step."""
    l = pl.program_id(0)
    M, H = h_ref.shape
    d = H // heads
    scale = 1.0 / math.sqrt(d)

    def _ln(v, g, b):
        mu = jnp.mean(v, axis=-1, keepdims=True)
        var = jnp.mean(v * v, axis=-1, keepdims=True) - mu * mu   # single pass
        var = jnp.maximum(var, 0.0)
        return (v - mu) * jax.lax.rsqrt(var + eps) * g + b

    # ---- fold the embedding LayerNorm into the first grid step ----
    @pl.when(l == 0)
    def _():
        h_ref[...] = _ln(emb_ref[...], embln_ref[0:1, :], embln_ref[1:2, :])

    x = h_ref[...]                                    # (M, H) f32
    vecs = vec_ref[...]                               # (NVEC, FF) f32 packed blob
    # additive attention bias built in-kernel from the (B, 1, S) pad mask
    bias = (1.0 - mask_ref[...]) * -10000.0           # (B, 1, S)

    xb = x.astype(jnp.bfloat16)

    # ---- multi-head attention: per-head q/k/v from static weight-ref slices
    #      (K = 128 contraction; no lane-slicing of activations) ----
    ctx_parts = []
    for hh in range(heads):
        off = hh * d
        qh = jnp.dot(xb, wqkv_ref[:, pl.ds(off, d)],
                     preferred_element_type=jnp.float32) + vecs[0:1, off:off + d]
        kh = jnp.dot(xb, wqkv_ref[:, pl.ds(H + off, d)],
                     preferred_element_type=jnp.float32) + vecs[0:1, H + off:H + off + d]
        vh = jnp.dot(xb, wqkv_ref[:, pl.ds(2 * H + off, d)],
                     preferred_element_type=jnp.float32) + vecs[0:1, 2 * H + off:2 * H + off + d]

        qb = qh.reshape(B, S, d).astype(jnp.bfloat16)
        kb = kh.reshape(B, S, d).astype(jnp.bfloat16)
        vb = vh.reshape(B, S, d).astype(jnp.bfloat16)

        s = jnp.einsum('bqd,bkd->bqk', qb, kb,
                       preferred_element_type=jnp.float32)        # (B, S, S)
        s = s * scale + bias
        m = jnp.max(s, axis=-1, keepdims=True)
        e = jnp.exp(s - m)
        p = e / jnp.sum(e, axis=-1, keepdims=True)                # exact divide
        ctx = jnp.einsum('bqk,bkd->bqd', p.astype(jnp.bfloat16), vb,
                         preferred_element_type=jnp.float32)      # (B, S, d)
        ctx_parts.append(ctx.reshape(M, d))

    # ---- single K=128 output projection over the concatenated contexts ----
    ctx = jnp.concatenate(ctx_parts, axis=-1).astype(jnp.bfloat16)   # (M, H)
    attn = jnp.dot(ctx, wo_ref[...],
                   preferred_element_type=jnp.float32) + vecs[1:2, :H]

    # ---- residual + LayerNorm 1 ----
    x1 = _ln(x + attn, vecs[2:3, :H], vecs[3:4, :H])

    # ---- FFN (GELU) + residual + LayerNorm 2 ----
    ff = jnp.dot(x1.astype(jnp.bfloat16), w1_ref[...],
                 preferred_element_type=jnp.float32) + vecs[4:5, :]   # (M, FF)
    ff = jax.nn.gelu(ff, approximate=True)
    ff2 = jnp.dot(ff.astype(jnp.bfloat16), w2_ref[...],
                  preferred_element_type=jnp.float32) + vecs[5:6, :H]
    x2 = _ln(x1 + ff2, vecs[6:7, :H], vecs[7:8, :H])

    h_ref[...] = x2

    @pl.when(l == pl.num_programs(0) - 1)
    def _():
        out_ref[...] = x2


# ----------------------------- Bert.forward ---------------------------------
def bert_forward(params, x, segs, mask):
    """Bert.forward(x, segs, mask) -> top_vec (B, S, H).

    Matches the reference: `top_vec, _ = self.model(x, mask)` i.e.
    BertModel(input_ids=x, attention_mask=mask); token_type_ids default to 0
    (segs is not forwarded by the reference module)."""
    B, S = x.shape
    M = B * S
    emb = (params['word_emb'][x]
           + params['pos_emb'][:S][None, :, :]
           + params['tok_type_emb'][0][None, None, :])            # (B, S, H) f32
    emb2 = emb.reshape(M, HIDDEN)
    mask3 = mask.astype(jnp.float32).reshape(B, 1, S)

    kernel = functools.partial(_bert_fused_kernel, B=B, S=S, heads=HEADS, eps=1e-12)
    out = pl.pallas_call(
        kernel,
        out_shape=jax.ShapeDtypeStruct((M, HIDDEN), jnp.float32),
        grid=(LAYERS,),
        in_specs=[
            pl.BlockSpec((M, HIDDEN), lambda l: (0, 0)),                    # embeddings
            pl.BlockSpec((B, 1, S), lambda l: (0, 0, 0)),                   # pad mask
            pl.BlockSpec((2, HIDDEN), lambda l: (0, 0)),                    # emb LN g/b
            pl.BlockSpec((None, HIDDEN, 3 * HIDDEN), lambda l: (l, 0, 0)),  # wqkv (L,H,3H)
            pl.BlockSpec((None, HIDDEN, HIDDEN), lambda l: (l, 0, 0)),      # wo   (L,H,H)
            pl.BlockSpec((None, HIDDEN, FF), lambda l: (l, 0, 0)),          # w1   (L,H,FF)
            pl.BlockSpec((None, FF, HIDDEN), lambda l: (l, 0, 0)),          # w2   (L,FF,H)
            pl.BlockSpec((None, NVEC, FF), lambda l: (l, 0, 0)),            # packed vectors
        ],
        out_specs=pl.BlockSpec((M, HIDDEN), lambda l: (0, 0)),
        scratch_shapes=[pltpu.VMEM((M, HIDDEN), jnp.float32)],              # activation carry
        compiler_params=pltpu.CompilerParams(dimension_semantics=("arbitrary",)),
    )(emb2, mask3, params['emb_ln'],
      params['wqkv'], params['wo'], params['w1'], params['w2'], params['vecs'])
    return out.reshape(B, S, HIDDEN)                               # top_vec


# ----------------------------- deterministic parameter init ----------------
def init_params(key):
    keys = iter(jax.random.split(key, 64))

    def nrm(shape, std=0.02):
        return jax.random.normal(next(keys), shape, jnp.float32) * std

    wqkv_l, wo_l, w1_l, w2_l, vec_l = [], [], [], [], []
    for _ in range(LAYERS):
        wqkv = jnp.concatenate(
            [nrm((HIDDEN, HIDDEN)), nrm((HIDDEN, HIDDEN)), nrm((HIDDEN, HIDDEN))],
            axis=1)                                              # (H, 3H)
        wqkv_l.append(wqkv)
        wo_l.append(nrm((HIDDEN, HIDDEN)))
        w1_l.append(nrm((HIDDEN, FF)))
        w2_l.append(nrm((FF, HIDDEN)))
        # Packed per-layer 1-D parameters: one (NVEC, FF) f32 blob.
        #   row 0: qkv bias (3H)        row 1: attn-out bias (H)
        #   row 2: LN1 gamma            row 3: LN1 beta
        #   row 4: FFN bias 1 (FF)      row 5: FFN bias 2 (H)
        #   row 6: LN2 gamma            row 7: LN2 beta
        vec = jnp.zeros((NVEC, FF), jnp.float32)
        vec = vec.at[2, :HIDDEN].set(1.0).at[6, :HIDDEN].set(1.0)
        vec_l.append(vec)

    word_emb = nrm((VOCAB, HIDDEN)).at[0].set(0.0)     # padding_idx = 0
    emb_ln = jnp.stack([jnp.ones((HIDDEN,), jnp.float32),
                        jnp.zeros((HIDDEN,), jnp.float32)])        # (2, H): gamma, beta
    return dict(
        word_emb=word_emb,
        pos_emb=nrm((MAX_POS, HIDDEN)),
        tok_type_emb=nrm((2, HIDDEN)),
        emb_ln=emb_ln,
        wqkv=jnp.stack(wqkv_l).astype(jnp.bfloat16),   # (L, H, 3H)
        wo=jnp.stack(wo_l).astype(jnp.bfloat16),       # (L, H, H)
        w1=jnp.stack(w1_l).astype(jnp.bfloat16),       # (L, H, FF)
        w2=jnp.stack(w2_l).astype(jnp.bfloat16),       # (L, FF, H)
        vecs=jnp.stack(vec_l),                         # (L, NVEC, FF) f32
    )


# ----------------------------- main -----------------------------------------
if __name__ == "__main__":
    key = jax.random.PRNGKey(0)
    pkey, dkey = jax.random.split(key)
    params = init_params(pkey)

    B, S = 2, 16
    k1, _ = jax.random.split(dkey)
    x = jax.random.randint(k1, (B, S), 1, VOCAB).astype(jnp.int32)
    segs = jnp.zeros((B, S), jnp.int32)
    mask = jnp.ones((B, S), jnp.float32).at[1, 12:].set(0.0)   # some padding

    fwd = jax.jit(bert_forward)
    top_vec = fwd(params, x, segs, mask)
    jax.block_until_ready(top_vec)

    assert top_vec.shape == (B, S, HIDDEN)
    assert top_vec.dtype == jnp.float32
    assert bool(jnp.all(jnp.isfinite(top_vec)))
    print("KERNEL_OK")
</pallas_src>

<mosaic_0001>
module attributes {stable_mosaic.version = 11 : i64} {
  func.func @_bert_fused_kernel(%arg0: i32, %arg1: memref<32x128xf32, #tpu.memory_space<vmem>>, %arg2: memref<2x1x16xf32, #tpu.memory_space<vmem>>, %arg3: memref<2x128xf32, #tpu.memory_space<vmem>>, %arg4: memref<1x128x384xbf16, #tpu.memory_space<vmem>>, %arg5: memref<1x128x128xbf16, #tpu.memory_space<vmem>>, %arg6: memref<1x128x512xbf16, #tpu.memory_space<vmem>>, %arg7: memref<1x512x128xbf16, #tpu.memory_space<vmem>>, %arg8: memref<1x8x512xf32, #tpu.memory_space<vmem>>, %arg9: memref<32x128xf32, #tpu.memory_space<vmem>>, %arg10: memref<32x128xf32, #tpu.memory_space<vmem>>) attributes {dimension_semantics = [#tpu.dimension_semantics<arbitrary>], iteration_bounds = array<i64: 2>, scalar_prefetch = 0 : i64, scratch_operands = 1 : i64, tpu.core_type = #tpu.core_type<tc>, window_params = [{pipeline_mode = #tpu.pipeline_mode<synchronous>, transform_indices = @transform_0, window_bounds = array<i64: 32, 128>}, {pipeline_mode = #tpu.pipeline_mode<synchronous>, transform_indices = @transform_1, window_bounds = array<i64: 2, 1, 16>}, {pipeline_mode = #tpu.pipeline_mode<synchronous>, transform_indices = @transform_2, window_bounds = array<i64: 2, 128>}, {transform_indices = @transform_3, window_bounds = array<i64: 1, 128, 384>}, {transform_indices = @transform_4, window_bounds = array<i64: 1, 128, 128>}, {transform_indices = @transform_5, window_bounds = array<i64: 1, 128, 512>}, {transform_indices = @transform_6, window_bounds = array<i64: 1, 512, 128>}, {transform_indices = @transform_7, window_bounds = array<i64: 1, 8, 512>}, {pipeline_mode = #tpu.pipeline_mode<synchronous>, transform_indices = @transform_8, window_bounds = array<i64: 32, 128>}]} {
    %c0_i32 = arith.constant 0 : i32
    %0 = arith.cmpi eq, %arg0, %c0_i32 : i32
    %1 = arith.extui %0 : i1 to i32
    %c0_i32_0 = arith.constant 0 : i32
    %2 = arith.cmpi ne, %1, %c0_i32_0 : i32
    scf.if %2 {
      %c0_97 = arith.constant 0 : index
      %c0_98 = arith.constant 0 : index
      %269 = vector.load %arg1[%c0_97, %c0_98] : memref<32x128xf32, #tpu.memory_space<vmem>>, vector<32x128xf32>
      %c0_99 = arith.constant 0 : index
      %c0_100 = arith.constant 0 : index
      %270 = vector.load %arg3[%c0_99, %c0_100] : memref<2x128xf32, #tpu.memory_space<vmem>>, vector<1x128xf32>
      %c1 = arith.constant 1 : index
      %c0_101 = arith.constant 0 : index
      %271 = vector.load %arg3[%c1, %c0_101] : memref<2x128xf32, #tpu.memory_space<vmem>>, vector<1x128xf32>
      %cst_102 = arith.constant dense<0.000000e+00> : vector<32xf32>
      %272 = vector.multi_reduction <add>, %269, %cst_102 [1] : vector<32x128xf32> to vector<32xf32>
      %273 = vector.shape_cast %272 : vector<32xf32> to vector<32x1xf32>
      %cst_103 = arith.constant 1.280000e+02 : f32
      %274 = vector.broadcast %cst_103 : f32 to vector<32x1xf32>
      %275 = arith.divf %273, %274 : vector<32x1xf32>
      %276 = arith.mulf %269, %269 : vector<32x128xf32>
      %cst_104 = arith.constant dense<0.000000e+00> : vector<32xf32>
      %277 = vector.multi_reduction <add>, %276, %cst_104 [1] : vector<32x128xf32> to vector<32xf32>
      %278 = vector.shape_cast %277 : vector<32xf32> to vector<32x1xf32>
      %cst_105 = arith.constant 1.280000e+02 : f32
      %279 = vector.broadcast %cst_105 : f32 to vector<32x1xf32>
      %280 = arith.divf %278, %279 : vector<32x1xf32>
      %281 = arith.mulf %275, %275 : vector<32x1xf32>
      %282 = arith.subf %280, %281 : vector<32x1xf32>
      %cst_106 = arith.constant 0.000000e+00 : f32
      %283 = vector.broadcast %cst_106 : f32 to vector<32x1xf32>
      %284 = arith.maximumf %282, %283 : vector<32x1xf32>
      %285 = vector.broadcast %275 : vector<32x1xf32> to vector<32x128xf32>
      %286 = arith.subf %269, %285 : vector<32x128xf32>
      %cst_107 = arith.constant 9.99999996E-13 : f32
      %287 = vector.broadcast %cst_107 : f32 to vector<32x1xf32>
      %288 = arith.addf %284, %287 : vector<32x1xf32>
      %289 = math.rsqrt %288 : vector<32x1xf32>
      %290 = vector.broadcast %289 : vector<32x1xf32> to vector<32x128xf32>
      %291 = arith.mulf %286, %290 : vector<32x128xf32>
      %292 = vector.broadcast %270 : vector<1x128xf32> to vector<32x128xf32>
      %293 = arith.mulf %291, %292 : vector<32x128xf32>
      %294 = vector.broadcast %271 : vector<1x128xf32> to vector<32x128xf32>
      %295 = arith.addf %293, %294 : vector<32x128xf32>
      %c0_108 = arith.constant 0 : index
      %c0_109 = arith.constant 0 : index
      %296 = vector.load %arg10[%c0_108, %c0_109] : memref<32x128xf32, #tpu.memory_space<vmem>>, vector<32x128xf32>
      tpu.vector_store %arg10[%c0_108, %c0_109], %295 {strides = array<i32>} : memref<32x128xf32, #tpu.memory_space<vmem>>, vector<32x128xf32>,
    } else {
    }
    %c0 = arith.constant 0 : index
    %c0_1 = arith.constant 0 : index
    %3 = vector.load %arg10[%c0, %c0_1] : memref<32x128xf32, #tpu.memory_space<vmem>>, vector<32x128xf32>
    %c0_2 = arith.constant 0 : index
    %c0_3 = arith.constant 0 : index
    %c0_4 = arith.constant 0 : index
    %4 = vector.load %arg8[%c0_2, %c0_3, %c0_4] : memref<1x8x512xf32, #tpu.memory_space<vmem>>, vector<1x8x512xf32>
    %5 = vector.shape_cast %4 : vector<1x8x512xf32> to vector<8x512xf32>
    %c0_5 = arith.constant 0 : index
    %c0_6 = arith.constant 0 : index
    %c0_7 = arith.constant 0 : index
    %6 = vector.load %arg2[%c0_5, %c0_6, %c0_7] : memref<2x1x16xf32, #tpu.memory_space<vmem>>, vector<2x1x16xf32>
    %cst = arith.constant 1.000000e+00 : f32
    %7 = vector.broadcast %cst : f32 to vector<2x1x16xf32>
    %8 = arith.subf %7, %6 : vector<2x1x16xf32>
    %cst_8 = arith.constant -1.000000e+04 : f32
    %9 = vector.broadcast %cst_8 : f32 to vector<2x1x16xf32>
    %10 = arith.mulf %8, %9 : vector<2x1x16xf32>
    %11 = arith.truncf %3 : vector<32x128xf32> to vector<32x128xbf16>
    %c0_9 = arith.constant 0 : index
    %c0_10 = arith.constant 0 : index
    %c0_11 = arith.constant 0 : index
    %12 = vector.load %arg4[%c0_9, %c0_10, %c0_11] : memref<1x128x384xbf16, #tpu.memory_space<vmem>>, vector<1x128x32xbf16>
    %13 = vector.shape_cast %12 : vector<1x128x32xbf16> to vector<128x32xbf16>
    %cst_12 = arith.constant dense<0.000000e+00> : vector<32x32xf32>
    %14 = tpu.matmul %11, %13, %cst_12 {dimension_numbers = #tpu.dot_dimension_numbers<[1], [0], [0], [1], [0, 0, 1, 1], [], []>} : vector<32x128xbf16>, vector<128x32xbf16>, vector<32x32xf32> -> vector<32x32xf32>
    %15 = vector.extract_strided_slice %5 {offsets = [0, 0], sizes = [1, 32], strides = [1, 1]} : vector<8x512xf32> to vector<1x32xf32>
    %16 = vector.broadcast %15 : vector<1x32xf32> to vector<32x32xf32>
    %17 = arith.addf %14, %16 : vector<32x32xf32>
    %c0_13 = arith.constant 0 : index
    %c0_14 = arith.constant 0 : index
    %c128 = arith.constant 128 : index
    %18 = vector.load %arg4[%c0_13, %c0_14, %c128] : memref<1x128x384xbf16, #tpu.memory_space<vmem>>, vector<1x128x32xbf16>
    %19 = vector.shape_cast %18 : vector<1x128x32xbf16> to vector<128x32xbf16>
    %cst_15 = arith.constant dense<0.000000e+00> : vector<32x32xf32>
    %20 = tpu.matmul %11, %19, %cst_15 {dimension_numbers = #tpu.dot_dimension_numbers<[1], [0], [0], [1], [0, 0, 1, 1], [], []>} : vector<32x128xbf16>, vector<128x32xbf16>, vector<32x32xf32> -> vector<32x32xf32>
    %21 = vector.extract_strided_slice %5 {offsets = [0, 128], sizes = [1, 32], strides = [1, 1]} : vector<8x512xf32> to vector<1x32xf32>
    %22 = vector.broadcast %21 : vector<1x32xf32> to vector<32x32xf32>
    %23 = arith.addf %20, %22 : vector<32x32xf32>
    %c0_16 = arith.constant 0 : index
    %c0_17 = arith.constant 0 : index
    %c256 = arith.constant 256 : index
    %24 = vector.load %arg4[%c0_16, %c0_17, %c256] : memref<1x128x384xbf16, #tpu.memory_space<vmem>>, vector<1x128x32xbf16>
    %25 = vector.shape_cast %24 : vector<1x128x32xbf16> to vector<128x32xbf16>
    %cst_18 = arith.constant dense<0.000000e+00> : vector<32x32xf32>
    %26 = tpu.matmul %11, %25, %cst_18 {dimension_numbers = #tpu.dot_dimension_numbers<[1], [0], [0], [1], [0, 0, 1, 1], [], []>} : vector<32x128xbf16>, vector<128x32xbf16>, vector<32x32xf32> -> vector<32x32xf32>
    %27 = vector.extract_strided_slice %5 {offsets = [0, 256], sizes = [1, 32], strides = [1, 1]} : vector<8x512xf32> to vector<1x32xf32>
    %28 = vector.broadcast %27 : vector<1x32xf32> to vector<32x32xf32>
    %29 = arith.addf %26, %28 : vector<32x32xf32>
    %30 = vector.shape_cast %17 : vector<32x32xf32> to vector<2x16x32xf32>
    %31 = arith.truncf %30 : vector<2x16x32xf32> to vector<2x16x32xbf16>
    %32 = vector.shape_cast %23 : vector<32x32xf32> to vector<2x16x32xf32>
    %33 = arith.truncf %32 : vector<2x16x32xf32> to vector<2x16x32xbf16>
    %34 = vector.shape_cast %29 : vector<32x32xf32> to vector<2x16x32xf32>
    %35 = arith.truncf %34 : vector<2x16x32xf32> to vector<2x16x32xbf16>
    "tpu.trace_start"() <{level = 10 : i32, message = "bqd,bkd->bqk"}> : () -> ()
    %cst_19 = arith.constant dense<0.000000e+00> : vector<2x16x16xf32>
    %36 = tpu.matmul %31, %33, %cst_19 {dimension_numbers = #tpu.dot_dimension_numbers<[2], [2], [1], [1], [0, 0, 0, 1, 1, 1], [0], [0]>} : vector<2x16x32xbf16>, vector<2x16x32xbf16>, vector<2x16x16xf32> -> vector<2x16x16xf32>
    "tpu.trace_stop"() : () -> ()
    %cst_20 = arith.constant 0.176776692 : f32
    %37 = vector.broadcast %cst_20 : f32 to vector<2x16x16xf32>
    %38 = arith.mulf %36, %37 : vector<2x16x16xf32>
    %39 = vector.broadcast %10 : vector<2x1x16xf32> to vector<2x16x16xf32>
    %40 = arith.addf %38, %39 : vector<2x16x16xf32>
    %cst_21 = arith.constant dense<0xFF800000> : vector<2x16xf32>
    %41 = vector.multi_reduction <maximumf>, %40, %cst_21 [2] : vector<2x16x16xf32> to vector<2x16xf32>
    %42 = vector.shape_cast %41 : vector<2x16xf32> to vector<2x16x1xf32>
    %43 = vector.broadcast %42 : vector<2x16x1xf32> to vector<2x16x16xf32>
    %44 = arith.subf %40, %43 : vector<2x16x16xf32>
    %45 = math.exp %44 : vector<2x16x16xf32>
    %cst_22 = arith.constant dense<0.000000e+00> : vector<2x16xf32>
    %46 = vector.multi_reduction <add>, %45, %cst_22 [2] : vector<2x16x16xf32> to vector<2x16xf32>
    %47 = vector.shape_cast %46 : vector<2x16xf32> to vector<2x16x1xf32>
    %48 = vector.broadcast %47 : vector<2x16x1xf32> to vector<2x16x16xf32>
    %49 = arith.divf %45, %48 : vector<2x16x16xf32>
    %50 = arith.truncf %49 : vector<2x16x16xf32> to vector<2x16x16xbf16>
    "tpu.trace_start"() <{level = 10 : i32, message = "bqk,bkd->bqd"}> : () -> ()
    %cst_23 = arith.constant dense<0.000000e+00> : vector<2x16x32xf32>
    %51 = tpu.matmul %50, %35, %cst_23 {dimension_numbers = #tpu.dot_dimension_numbers<[2], [1], [1], [2], [0, 0, 0, 1, 1, 2], [0], [0]>} : vector<2x16x16xbf16>, vector<2x16x32xbf16>, vector<2x16x32xf32> -> vector<2x16x32xf32>
    "tpu.trace_stop"() : () -> ()
    %52 = vector.shape_cast %51 : vector<2x16x32xf32> to vector<32x32xf32>
    %c0_24 = arith.constant 0 : index
    %c0_25 = arith.constant 0 : index
    %c32 = arith.constant 32 : index
    %53 = vector.load %arg4[%c0_24, %c0_25, %c32] : memref<1x128x384xbf16, #tpu.memory_space<vmem>>, vector<1x128x32xbf16>
    %54 = vector.shape_cast %53 : vector<1x128x32xbf16> to vector<128x32xbf16>
    %cst_26 = arith.constant dense<0.000000e+00> : vector<32x32xf32>
    %55 = tpu.matmul %11, %54, %cst_26 {dimension_numbers = #tpu.dot_dimension_numbers<[1], [0], [0], [1], [0, 0, 1, 1], [], []>} : vector<32x128xbf16>, vector<128x32xbf16>, vector<32x32xf32> -> vector<32x32xf32>
    %56 = vector.extract_strided_slice %5 {offsets = [0, 32], sizes = [1, 32], strides = [1, 1]} : vector<8x512xf32> to vector<1x32xf32>
    %57 = vector.broadcast %56 : vector<1x32xf32> to vector<32x32xf32>
    %58 = arith.addf %55, %57 : vector<32x32xf32>
    %c0_27 = arith.constant 0 : index
    %c0_28 = arith.constant 0 : index
    %c160 = arith.constant 160 : index
    %59 = vector.load %arg4[%c0_27, %c0_28, %c160] : memref<1x128x384xbf16, #tpu.memory_space<vmem>>, vector<1x128x32xbf16>
    %60 = vector.shape_cast %59 : vector<1x128x32xbf16> to vector<128x32xbf16>
    %cst_29 = arith.constant dense<0.000000e+00> : vector<32x32xf32>
    %61 = tpu.matmul %11, %60, %cst_29 {dimension_numbers = #tpu.dot_dimension_numbers<[1], [0], [0], [1], [0, 0, 1, 1], [], []>} : vector<32x128xbf16>, vector<128x32xbf16>, vector<32x32xf32> -> vector<32x32xf32>
    %62 = vector.extract_strided_slice %5 {offsets = [0, 160], sizes = [1, 32], strides = [1, 1]} : vector<8x512xf32> to vector<1x32xf32>
    %63 = vector.broadcast %62 : vector<1x32xf32> to vector<32x32xf32>
    %64 = arith.addf %61, %63 : vector<32x32xf32>
    %c0_30 = arith.constant 0 : index
    %c0_31 = arith.constant 0 : index
    %c288 = arith.constant 288 : index
    %65 = vector.load %arg4[%c0_30, %c0_31, %c288] : memref<1x128x384xbf16, #tpu.memory_space<vmem>>, vector<1x128x32xbf16>
    %66 = vector.shape_cast %65 : vector<1x128x32xbf16> to vector<128x32xbf16>
    %cst_32 = arith.constant dense<0.000000e+00> : vector<32x32xf32>
    %67 = tpu.matmul %11, %66, %cst_32 {dimension_numbers = #tpu.dot_dimension_numbers<[1], [0], [0], [1], [0, 0, 1, 1], [], []>} : vector<32x128xbf16>, vector<128x32xbf16>, vector<32x32xf32> -> vector<32x32xf32>
    %68 = vector.extract_strided_slice %5 {offsets = [0, 288], sizes = [1, 32], strides = [1, 1]} : vector<8x512xf32> to vector<1x32xf32>
    %69 = vector.broadcast %68 : vector<1x32xf32> to vector<32x32xf32>
    %70 = arith.addf %67, %69 : vector<32x32xf32>
    %71 = vector.shape_cast %58 : vector<32x32xf32> to vector<2x16x32xf32>
    %72 = arith.truncf %71 : vector<2x16x32xf32> to vector<2x16x32xbf16>
    %73 = vector.shape_cast %64 : vector<32x32xf32> to vector<2x16x32xf32>
    %74 = arith.truncf %73 : vector<2x16x32xf32> to vector<2x16x32xbf16>
    %75 = vector.shape_cast %70 : vector<32x32xf32> to vector<2x16x32xf32>
    %76 = arith.truncf %75 : vector<2x16x32xf32> to vector<2x16x32xbf16>
    "tpu.trace_start"() <{level = 10 : i32, message = "bqd,bkd->bqk"}> : () -> ()
    %cst_33 = arith.constant dense<0.000000e+00> : vector<2x16x16xf32>
    %77 = tpu.matmul %72, %74, %cst_33 {dimension_numbers = #tpu.dot_dimension_numbers<[2], [2], [1], [1], [0, 0, 0, 1, 1, 1], [0], [0]>} : vector<2x16x32xbf16>, vector<2x16x32xbf16>, vector<2x16x16xf32> -> vector<2x16x16xf32>
    "tpu.trace_stop"() : () -> ()
    %cst_34 = arith.constant 0.176776692 : f32
    %78 = vector.broadcast %cst_34 : f32 to vector<2x16x16xf32>
    %79 = arith.mulf %77, %78 : vector<2x16x16xf32>
    %80 = vector.broadcast %10 : vector<2x1x16xf32> to vector<2x16x16xf32>
    %81 = arith.addf %79, %80 : vector<2x16x16xf32>
    %cst_35 = arith.constant dense<0xFF800000> : vector<2x16xf32>
    %82 = vector.multi_reduction <maximumf>, %81, %cst_35 [2] : vector<2x16x16xf32> to vector<2x16xf32>
    %83 = vector.shape_cast %82 : vector<2x16xf32> to vector<2x16x1xf32>
    %84 = vector.broadcast %83 : vector<2x16x1xf32> to vector<2x16x16xf32>
    %85 = arith.subf %81, %84 : vector<2x16x16xf32>
    %86 = math.exp %85 : vector<2x16x16xf32>
    %cst_36 = arith.constant dense<0.000000e+00> : vector<2x16xf32>
    %87 = vector.multi_reduction <add>, %86, %cst_36 [2] : vector<2x16x16xf32> to vector<2x16xf32>
    %88 = vector.shape_cast %87 : vector<2x16xf32> to vector<2x16x1xf32>
    %89 = vector.broadcast %88 : vector<2x16x1xf32> to vector<2x16x16xf32>
    %90 = arith.divf %86, %89 : vector<2x16x16xf32>
    %91 = arith.truncf %90 : vector<2x16x16xf32> to vector<2x16x16xbf16>
    "tpu.trace_start"() <{level = 10 : i32, message = "bqk,bkd->bqd"}> : () -> ()
    %cst_37 = arith.constant dense<0.000000e+00> : vector<2x16x32xf32>
    %92 = tpu.matmul %91, %76, %cst_37 {dimension_numbers = #tpu.dot_dimension_numbers<[2], [1], [1], [2], [0, 0, 0, 1, 1, 2], [0], [0]>} : vector<2x16x16xbf16>, vector<2x16x32xbf16>, vector<2x16x32xf32> -> vector<2x16x32xf32>
    "tpu.trace_stop"() : () -> ()
    %93 = vector.shape_cast %92 : vector<2x16x32xf32> to vector<32x32xf32>
    %c0_38 = arith.constant 0 : index
    %c0_39 = arith.constant 0 : index
    %c64 = arith.constant 64 : index
    %94 = vector.load %arg4[%c0_38, %c0_39, %c64] : memref<1x128x384xbf16, #tpu.memory_space<vmem>>, vector<1x128x32xbf16>
    %95 = vector.shape_cast %94 : vector<1x128x32xbf16> to vector<128x32xbf16>
    %cst_40 = arith.constant dense<0.000000e+00> : vector<32x32xf32>
    %96 = tpu.matmul %11, %95, %cst_40 {dimension_numbers = #tpu.dot_dimension_numbers<[1], [0], [0], [1], [0, 0, 1, 1], [], []>} : vector<32x128xbf16>, vector<128x32xbf16>, vector<32x32xf32> -> vector<32x32xf32>
    %97 = vector.extract_strided_slice %5 {offsets = [0, 64], sizes = [1, 32], strides = [1, 1]} : vector<8x512xf32> to vector<1x32xf32>
    %98 = vector.broadcast %97 : vector<1x32xf32> to vector<32x32xf32>
    %99 = arith.addf %96, %98 : vector<32x32xf32>
    %c0_41 = arith.constant 0 : index
    %c0_42 = arith.constant 0 : index
    %c192 = arith.constant 192 : index
    %100 = vector.load %arg4[%c0_41, %c0_42, %c192] : memref<1x128x384xbf16, #tpu.memory_space<vmem>>, vector<1x128x32xbf16>
    %101 = vector.shape_cast %100 : vector<1x128x32xbf16> to vector<128x32xbf16>
    %cst_43 = arith.constant dense<0.000000e+00> : vector<32x32xf32>
    %102 = tpu.matmul %11, %101, %cst_43 {dimension_numbers = #tpu.dot_dimension_numbers<[1], [0], [0], [1], [0, 0, 1, 1], [], []>} : vector<32x128xbf16>, vector<128x32xbf16>, vector<32x32xf32> -> vector<32x32xf32>
    %103 = vector.extract_strided_slice %5 {offsets = [0, 192], sizes = [1, 32], strides = [1, 1]} : vector<8x512xf32> to vector<1x32xf32>
    %104 = vector.broadcast %103 : vector<1x32xf32> to vector<32x32xf32>
    %105 = arith.addf %102, %104 : vector<32x32xf32>
    %c0_44 = arith.constant 0 : index
    %c0_45 = arith.constant 0 : index
    %c320 = arith.constant 320 : index
    %106 = vector.load %arg4[%c0_44, %c0_45, %c320] : memref<1x128x384xbf16, #tpu.memory_space<vmem>>, vector<1x128x32xbf16>
    %107 = vector.shape_cast %106 : vector<1x128x32xbf16> to vector<128x32xbf16>
    %cst_46 = arith.constant dense<0.000000e+00> : vector<32x32xf32>
    %108 = tpu.matmul %11, %107, %cst_46 {dimension_numbers = #tpu.dot_dimension_numbers<[1], [0], [0], [1], [0, 0, 1, 1], [], []>} : vector<32x128xbf16>, vector<128x32xbf16>, vector<32x32xf32> -> vector<32x32xf32>
    %109 = vector.extract_strided_slice %5 {offsets = [0, 320], sizes = [1, 32], strides = [1, 1]} : vector<8x512xf32> to vector<1x32xf32>
    %110 = vector.broadcast %109 : vector<1x32xf32> to vector<32x32xf32>
    %111 = arith.addf %108, %110 : vector<32x32xf32>
    %112 = vector.shape_cast %99 : vector<32x32xf32> to vector<2x16x32xf32>
    %113 = arith.truncf %112 : vector<2x16x32xf32> to vector<2x16x32xbf16>
    %114 = vector.shape_cast %105 : vector<32x32xf32> to vector<2x16x32xf32>
    %115 = arith.truncf %114 : vector<2x16x32xf32> to vector<2x16x32xbf16>
    %116 = vector.shape_cast %111 : vector<32x32xf32> to vector<2x16x32xf32>
    %117 = arith.truncf %116 : vector<2x16x32xf32> to vector<2x16x32xbf16>
    "tpu.trace_start"() <{level = 10 : i32, message = "bqd,bkd->bqk"}> : () -> ()
    %cst_47 = arith.constant dense<0.000000e+00> : vector<2x16x16xf32>
    %118 = tpu.matmul %113, %115, %cst_47 {dimension_numbers = #tpu.dot_dimension_numbers<[2], [2], [1], [1], [0, 0, 0, 1, 1, 1], [0], [0]>} : vector<2x16x32xbf16>, vector<2x16x32xbf16>, vector<2x16x16xf32> -> vector<2x16x16xf32>
    "tpu.trace_stop"() : () -> ()
    %cst_48 = arith.constant 0.176776692 : f32
    %119 = vector.broadcast %cst_48 : f32 to vector<2x16x16xf32>
    %120 = arith.mulf %118, %119 : vector<2x16x16xf32>
    %121 = vector.broadcast %10 : vector<2x1x16xf32> to vector<2x16x16xf32>
    %122 = arith.addf %120, %121 : vector<2x16x16xf32>
    %cst_49 = arith.constant dense<0xFF800000> : vector<2x16xf32>
    %123 = vector.multi_reduction <maximumf>, %122, %cst_49 [2] : vector<2x16x16xf32> to vector<2x16xf32>
    %124 = vector.shape_cast %123 : vector<2x16xf32> to vector<2x16x1xf32>
    %125 = vector.broadcast %124 : vector<2x16x1xf32> to vector<2x16x16xf32>
    %126 = arith.subf %122, %125 : vector<2x16x16xf32>
    %127 = math.exp %126 : vector<2x16x16xf32>
    %cst_50 = arith.constant dense<0.000000e+00> : vector<2x16xf32>
    %128 = vector.multi_reduction <add>, %127, %cst_50 [2] : vector<2x16x16xf32> to vector<2x16xf32>
    %129 = vector.shape_cast %128 : vector<2x16xf32> to vector<2x16x1xf32>
    %130 = vector.broadcast %129 : vector<2x16x1xf32> to vector<2x16x16xf32>
    %131 = arith.divf %127, %130 : vector<2x16x16xf32>
    %132 = arith.truncf %131 : vector<2x16x16xf32> to vector<2x16x16xbf16>
    "tpu.trace_start"() <{level = 10 : i32, message = "bqk,bkd->bqd"}> : () -> ()
    %cst_51 = arith.constant dense<0.000000e+00> : vector<2x16x32xf32>
    %133 = tpu.matmul %132, %117, %cst_51 {dimension_numbers = #tpu.dot_dimension_numbers<[2], [1], [1], [2], [0, 0, 0, 1, 1, 2], [0], [0]>} : vector<2x16x16xbf16>, vector<2x16x32xbf16>, vector<2x16x32xf32> -> vector<2x16x32xf32>
    "tpu.trace_stop"() : () -> ()
    %134 = vector.shape_cast %133 : vector<2x16x32xf32> to vector<32x32xf32>
    %c0_52 = arith.constant 0 : index
    %c0_53 = arith.constant 0 : index
    %c96 = arith.constant 96 : index
    %135 = vector.load %arg4[%c0_52, %c0_53, %c96] : memref<1x128x384xbf16, #tpu.memory_space<vmem>>, vector<1x128x32xbf16>
    %136 = vector.shape_cast %135 : vector<1x128x32xbf16> to vector<128x32xbf16>
    %cst_54 = arith.constant dense<0.000000e+00> : vector<32x32xf32>
    %137 = tpu.matmul %11, %136, %cst_54 {dimension_numbers = #tpu.dot_dimension_numbers<[1], [0], [0], [1], [0, 0, 1, 1], [], []>} : vector<32x128xbf16>, vector<128x32xbf16>, vector<32x32xf32> -> vector<32x32xf32>
    %138 = vector.extract_strided_slice %5 {offsets = [0, 96], sizes = [1, 32], strides = [1, 1]} : vector<8x512xf32> to vector<1x32xf32>
    %139 = vector.broadcast %138 : vector<1x32xf32> to vector<32x32xf32>
    %140 = arith.addf %137, %139 : vector<32x32xf32>
    %c0_55 = arith.constant 0 : index
    %c0_56 = arith.constant 0 : index
    %c224 = arith.constant 224 : index
    %141 = vector.load %arg4[%c0_55, %c0_56, %c224] : memref<1x128x384xbf16, #tpu.memory_space<vmem>>, vector<1x128x32xbf16>
    %142 = vector.shape_cast %141 : vector<1x128x32xbf16> to vector<128x32xbf16>
    %cst_57 = arith.constant dense<0.000000e+00> : vector<32x32xf32>
    %143 = tpu.matmul %11, %142, %cst_57 {dimension_numbers = #tpu.dot_dimension_numbers<[1], [0], [0], [1], [0, 0, 1, 1], [], []>} : vector<32x128xbf16>, vector<128x32xbf16>, vector<32x32xf32> -> vector<32x32xf32>
    %144 = vector.extract_strided_slice %5 {offsets = [0, 224], sizes = [1, 32], strides = [1, 1]} : vector<8x512xf32> to vector<1x32xf32>
    %145 = vector.broadcast %144 : vector<1x32xf32> to vector<32x32xf32>
    %146 = arith.addf %143, %145 : vector<32x32xf32>
    %c0_58 = arith.constant 0 : index
    %c0_59 = arith.constant 0 : index
    %c352 = arith.constant 352 : index
    %147 = vector.load %arg4[%c0_58, %c0_59, %c352] : memref<1x128x384xbf16, #tpu.memory_space<vmem>>, vector<1x128x32xbf16>
    %148 = vector.shape_cast %147 : vector<1x128x32xbf16> to vector<128x32xbf16>
    %cst_60 = arith.constant dense<0.000000e+00> : vector<32x32xf32>
    %149 = tpu.matmul %11, %148, %cst_60 {dimension_numbers = #tpu.dot_dimension_numbers<[1], [0], [0], [1], [0, 0, 1, 1], [], []>} : vector<32x128xbf16>, vector<128x32xbf16>, vector<32x32xf32> -> vector<32x32xf32>
    %150 = vector.extract_strided_slice %5 {offsets = [0, 352], sizes = [1, 32], strides = [1, 1]} : vector<8x512xf32> to vector<1x32xf32>
    %151 = vector.broadcast %150 : vector<1x32xf32> to vector<32x32xf32>
    %152 = arith.addf %149, %151 : vector<32x32xf32>
    %153 = vector.shape_cast %140 : vector<32x32xf32> to vector<2x16x32xf32>
    %154 = arith.truncf %153 : vector<2x16x32xf32> to vector<2x16x32xbf16>
    %155 = vector.shape_cast %146 : vector<32x32xf32> to vector<2x16x32xf32>
    %156 = arith.truncf %155 : vector<2x16x32xf32> to vector<2x16x32xbf16>
    %157 = vector.shape_cast %152 : vector<32x32xf32> to vector<2x16x32xf32>
    %158 = arith.truncf %157 : vector<2x16x32xf32> to vector<2x16x32xbf16>
    "tpu.trace_start"() <{level = 10 : i32, message = "bqd,bkd->bqk"}> : () -> ()
    %cst_61 = arith.constant dense<0.000000e+00> : vector<2x16x16xf32>
    %159 = tpu.matmul %154, %156, %cst_61 {dimension_numbers = #tpu.dot_dimension_numbers<[2], [2], [1], [1], [0, 0, 0, 1, 1, 1], [0], [0]>} : vector<2x16x32xbf16>, vector<2x16x32xbf16>, vector<2x16x16xf32> -> vector<2x16x16xf32>
    "tpu.trace_stop"() : () -> ()
    %cst_62 = arith.constant 0.176776692 : f32
    %160 = vector.broadcast %cst_62 : f32 to vector<2x16x16xf32>
    %161 = arith.mulf %159, %160 : vector<2x16x16xf32>
    %162 = vector.broadcast %10 : vector<2x1x16xf32> to vector<2x16x16xf32>
    %163 = arith.addf %161, %162 : vector<2x16x16xf32>
    %cst_63 = arith.constant dense<0xFF800000> : vector<2x16xf32>
    %164 = vector.multi_reduction <maximumf>, %163, %cst_63 [2] : vector<2x16x16xf32> to vector<2x16xf32>
    %165 = vector.shape_cast %164 : vector<2x16xf32> to vector<2x16x1xf32>
    %166 = vector.broadcast %165 : vector<2x16x1xf32> to vector<2x16x16xf32>
    %167 = arith.subf %163, %166 : vector<2x16x16xf32>
    %168 = math.exp %167 : vector<2x16x16xf32>
    %cst_64 = arith.constant dense<0.000000e+00> : vector<2x16xf32>
    %169 = vector.multi_reduction <add>, %168, %cst_64 [2] : vector<2x16x16xf32> to vector<2x16xf32>
    %170 = vector.shape_cast %169 : vector<2x16xf32> to vector<2x16x1xf32>
    %171 = vector.broadcast %170 : vector<2x16x1xf32> to vector<2x16x16xf32>
    %172 = arith.divf %168, %171 : vector<2x16x16xf32>
    %173 = arith.truncf %172 : vector<2x16x16xf32> to vector<2x16x16xbf16>
    "tpu.trace_start"() <{level = 10 : i32, message = "bqk,bkd->bqd"}> : () -> ()
    %cst_65 = arith.constant dense<0.000000e+00> : vector<2x16x32xf32>
    %174 = tpu.matmul %173, %158, %cst_65 {dimension_numbers = #tpu.dot_dimension_numbers<[2], [1], [1], [2], [0, 0, 0, 1, 1, 2], [0], [0]>} : vector<2x16x16xbf16>, vector<2x16x32xbf16>, vector<2x16x32xf32> -> vector<2x16x32xf32>
    "tpu.trace_stop"() : () -> ()
    %175 = vector.shape_cast %174 : vector<2x16x32xf32> to vector<32x32xf32>
    %176 = tpu.concatenate %52, %93, %134, %175 in 1 : vector<32x32xf32>, vector<32x32xf32>, vector<32x32xf32>, vector<32x32xf32> -> vector<32x128xf32>
    %177 = arith.truncf %176 : vector<32x128xf32> to vector<32x128xbf16>
    %c0_66 = arith.constant 0 : index
    %c0_67 = arith.constant 0 : index
    %c0_68 = arith.constant 0 : index
    %178 = vector.load %arg5[%c0_66, %c0_67, %c0_68] : memref<1x128x128xbf16, #tpu.memory_space<vmem>>, vector<1x128x128xbf16>
    %179 = vector.shape_cast %178 : vector<1x128x128xbf16> to vector<128x128xbf16>
    %cst_69 = arith.constant dense<0.000000e+00> : vector<32x128xf32>
    %180 = tpu.matmul %177, %179, %cst_69 {dimension_numbers = #tpu.dot_dimension_numbers<[1], [0], [0], [1], [0, 0, 1, 1], [], []>} : vector<32x128xbf16>, vector<128x128xbf16>, vector<32x128xf32> -> vector<32x128xf32>
    %181 = vector.extract_strided_slice %5 {offsets = [1, 0], sizes = [1, 128], strides = [1, 1]} : vector<8x512xf32> to vector<1x128xf32>
    %182 = vector.broadcast %181 : vector<1x128xf32> to vector<32x128xf32>
    %183 = arith.addf %180, %182 : vector<32x128xf32>
    %184 = arith.addf %3, %183 : vector<32x128xf32>
    %185 = vector.extract_strided_slice %5 {offsets = [2, 0], sizes = [1, 128], strides = [1, 1]} : vector<8x512xf32> to vector<1x128xf32>
    %186 = vector.extract_strided_slice %5 {offsets = [3, 0], sizes = [1, 128], strides = [1, 1]} : vector<8x512xf32> to vector<1x128xf32>
    %cst_70 = arith.constant dense<0.000000e+00> : vector<32xf32>
    %187 = vector.multi_reduction <add>, %184, %cst_70 [1] : vector<32x128xf32> to vector<32xf32>
    %188 = vector.shape_cast %187 : vector<32xf32> to vector<32x1xf32>
    %cst_71 = arith.constant 1.280000e+02 : f32
    %189 = vector.broadcast %cst_71 : f32 to vector<32x1xf32>
    %190 = arith.divf %188, %189 : vector<32x1xf32>
    %191 = arith.mulf %184, %184 : vector<32x128xf32>
    %cst_72 = arith.constant dense<0.000000e+00> : vector<32xf32>
    %192 = vector.multi_reduction <add>, %191, %cst_72 [1] : vector<32x128xf32> to vector<32xf32>
    %193 = vector.shape_cast %192 : vector<32xf32> to vector<32x1xf32>
    %cst_73 = arith.constant 1.280000e+02 : f32
    %194 = vector.broadcast %cst_73 : f32 to vector<32x1xf32>
    %195 = arith.divf %193, %194 : vector<32x1xf32>
    %196 = arith.mulf %190, %190 : vector<32x1xf32>
    %197 = arith.subf %195, %196 : vector<32x1xf32>
    %cst_74 = arith.constant 0.000000e+00 : f32
    %198 = vector.broadcast %cst_74 : f32 to vector<32x1xf32>
    %199 = arith.maximumf %197, %198 : vector<32x1xf32>
    %200 = vector.broadcast %190 : vector<32x1xf32> to vector<32x128xf32>
    %201 = arith.subf %184, %200 : vector<32x128xf32>
    %cst_75 = arith.constant 9.99999996E-13 : f32
    %202 = vector.broadcast %cst_75 : f32 to vector<32x1xf32>
    %203 = arith.addf %199, %202 : vector<32x1xf32>
    %204 = math.rsqrt %203 : vector<32x1xf32>
    %205 = vector.broadcast %204 : vector<32x1xf32> to vector<32x128xf32>
    %206 = arith.mulf %201, %205 : vector<32x128xf32>
    %207 = vector.broadcast %185 : vector<1x128xf32> to vector<32x128xf32>
    %208 = arith.mulf %206, %207 : vector<32x128xf32>
    %209 = vector.broadcast %186 : vector<1x128xf32> to vector<32x128xf32>
    %210 = arith.addf %208, %209 : vector<32x128xf32>
    %211 = arith.truncf %210 : vector<32x128xf32> to vector<32x128xbf16>
    %c0_76 = arith.constant 0 : index
    %c0_77 = arith.constant 0 : index
    %c0_78 = arith.constant 0 : index
    %212 = vector.load %arg6[%c0_76, %c0_77, %c0_78] : memref<1x128x512xbf16, #tpu.memory_space<vmem>>, vector<1x128x512xbf16>
    %213 = vector.shape_cast %212 : vector<1x128x512xbf16> to vector<128x512xbf16>
    %cst_79 = arith.constant dense<0.000000e+00> : vector<32x512xf32>
    %214 = tpu.matmul %211, %213, %cst_79 {dimension_numbers = #tpu.dot_dimension_numbers<[1], [0], [0], [1], [0, 0, 1, 1], [], []>} : vector<32x128xbf16>, vector<128x512xbf16>, vector<32x512xf32> -> vector<32x512xf32>
    %215 = vector.extract_strided_slice %5 {offsets = [4, 0], sizes = [1, 512], strides = [1, 1]} : vector<8x512xf32> to vector<1x512xf32>
    %216 = vector.broadcast %215 : vector<1x512xf32> to vector<32x512xf32>
    %217 = arith.addf %214, %216 : vector<32x512xf32>
    %218 = arith.mulf %217, %217 : vector<32x512xf32>
    %219 = arith.mulf %217, %218 : vector<32x512xf32>
    %cst_80 = arith.constant 4.471500e-02 : f32
    %220 = vector.broadcast %cst_80 : f32 to vector<32x512xf32>
    %221 = arith.mulf %220, %219 : vector<32x512xf32>
    %222 = arith.addf %217, %221 : vector<32x512xf32>
    %cst_81 = arith.constant 0.797884583 : f32
    %223 = vector.broadcast %cst_81 : f32 to vector<32x512xf32>
    %224 = arith.mulf %223, %222 : vector<32x512xf32>
    %225 = math.tanh %224 : vector<32x512xf32>
    %cst_82 = arith.constant 1.000000e+00 : f32
    %226 = vector.broadcast %cst_82 : f32 to vector<32x512xf32>
    %227 = arith.addf %226, %225 : vector<32x512xf32>
    %cst_83 = arith.constant 5.000000e-01 : f32
    %228 = vector.broadcast %cst_83 : f32 to vector<32x512xf32>
    %229 = arith.mulf %228, %227 : vector<32x512xf32>
    %230 = arith.mulf %217, %229 : vector<32x512xf32>
    %231 = arith.truncf %230 : vector<32x512xf32> to vector<32x512xbf16>
    %c0_84 = arith.constant 0 : index
    %c0_85 = arith.constant 0 : index
    %c0_86 = arith.constant 0 : index
    %232 = vector.load %arg7[%c0_84, %c0_85, %c0_86] : memref<1x512x128xbf16, #tpu.memory_space<vmem>>, vector<1x512x128xbf16>
    %233 = vector.shape_cast %232 : vector<1x512x128xbf16> to vector<512x128xbf16>
    %cst_87 = arith.constant dense<0.000000e+00> : vector<32x128xf32>
    %234 = tpu.matmul %231, %233, %cst_87 {dimension_numbers = #tpu.dot_dimension_numbers<[1], [0], [0], [1], [0, 0, 1, 1], [], []>} : vector<32x512xbf16>, vector<512x128xbf16>, vector<32x128xf32> -> vector<32x128xf32>
    %235 = vector.extract_strided_slice %5 {offsets = [5, 0], sizes = [1, 128], strides = [1, 1]} : vector<8x512xf32> to vector<1x128xf32>
    %236 = vector.broadcast %235 : vector<1x128xf32> to vector<32x128xf32>
    %237 = arith.addf %234, %236 : vector<32x128xf32>
    %238 = arith.addf %210, %237 : vector<32x128xf32>
    %239 = vector.extract_strided_slice %5 {offsets = [6, 0], sizes = [1, 128], strides = [1, 1]} : vector<8x512xf32> to vector<1x128xf32>
    %240 = vector.extract_strided_slice %5 {offsets = [7, 0], sizes = [1, 128], strides = [1, 1]} : vector<8x512xf32> to vector<1x128xf32>
    %cst_88 = arith.constant dense<0.000000e+00> : vector<32xf32>
    %241 = vector.multi_reduction <add>, %238, %cst_88 [1] : vector<32x128xf32> to vector<32xf32>
    %242 = vector.shape_cast %241 : vector<32xf32> to vector<32x1xf32>
    %cst_89 = arith.constant 1.280000e+02 : f32
    %243 = vector.broadcast %cst_89 : f32 to vector<32x1xf32>
    %244 = arith.divf %242, %243 : vector<32x1xf32>
    %245 = arith.mulf %238, %238 : vector<32x128xf32>
    %cst_90 = arith.constant dense<0.000000e+00> : vector<32xf32>
    %246 = vector.multi_reduction <add>, %245, %cst_90 [1] : vector<32x128xf32> to vector<32xf32>
    %247 = vector.shape_cast %246 : vector<32xf32> to vector<32x1xf32>
    %cst_91 = arith.constant 1.280000e+02 : f32
    %248 = vector.broadcast %cst_91 : f32 to vector<32x1xf32>
    %249 = arith.divf %247, %248 : vector<32x1xf32>
    %250 = arith.mulf %244, %244 : vector<32x1xf32>
    %251 = arith.subf %249, %250 : vector<32x1xf32>
    %cst_92 = arith.constant 0.000000e+00 : f32
    %252 = vector.broadcast %cst_92 : f32 to vector<32x1xf32>
    %253 = arith.maximumf %251, %252 : vector<32x1xf32>
    %254 = vector.broadcast %244 : vector<32x1xf32> to vector<32x128xf32>
    %255 = arith.subf %238, %254 : vector<32x128xf32>
    %cst_93 = arith.constant 9.99999996E-13 : f32
    %256 = vector.broadcast %cst_93 : f32 to vector<32x1xf32>
    %257 = arith.addf %253, %256 : vector<32x1xf32>
    %258 = math.rsqrt %257 : vector<32x1xf32>
    %259 = vector.broadcast %258 : vector<32x1xf32> to vector<32x128xf32>
    %260 = arith.mulf %255, %259 : vector<32x128xf32>
    %261 = vector.broadcast %239 : vector<1x128xf32> to vector<32x128xf32>
    %262 = arith.mulf %260, %261 : vector<32x128xf32>
    %263 = vector.broadcast %240 : vector<1x128xf32> to vector<32x128xf32>
    %264 = arith.addf %262, %263 : vector<32x128xf32>
    %c0_94 = arith.constant 0 : index
    %c0_95 = arith.constant 0 : index
    %265 = vector.load %arg10[%c0_94, %c0_95] : memref<32x128xf32, #tpu.memory_space<vmem>>, vector<32x128xf32>
    tpu.vector_store %arg10[%c0_94, %c0_95], %264 {strides = array<i32>} : memref<32x128xf32, #tpu.memory_space<vmem>>, vector<32x128xf32>,
    %c1_i32 = arith.constant 1 : i32
    %266 = arith.cmpi eq, %arg0, %c1_i32 : i32
    %267 = arith.extui %266 : i1 to i32
    %c0_i32_96 = arith.constant 0 : i32
    %268 = arith.cmpi ne, %267, %c0_i32_96 : i32
    scf.if %268 {
      %c0_97 = arith.constant 0 : index
      %c0_98 = arith.constant 0 : index
      %269 = vector.load %arg9[%c0_97, %c0_98] : memref<32x128xf32, #tpu.memory_space<vmem>>, vector<32x128xf32>
      tpu.vector_store %arg9[%c0_97, %c0_98], %264 {strides = array<i32>} : memref<32x128xf32, #tpu.memory_space<vmem>>, vector<32x128xf32>,
    } else {
    }
    return
  }
  func.func @transform_0(%arg0: i32) -> (i32, i32) {
    %c0_i32 = arith.constant 0 : i32
    %c0_i32_0 = arith.constant 0 : i32
    %c0_i32_1 = arith.constant 0 : i32
    return %c0_i32, %c0_i32_0 : i32, i32
  }
  func.func @transform_1(%arg0: i32) -> (i32, i32, i32) {
    %c0_i32 = arith.constant 0 : i32
    %c0_i32_0 = arith.constant 0 : i32
    %c0_i32_1 = arith.constant 0 : i32
    %c0_i32_2 = arith.constant 0 : i32
    return %c0_i32, %c0_i32_0, %c0_i32_1 : i32, i32, i32
  }
  func.func @transform_2(%arg0: i32) -> (i32, i32) {
    %c0_i32 = arith.constant 0 : i32
    %c0_i32_0 = arith.constant 0 : i32
    %c0_i32_1 = arith.constant 0 : i32
    return %c0_i32, %c0_i32_0 : i32, i32
  }
  func.func @transform_3(%arg0: i32) -> (i32, i32, i32) {
    %c0_i32 = arith.constant 0 : i32
    %c0_i32_0 = arith.constant 0 : i32
    %c0_i32_1 = arith.constant 0 : i32
    return %arg0, %c0_i32, %c0_i32_0 : i32, i32, i32
  }
  func.func @transform_4(%arg0: i32) -> (i32, i32, i32) {
    %c0_i32 = arith.constant 0 : i32
    %c0_i32_0 = arith.constant 0 : i32
    %c0_i32_1 = arith.constant 0 : i32
    return %arg0, %c0_i32, %c0_i32_0 : i32, i32, i32
  }
  func.func @transform_5(%arg0: i32) -> (i32, i32, i32) {
    %c0_i32 = arith.constant 0 : i32
    %c0_i32_0 = arith.constant 0 : i32
    %c0_i32_1 = arith.constant 0 : i32
    return %arg0, %c0_i32, %c0_i32_0 : i32, i32, i32
  }
  func.func @transform_6(%arg0: i32) -> (i32, i32, i32) {
    %c0_i32 = arith.constant 0 : i32
    %c0_i32_0 = arith.constant 0 : i32
    %c0_i32_1 = arith.constant 0 : i32
    return %arg0, %c0_i32, %c0_i32_0 : i32, i32, i32
  }
  func.func @transform_7(%arg0: i32) -> (i32, i32, i32) {
    %c0_i32 = arith.constant 0 : i32
    %c0_i32_0 = arith.constant 0 : i32
    %c0_i32_1 = arith.constant 0 : i32
    return %arg0, %c0_i32, %c0_i32_0 : i32, i32, i32
  }
  func.func @transform_8(%arg0: i32) -> (i32, i32) {
    %c0_i32 = arith.constant 0 : i32
    %c0_i32_0 = arith.constant 0 : i32
    %c0_i32_1 = arith.constant 0 : i32
    return %c0_i32, %c0_i32_0 : i32, i32
  }
}

</mosaic_0001>

<bundles_post_ra>
// kernel: bert_forward.1
= control target key start
LH: loop header
LB: loop body
LE: loop exit
PB: predicated region body
PF: predicated region fallthrough
CT: control target
= control target key end

     0   :  { %s6865_s0 = inlined_call_operand.vmem [shape: f32[32,128], index: 0, kind: input, shape index: {}]   ;;  %s6866_s1 = inlined_call_operand.vmem [shape: f32[2,1,16], index: 1, kind: input, shape index: {}]   ;;  %s6867_s2 = inlined_call_operand.vmem [shape: f32[2,128], index: 2, kind: input, shape index: {}]   ;;  %s6868_s3 = inlined_call_operand.vmem [shape: bf16[2,128,384], index: 3, kind: input, shape index: {}]   ;;  %s6869_s4 = inlined_call_operand.hbm [shape: bf16[2,128,128], index: 4, kind: input, shape index: {}]   ;;  %s6870_s5 = inlined_call_operand.hbm [shape: bf16[2,128,512], index: 5, kind: input, shape index: {}]   ;;  %s6871_s6 = inlined_call_operand.hbm [shape: bf16[2,512,128], index: 6, kind: input, shape index: {}]   ;;  %s6872_s7 = inlined_call_operand.vmem [shape: f32[2,8,512], index: 7, kind: input, shape index: {}]   ;;  %s6873_s8 = inlined_call_operand.hbm [shape: f32[32,128], index: 8, kind: output, shape index: {}]  }
   0x1   :  { %6878 = sst [smem:[#allocation16_spill]] %s6870_s5 }
   0x2   :  { %13 = vsyncpa [#allocation4], 0 }
   0x3   :  { %15 = vsyncpa [#allocation4 + $0x1], 0 }
   0x4   :  { %16 = vsyncpa [#allocation7], 0 }
   0x5   :  { %18 = vsyncpa [#allocation7 + $0x1], 0 }
   0x6   :  { %19 = vsyncpa [#allocation5], 0  ;;  %s5784_s27 = smov 0   ;;  %s5786_s28 = smov 0  }
   0x7   :  { %s5788_s29 = smov 0   ;;  %s5790_s30 = smov 0  }
   0x8 LB: > { %6879 = sst [smem:[#allocation13_spill]] %s5717_s29  ;;  %s5803_s9 = sadd.s32 4294967295, %s5721_s30   ;;  %s5721_s30 = sphi %s5790_s30, %s6895_s30   ;;  %s5717_s29 = sphi %s5788_s29, %s6892_s29   ;;  %s5713_s28 = sphi %s5786_s28, %s6894_s28   ;;  %s5709_s27 = sphi %s5784_s27, %s6893_s27  }
   0x9   : > { %s5806_s10 = sadd.s32 1, %s5721_s30   ;;  %s121_s12 = sadd.s32 1, %s5717_s29 }
   0xa   : > { %s118_s11 = ssub.s32 %s5721_s30, %s5806_s10  ;;  %p128_p1 = scmp.ne.s32.totalorder %s5717_s29, %s5713_s28 }
   0xb   : > { %p119_p0 = scmp.eq.s32.totalorder %s118_s11, 0  ;;  %p129_p2 = scmp.eq.s32.totalorder %s5721_s30, 0 }
   0xc   : > { %p134_p3 = scmp.ne.s32.totalorder %s5713_s28, %s5709_s27  ;;  %p135_p5 = scmp.eq.s32.totalorder %s5803_s9, 0 }
   0xd   : > { %s5816_s13 = scalar_select %p119_p0, %s5717_s29, %s121_s12  }
   0xe   : > { %p130_p4 = por %p129_p2, %p128_p1  ;;  %p5181_p6 = scmp.lt.s32.totalorder %s5721_s30, 2 }
   0xf   : > { %6880 = sst [smem:[#allocation14_spill]] %s5816_s13  ;;  %p5820_p7 = por %p135_p5, %p134_p3 }
  0x10   : > { %s5825_s15 = sand.u32 1, %s5717_s29   ;;  %p5827_p8 = pnand %p5181_p6, %p130_p4 }
  0x11   : > { %s6881_s14 = scalar_select %p5820_p7, 1, 0 }
  0x12   : > { %s295_s17 = sand.u32 1, %s5721_s30   ;;  %s6874_s18 = sshll.u32 %s5825_s15, 8 }
  0x13   : > { %s4567_s19 = sshll.u32 %s5721_s30, 12  ;;  %s299_s20 = scalar_lea.vmem [#allocation6], %s6874_s18 }
  0x14   : > { %s306_s21 = sshll.u32 %s299_s20, 4  ;;  %s6883_s5 = sld [smem:[#allocation16_spill]]  ;;  %s5843_s21 = int_to_ptr.vmem [resolvable:$true] %s306_s21 }
  0x15   : > { %s5845_s25 = scalar_lea.sflag [#allocation7], %s295_s17  ;;  %p5851_p10 = pneg %p5827_p8 }
  0x1a   : > { %s5841_s24 = scalar_lea.hbm %s6883_s5, %s4567_s19  ;;  %s5576_s20 = scalar_lea.hbm %s6883_s5, 8192 }
  0x1b   : > { %s5571_s26 = scalar_lea.hbm %s5841_s24, 4096  ;;  %p5577_p13 = scmp.lt.s32.totalorder %s5841_s24, %s6883_s5 }
  0x1c   : > { %p5572_p9 = scmp.ne.s32.totalorder %s5841_s24, %s5571_s26  ;;  %p5578_p0 = scmp.lt.s32.totalorder %s5576_s20, %s5571_s26 }
  0x1e   : > { %p5574_p11 = pnand %p5851_p10, %p5572_p9  ;;  %p5579_p1 = por %p5578_p0, %p5577_p13 }
  0x20   : > { %p5575_p12 = pneg %p5574_p11 }
  0x22   : > { %p5580_p2 = pnand %p5579_p1, %p5575_p12 }
  0x24   : > { %5583 = shalt.err (!%p5580_p2)
}
  0x25   : > { %s5584_s17 = scalar_lea.vmem %s5843_s21, 4096  ;;  %s5723_s18 = smov [#allocation6]  }
  0x26   : > { %p5585_p3 = scmp.ne.s32.totalorder %s5843_s21, %s5584_s17  ;;  %s5589_s11 = sshll.u32 %s5723_s18, 4  ;;  %s5590_s11 = int_to_ptr.vmem [resolvable:$false] %s5589_s11 }
  0x27   : > { %s5591_s12 = scalar_lea.vmem %s5590_s11, 8192  ;;  %p5592_p6 = scmp.lt.s32.totalorder %s5843_s21, %s5590_s11 }
  0x28   : > { %p5587_p4 = pnand %p5585_p3, %p5851_p10  ;;  %p5593_p9 = scmp.lt.s32.totalorder %s5591_s12, %s5584_s17 }
  0x2a   : > { %p5588_p5 = pneg %p5587_p4  ;;  %p5594_p11 = por %p5593_p9, %p5592_p6 }
  0x2c   : > { %p5595_p7 = pnand %p5594_p11, %p5588_p5 }
  0x2e   : > { %5598 = shalt.err (!%p5595_p7)
}
  0x2f   : > { %s5724_s26 = smov 256   ;;  %s5725_s18 = smov 16  }
  0x30   : > { %5177 = dma.hbm_to_vmem [thread:$0]  (!%p5827_p8), %s5841_s24, 4096, %s5843_s21, %s5845_s25, %s5724_s26, %s5724_s26, %s5725_s18  }
  0x31   : > { %s5879_s23 = scalar_lea.hbm %s6871_s6, %s4567_s19  ;;  %s6885_s17 = sshll.u32 %s5825_s15, 8 }
  0x32   : > { %s320_s11 = scalar_lea.vmem [#allocation8], %s6885_s17  ;;  %p4367_p7 = scmp.ge.s32.totalorder %s5721_s30, 1 }
  0x33   : > { %s327_s12 = sshll.u32 %s320_s11, 4  ;;  %p343_p12 = scmp.lt.s32.totalorder %s5721_s30, 3  ;;  %s5884_s12 = int_to_ptr.vmem [resolvable:$true] %s327_s12 }
  0x34   : > { %s4358_s5 = sshll.u32 %s5825_s15, 6  ;;  %s4566_s21 = sshll.u32 %s5721_s30, 10 }
  0x35   : > { %p5888_p13 = pnand %p4367_p7, %p343_p12  ;;  %s278_s24 = scalar_lea.vmem [#allocation3], %s4358_s5 }
  0x36   : > { %s285_s26 = sshll.u32 %s278_s24, 4  ;;  %s5896_s19 = scalar_lea.hbm %s6869_s4, %s4566_s21  ;;  %s5898_s26 = int_to_ptr.vmem [resolvable:$true] %s285_s26 }
  0x37   : > { %s6886_s13 = scalar_select %p5888_p13, 1, 0 }
  0x38   : > { %s275_s22 = scalar_lea.sflag [#allocation4], %s5825_s15  ;;  %s5599_s17 = scalar_lea.hbm %s5896_s19, 1024 }
  0x39   : > { %p5600_p0 = scmp.ne.s32.totalorder %s5896_s19, %s5599_s17  ;;  %s5604_s5 = scalar_lea.hbm %s6869_s4, 2048 }
  0x3a   : > { %p5605_p3 = scmp.lt.s32.totalorder %s5896_s19, %s6869_s4  ;;  %p5606_p4 = scmp.lt.s32.totalorder %s5604_s5, %s5599_s17 }
  0x3b   : > { %p5602_p1 = pnand %p5600_p0, %p5851_p10 }
  0x3c   : > { %p5607_p5 = por %p5606_p4, %p5605_p3 }
  0x3d   : > { %p5603_p2 = pneg %p5602_p1 }
  0x3f   : > { %p5608_p6 = pnand %p5607_p5, %p5603_p2 }
  0x41   : > { %5611 = shalt.err (!%p5608_p6)
}
  0x42   : > { %s5612_s21 = scalar_lea.vmem %s5898_s26, 1024  ;;  %s5726_s18 = smov [#allocation3]  }
  0x43   : > { %p5613_p9 = scmp.ne.s32.totalorder %s5898_s26, %s5612_s21  ;;  %s5617_s20 = sshll.u32 %s5726_s18, 4  ;;  %s5618_s20 = int_to_ptr.vmem [resolvable:$false] %s5617_s20 }
  0x44   : > { %s5619_s11 = scalar_lea.vmem %s5618_s20, 2048  ;;  %p5620_p12 = scmp.lt.s32.totalorder %s5898_s26, %s5618_s20 }
  0x45   : > { %p5615_p11 = pnand %p5613_p9, %p5851_p10  ;;  %p5621_p0 = scmp.lt.s32.totalorder %s5619_s11, %s5612_s21 }
  0x47   : > { %p5616_p7 = pneg %p5615_p11  ;;  %p5622_p1 = por %p5621_p0, %p5620_p12 }
  0x49   : > { %p5623_p13 = pnand %p5622_p1, %p5616_p7 }
  0x4b   : > { %5626 = shalt.err (!%p5623_p13)
}
  0x4c   : > { %s5727_s29 = smov 64   ;;  %s5728_s17 = smov 4  }
  0x4d   : > { %5174 = dma.hbm_to_vmem [thread:$0]  (!%p5827_p8), %s5896_s19, 1024, %s5898_s26, %s275_s22, %s5727_s29, %s5727_s29, %s5728_s17  }
  0x4e   : > { %s5627_s30 = scalar_lea.hbm %s5879_s23, 4096  ;;  %s5632_s21 = scalar_lea.hbm %s6871_s6, 8192 }
  0x4f   : > { %p5628_p2 = scmp.ne.s32.totalorder %s5879_s23, %s5627_s30  ;;  %p5633_p4 = scmp.lt.s32.totalorder %s5879_s23, %s6871_s6 }
  0x50   : > { %p5634_p5 = scmp.lt.s32.totalorder %s5632_s21, %s5627_s30 }
  0x51   : > { %p5630_p13 = pnand %p5628_p2, %p5851_p10 }
  0x52   : > { %p5635_p6 = por %p5634_p5, %p5633_p4 }
  0x53   : > { %p5631_p3 = pneg %p5630_p13 }
  0x55   : > { %p5636_p9 = pnand %p5635_p6, %p5631_p3 }
  0x57   : > { %5639 = shalt.err (!%p5636_p9)
}
  0x58   : > { %s5640_s15 = scalar_lea.vmem %s5884_s12, 4096  ;;  %s5729_s26 = smov [#allocation8]  }
  0x59   : > { %p5641_p11 = scmp.ne.s32.totalorder %s5884_s12, %s5640_s15  ;;  %s5645_s19 = sshll.u32 %s5729_s26, 4  ;;  %s5646_s19 = int_to_ptr.vmem [resolvable:$false] %s5645_s19 }
  0x5a   : > { %s5647_s22 = scalar_lea.vmem %s5646_s19, 8192  ;;  %p5648_p0 = scmp.lt.s32.totalorder %s5884_s12, %s5646_s19 }
  0x5b   : > { %p5643_p7 = pnand %p5641_p11, %p5851_p10  ;;  %p5649_p1 = scmp.lt.s32.totalorder %s5647_s22, %s5640_s15 }
  0x5d   : > { %p5644_p12 = pneg %p5643_p7  ;;  %p5650_p2 = por %p5649_p1, %p5648_p0 }
  0x5f   : > { %p5651_p13 = pnand %p5650_p2, %p5644_p12 }
  0x61   : > { %5654 = shalt.err (!%p5651_p13)
}
  0x62   : > { %5180 = dma.hbm_to_vmem [thread:$0]  (!%p5827_p8), %s5879_s23, 4096, %s5884_s12, %s5845_s25, %s5727_s29, %s5727_s29, %s5728_s17  }
  0x63   : > { %p6887_p10 = scmp.ne.s32.totalorder %s6886_s13, 0 }
  0x65   : > { %347 = sbr.rel (%p6887_p10) target bundleno = 4855 (0x12f7), region = 52 }
  0x6a   : > { %s349_s27 = sand.u32 1, %s5713_s28   ;;  %p6888_p3 = scmp.ne.s32.totalorder %s6881_s14, 0 }
  0x6b   : > { %s4368_s11 = sshll.u32 %s349_s27, 6  ;;  %s350_s30 = scalar_lea.sflag [#allocation4], %s349_s27 }
  0x6c   : > { %s5953_s5 = scalar_lea.vmem [#allocation3], %s4368_s11 }
  0x6d   : > { %5696 = dma.done.wait (%p6888_p3), %s350_s30, 1024  }
  0x6e   : > { %5698 = vsyncadd (%p6888_p3), %s350_s30, 4294966272  ;;  %s358_s16 = sand.u32 1, %s5803_s9   ;;  %s4369_s24 = sshll.u32 %s349_s27, 8 }
  0x6f   : > { %s359_s25 = scalar_lea.sflag [#allocation7], %s358_s16  ;;  %s5960_s23 = scalar_lea.vmem [#allocation6], %s4369_s24 }
  0x70   : > { %5700 = dma.done.wait (%p6888_p3), %s359_s25, 8192  }
  0x71   : > { %5702 = vsyncadd (%p6888_p3), %s359_s25, 4294959104  ;;  %p419_p8 = scmp.lt.s32.totalorder %s5803_s9, 1  ;;  %s5978_s19 = scalar_lea.vmem [#allocation8], %s4369_s24 }
  0x72   : > { %p4374_p4 = scmp.ne.s32.totalorder %s5803_s9, 0 }
  0x73   : > { %s420_s13 = scalar_select %p419_p8, %s5803_s9, 1 }
  0x74   : > { %433 = sbr.rel (%p4374_p4) target bundleno = 302 (0x12e), region = 68 }
  0x75   : > { %s5160_s12 = smul.u32 192, %s420_s13  ;;  %s4569_s29 = sshll.u32 %s420_s13, 5 }
  0x76   : > { %s5971_s18 = scalar_lea.vmem %s6872_s7, %s4569_s29 }
  0x77   : > { %s5976_s26 = scalar_lea.vmem %s6868_s3, %s5160_s12 }
  0x79   : > { %v5984_v0 = vld [vmem:[%s6865_s0 + $0x10] sm:$0xff]  ;;  %v434_v1 = vld [vmem:[%s6865_s0] sm:$0xff]  ;;  %v5993_v2 = vld [vmem:[%s6865_s0 + $0x18] sm:$0xff] }
  0x7a   : > { %444 = vadd.xlane.f32.xlu1 %v5984_v0  ;;  %440 = vadd.xlane.f32.xlu0 %v434_v1  ;;  %v435_v3 = vld [vmem:[%s6865_s0 + $0x8] sm:$0xff]  ;;  %v453_v5 = vmul.f32 %v434_v1, %v434_v1  ;;  %v456_v6 = vmul.f32 %v5993_v2, %v5993_v2  ;;  %v455_v7 = vmul.f32 %v5984_v0, %v5984_v0  ;;  %v4375_v43 = vld [vmem:[%s6867_s2] ss:$0 sm:$0xff]  ;;  %v4376_v46 = vld [vmem:[%s6867_s2 + $0x1] ss:$0 sm:$0xff] }
  0x7b   : > { %v454_v4 = vmul.f32 %v435_v3, %v435_v3 }
  0x7e   : > { %446 = vadd.xlane.f32.xlu1 %v5993_v2  ;;  %442 = vadd.xlane.f32.xlu0 %v435_v3 }
  0x82   : > { %459 = vadd.xlane.f32.xlu1 %v454_v4  ;;  %457 = vadd.xlane.f32.xlu0 %v453_v5 }
  0x86   : > { %463 = vadd.xlane.f32.xlu1 %v456_v6  ;;  %461 = vadd.xlane.f32.xlu0 %v455_v7 }
 0x103   : > { %v445_v8 = vpop.xlane.xlu1 %444  ;;  %v441_v9 = vpop.xlane.xlu0 %440 }
 0x104   : > { %v449_v12 = vmul.f32 0.0078125, %v441_v9  ;;  %v451_v14 = vmul.f32 0.0078125, %v445_v8 }
 0x106   : > { %v469_v18 = vmul.f32 %v449_v12, %v449_v12  ;;  %v471_v24 = vmul.f32 %v451_v14, %v451_v14  ;;  %v481_v42 = vsub.f32 %v434_v1, %v449_v12  ;;  %v483_v51 = vsub.f32 %v5984_v0, %v451_v14 }
 0x107   : > { %v447_v10 = vpop.xlane.xlu1 %446  ;;  %v443_v11 = vpop.xlane.xlu0 %442 }
 0x108   : > { %v450_v13 = vmul.f32 0.0078125, %v443_v11  ;;  %v452_v15 = vmul.f32 0.0078125, %v447_v10 }
 0x10a   : > { %v470_v19 = vmul.f32 %v450_v13, %v450_v13  ;;  %v472_v25 = vmul.f32 %v452_v15, %v452_v15  ;;  %v482_v40 = vsub.f32 %v435_v3, %v450_v13  ;;  %v484_v48 = vsub.f32 %v5993_v2, %v452_v15 }
 0x10b   : > { %v460_v16 = vpop.xlane.xlu1 %459  ;;  %v458_v17 = vpop.xlane.xlu0 %457 }
 0x10c   : > { %v466_v20 = vmul.f32 0.0078125, %v460_v16  ;;  %v465_v21 = vmul.f32 0.0078125, %v458_v17 }
 0x10e   : > { %v474_v22 = vsub.f32 %v466_v20, %v470_v19  ;;  %v473_v23 = vsub.f32 %v465_v21, %v469_v18 }
 0x10f   : > { %v464_v26 = vpop.xlane.xlu1 %463  ;;  %v462_v27 = vpop.xlane.xlu0 %461 }
 0x110   : > { %v478_v28 = vmax.f32 %v474_v22, 0.0  ;;  %v477_v29 = vmax.f32 %v473_v23, 0.0  ;;  %v468_v30 = vmul.f32 0.0078125, %v464_v26  ;;  %v467_v31 = vmul.f32 0.0078125, %v462_v27 }
 0x112   : > { %v486_v32 = vadd.f32 1e-12, %v478_v28  ;;  %v485_v33 = vadd.f32 1e-12, %v477_v29  ;;  %v476_v34 = vsub.f32 %v468_v30, %v472_v25  ;;  %v475_v35 = vsub.f32 %v467_v31, %v471_v24 }
 0x114   : > { %5229 = vrsqrt.f32 %v486_v32  ;;  %v480_v36 = vmax.f32 %v476_v34, 0.0  ;;  %v479_v37 = vmax.f32 %v475_v35, 0.0 }
 0x115   : > { %5231 = vrsqrt.f32 %v485_v33 }
 0x116   : > { %v488_v38 = vadd.f32 1e-12, %v480_v36  ;;  %v487_v39 = vadd.f32 1e-12, %v479_v37 }
 0x118   : > { %5233 = vrsqrt.f32 %v488_v38 }
 0x119   : > { %5235 = vrsqrt.f32 %v487_v39 }
 0x121   : > { %v5230_v41 = vpop.eup %5229 }
 0x122   : > { %v5232_v44 = vpop.eup %5231  ;;  %v494_v45 = vmul.f32 %v5230_v41, %v482_v40 }
 0x123   : > { %v493_v47 = vmul.f32 %v5232_v44, %v481_v42 }
 0x124   : > { %v502_v49 = vmul.f32 %v4375_v43, %v494_v45 }
 0x125   : > { %v5234_v50 = vpop.eup %5233  ;;  %v501_v52 = vmul.f32 %v4375_v43, %v493_v47 }
 0x126   : > { %v5236_v53 = vpop.eup %5235  ;;  %v510_v54 = vadd.f32 %v4376_v46, %v502_v49  ;;  %v496_v55 = vmul.f32 %v5234_v50, %v484_v48 }
 0x127   : > { %v509_v56 = vadd.f32 %v4376_v46, %v501_v52  ;;  %v495_v57 = vmul.f32 %v5236_v53, %v483_v51 }
 0x128   : > { %514 = vst [vmem:[#allocation2] sm:$0xff] %v510_v54  ;;  %v504_v58 = vmul.f32 %v4375_v43, %v496_v55 }
 0x129   : > { %513 = vst [vmem:[#allocation2 + $0x10] sm:$0xff] %v509_v56  ;;  %v503_v59 = vmul.f32 %v4375_v43, %v495_v57 }
 0x12a   : > { %v512_v60 = vadd.f32 %v4376_v46, %v504_v58 }
 0x12b   : > { %v511_v61 = vadd.f32 %v4376_v46, %v503_v59 }
 0x12c   : > { %516 = vst [vmem:[#allocation2 + $0x8] sm:$0xff] %v512_v60 }
 0x12d   : > { %515 = vst [vmem:[#allocation2 + $0x18] sm:$0xff] %v511_v61 }
 0x12e PF: > { %v5267_v62 = vld [vmem:[%s5976_s26 + $0xac] ss:$12 sps:$4 sm:$0xff]   ;;  %v5268_v63 = vld [vmem:[%s5976_s26 + $0xa8] ss:$12 sps:$4 sm:$0xff]   ;;  %v5270_v1 = vld [vmem:[%s5976_s26 + $0x90] ss:$12 sps:$4 sm:$0xff]   ;;  %v549_v21 = vlaneseq }
 0x12f   : > { %4808 = vmatprep.subr.bf16.mxu1 %v5267_v62  ;;  %v5269_v0 = vld [vmem:[%s5976_s26 + $0x94] ss:$12 sps:$4 sm:$0xff]   ;;  %4788 = vmatprep.subr.bf16.mxu0 %v5268_v63  ;;  %v5271_v2 = vld [vmem:[%s5976_s26 + $0x7c] ss:$12 sps:$4 sm:$0xff]   ;;  %v5272_v3 = vld [vmem:[%s5976_s26 + $0x78] ss:$12 sps:$4 sm:$0xff]  }
 0x130   : > { %4809 = vmatpush3.bf16.msra.mxu1 %v5267_v62  ;;  %4789 = vmatpush3.bf16.msra.mxu0 %v5268_v63  ;;  %v5273_v4 = vld [vmem:[%s5976_s26 + $0x64] ss:$12 sps:$4 sm:$0xff]   ;;  %v5274_v5 = vld [vmem:[%s5976_s26 + $0x60] ss:$12 sps:$4 sm:$0xff]   ;;  %v5276_v7 = vld [vmem:[%s5976_s26 + $0x48] ss:$12 sps:$4 sm:$0xff]  }
 0x131   : > { %4810 = vmatprep.subr.bf16.mxu1 %v5269_v0  ;;  %4790 = vmatprep.subr.bf16.mxu0 %v5270_v1  ;;  %v5275_v6 = vld [vmem:[%s5976_s26 + $0x4c] ss:$12 sps:$4 sm:$0xff]   ;;  %v5277_v8 = vld [vmem:[%s5976_s26 + $0x34] ss:$12 sps:$4 sm:$0xff]   ;;  %v5278_v11 = vld [vmem:[%s5976_s26 + $0x30] ss:$12 sps:$4 sm:$0xff]  }
 0x132   : > { %v517_v9 = vld [vmem:[#allocation2 + $0x10] sm:$0xff]  ;;  %v518_v10 = vld [vmem:[#allocation2] sm:$0xff]  ;;  %v5279_v13 = vld [vmem:[%s5976_s26 + $0x1c] ss:$12 sps:$4 sm:$0xff]   ;;  %v5730_v20 = vmov 0.0   ;;  %vm5731_vm0 = vmmov 0  }
 0x133   : > { %v6023_v12 = vpack.c.bf16 %v518_v10, %v517_v9  ;;  %v5280_v14 = vld [vmem:[%s5976_s26 + $0x18] ss:$12 sps:$4 sm:$0xff]   ;;  %v5282_v16 = vld [vmem:[%s5976_s26] ss:$12 sps:$4 sm:$0xff]   ;;  %v6039_v22 = vshrl.u32 %v549_v21, 7  ;;  %vm890_vm1 = vcmask 261120  }
 0x134   : > { %4811 = vmatpush3.bf16.msra.mxu1 %v5269_v0  ;;  %4791 = vmatpush3.bf16.msra.mxu0 %v5270_v1  ;;  %v5281_v15 = vld [vmem:[%s5976_s26 + $0x4] ss:$12 sps:$4 sm:$0xff]   ;;  %v519_v17 = vld [vmem:[#allocation2 + $0x18] sm:$0xff]  ;;  %v520_v18 = vld [vmem:[#allocation2 + $0x8] sm:$0xff]  ;;  %vm1005_vm2 = vcmask 130048   ;;  %s5732_s22 = smov 96  }
 0x135   : > { %4812 = vmatprep.subr.bf16.mxu1 %v5271_v2  ;;  %4792 = vmatprep.subr.bf16.mxu0 %v5272_v3  ;;  %v6031_v19 = vpack.c.bf16 %v520_v18, %v519_v17  ;;  %v6042_v24 = vsub.s32 0, %v6039_v22  ;;  %v522_v26 = vld [vmem:[%s5971_s18 + $0x8] sm:$0xff]  ;;  %v521_v31 = vld [vmem:[%s5971_s18] sm:$0xff]  ;;  %v5283_v50 = vld [vmem:[%s5976_s26 + $0xb0] ss:$12 sps:$4 sm:$0xff]   ;;  %s5733_s27 = smov 64  }
 0x136   : > { %4824 = vmatprep.mubr.bf16.mxu1 %v6023_v12  ;;  %4804 = vmatprep.mubr.bf16.mxu0 %v6023_v12  ;;  %v5284_v51 = vld [vmem:[%s5976_s26 + $0x98] ss:$12 sps:$4 sm:$0xff]   ;;  %v5285_v52 = vld [vmem:[%s5976_s26 + $0x80] ss:$12 sps:$4 sm:$0xff]   ;;  %v5286_v53 = vld [vmem:[%s5976_s26 + $0x68] ss:$12 sps:$4 sm:$0xff]  }
 0x137   : > { %v6046_v30 = vrot.slane %v522_v26, %v6042_v24  ;;  %v6052_v36 = vrot.slane %v521_v31, %v6042_v24  ;;  %v5287_v54 = vld [vmem:[%s5976_s26 + $0x50] ss:$12 sps:$4 sm:$0xff]   ;;  %v5288_v55 = vld [vmem:[%s5976_s26 + $0x38] ss:$12 sps:$4 sm:$0xff]   ;;  %v5289_v56 = vld [vmem:[%s5976_s26 + $0x20] ss:$12 sps:$4 sm:$0xff]  }
 0x138   : > { %4813 = vmatpush3.bf16.msra.mxu1 %v5271_v2  ;;  %4793 = vmatpush3.bf16.msra.mxu0 %v5272_v3  ;;  %v5290_v57 = vld [vmem:[%s5976_s26 + $0x8] ss:$12 sps:$4 sm:$0xff]   ;;  %v525_v58 = vld [vmem:[%s6866_s1] sm:$0x1]  ;;  %v526_v61 = vld [vmem:[%s6866_s1 + $0x1] sm:$0x1] }
 0x139   : > { %4814 = vmatprep.subr.bf16.mxu1 %v5273_v4  ;;  %4794 = vmatprep.subr.bf16.mxu0 %v5274_v5  ;;  %v527_v59 = vsub.f32 1.0, %v525_v58  ;;  %v528_v63 = vsub.f32 1.0, %v526_v61  ;;  %v5294_v58 = vld [vmem:[%s5976_s26 + $0x90] ss:$12 sps:$4 sm:$0xff]   ;;  %s5734_s11 = smov 32   ;;  %vm3109_vm3 = vcmask 523264  }
 0x13a   : > { %vm3114_vm4 = vcmask 785408   ;;  %p4561_p5 = scmp.ne.s32.totalorder %s5803_s9, 1 }
 0x13b   : > { %v529_v60 = vmul.f32 -10000.0, %v527_v59 }
 0x13c   : > { %4815 = vmatpush3.bf16.msra.mxu1 %v5273_v4  ;;  %4795 = vmatpush3.bf16.msra.mxu0 %v5274_v5  ;;  %v530_v4 = vmul.f32 -10000.0, %v528_v63  ;;  %v5298_v63 = vld [vmem:[%s5976_s26 + $0x60] ss:$12 sps:$4 sm:$0xff]  }
 0x13d   : > { %4816 = vmatprep.subr.bf16.mxu1 %v5275_v6  ;;  %4796 = vmatprep.subr.bf16.mxu0 %v5276_v7  ;;  %v6087_v62 = vrot.slane %v529_v60, %v6042_v24  ;;  %v5296_v60 = vld [vmem:[%s5976_s26 + $0x78] ss:$12 sps:$4 sm:$0xff]  }
 0x13e   : > { %v6093_v10 = vrot.slane %v530_v4, %v6042_v24 }
 0x140   : > { %4817 = vmatpush3.bf16.msra.mxu1 %v5275_v6  ;;  %4797 = vmatpush3.bf16.msra.mxu0 %v5276_v7 }
 0x141   : > { %4818 = vmatprep.subr.bf16.mxu1 %v5277_v8  ;;  %4798 = vmatprep.subr.bf16.mxu0 %v5278_v11 }
 0x144   : > { %4819 = vmatpush3.bf16.msra.mxu1 %v5277_v8  ;;  %4799 = vmatpush3.bf16.msra.mxu0 %v5278_v11 }
 0x145   : > { %4820 = vmatprep.subr.bf16.mxu1 %v5279_v13  ;;  %4800 = vmatprep.subr.bf16.mxu0 %v5280_v14 }
 0x148   : > { %4821 = vmatpush3.bf16.msra.mxu1 %v5279_v13  ;;  %4801 = vmatpush3.bf16.msra.mxu0 %v5280_v14 }
 0x149   : > { %4822 = vmatprep.subr.bf16.mxu1 %v5281_v15  ;;  %4802 = vmatprep.subr.bf16.mxu0 %v5282_v16 }
 0x14c   : > { %4823 = vmatpush3.bf16.msra.mxu1 %v5281_v15  ;;  %4803 = vmatpush3.bf16.msra.mxu0 %v5282_v16 }
 0x14d   : > { %4848 = vmatprep.subr.bf16.mxu1 %v5730_v20  ;;  %4828 = vmatprep.subr.bf16.mxu0 %v5283_v50 }
 0x14f   : > { %4825 = vmatmul.mubr.bf16.vlgmr.msra.gmra.mxu1 %v6031_v19  ;;  %4805 = vmatmul.mubr.bf16.vlgmr.msra.gmra.mxu0 %v6031_v19 }
 0x150   : > { %4844 = vmatprep.mubr.bf16.mxu0 %v6023_v12  ;;  %4850 = vmatprep.mubr.msk.bf16.mxu1 %vm5731_vm0, %v5730_v20 }
 0x151   : > { %4829 = vmatpush3.bf16.msra.mxu0 %v5283_v50 }
 0x152   : > { %4830 = vmatprep.subr.bf16.mxu0 %v5284_v51 }
 0x155   : > { %4831 = vmatpush3.bf16.msra.mxu0 %v5284_v51 }
 0x156   : > { %4832 = vmatprep.subr.bf16.mxu0 %v5285_v52 }
 0x159   : > { %4833 = vmatpush3.bf16.msra.mxu0 %v5285_v52 }
 0x15a   : > { %4834 = vmatprep.subr.bf16.mxu0 %v5286_v53 }
 0x15d   : > { %4835 = vmatpush3.bf16.msra.mxu0 %v5286_v53 }
 0x15e   : > { %4836 = vmatprep.subr.bf16.mxu0 %v5287_v54 }
 0x161   : > { %4837 = vmatpush3.bf16.msra.mxu0 %v5287_v54 }
 0x162   : > { %4838 = vmatprep.subr.bf16.mxu0 %v5288_v55 }
 0x165   : > { %4839 = vmatpush3.bf16.msra.mxu0 %v5288_v55 }
 0x166   : > { %4840 = vmatprep.subr.bf16.mxu0 %v5289_v56 }
 0x169   : > { %4841 = vmatpush3.bf16.msra.mxu0 %v5289_v56 }
 0x16a   : > { %4842 = vmatprep.subr.bf16.mxu0 %v5290_v57 }
 0x16d   : > { %4843 = vmatpush3.bf16.msra.mxu0 %v5290_v57 }
 0x170   : > { %4845 = vmatmul.mubr.bf16.vlgmr.msra.gmra.mxu0 %v6031_v19 }
 0x171   : > { %4888 = vmatprep.mubr.bf16.mxu0 %v6023_v12 }
 0x20f   : > { %v4826_v23 = vpop.f32.mrf.mxu1  ;;  %v4806_v25 = vpop.f32.mrf.mxu0 }
 0x210   : > { %v761_v41 = vadd.f32 %v4826_v23, %v6046_v30  ;;  %v644_v47 = vadd.f32 %v4806_v25, %v6052_v36 }
 0x211   : > { %v752_v27 = vpop.f32.mrf.mxu1  ;;  %v635_v28 = vpop.f32.mrf.mxu0 }
 0x212   : > { %v753_v34 = vadd.f32 %v752_v27, %v6046_v30  ;;  %v636_v42 = vadd.f32 %v635_v28, %v6052_v36 }
 0x213   : > { %v4827_v29 = vpop.f32.mrf.mxu1  ;;  %v4807_v32 = vpop.f32.mrf.mxu0 }
 0x214   : > { %v764_v39 = vadd.f32 %v4827_v29, %v6046_v30  ;;  %v647_v48 = vadd.f32 %v4807_v32, %v6052_v36 }
 0x215   : > { %v755_v33 = vpop.f32.mrf.mxu1  ;;  %v638_v38 = vpop.f32.mrf.mxu0 }
 0x216   : > { %v756_v35 = vadd.f32 %v755_v33, %v6046_v30  ;;  %v639_v43 = vadd.f32 %v638_v38, %v6052_v36  ;;  %v887_v44 = vpack.c.bf16 %v764_v39, %v761_v41  ;;  %v885_v49 = vpack.c.bf16 %v647_v48, %v644_v47 }
 0x218   : > { %v886_v37 = vpack.c.bf16 %v756_v35, %v753_v34  ;;  %v884_v45 = vpack.c.bf16 %v639_v43, %v636_v42  ;;  %v942_v46 = vsel %vm890_vm1, %v887_v44, 0  ;;  %v5291_v44 = vld [vmem:[%s5976_s26 + $0x94] ss:$12 sps:$4 sm:$0xff]  }
 0x21a   : > { %v895_v40 = vsel %vm890_vm1, %v886_v37, 0 }
 0x21b   : > { %4849 = vmatpush3.bf16.xpose.msra.mxu1 %v895_v40 }
 0x21c   : > { %4854 = vmatprep.subr.bf16.mxu1 %v5730_v20 }
 0x222   : > { %4851 = vmatmul.mubr.msk.bf16.vlgmr.msra.gmra.mxu1 %vm890_vm1, %v884_v45  ;;  %v523_v45 = vld [vmem:[%s5971_s18 + $0x10] sm:$0xff] }
 0x223   : > { %4855 = vmatpush3.bf16.xpose.msra.mxu1 %v942_v46  ;;  %4856 = vmatprep.mubr.msk.bf16.mxu1 %vm5731_vm0, %v5730_v20  ;;  %v6115_v47 = vrot.slane %v523_v45, %v6042_v24  ;;  %v5292_v24 = vld [vmem:[%s5976_s26 + $0xac] ss:$12 sps:$4 sm:$0xff]  }
 0x224   : > { %4860 = vmatprep.subr.bf16.mxu1 %v5730_v20 }
 0x22a   : > { %4857 = vmatmul.mubr.msk.bf16.vlgmr.msra.gmra.mxu1 %vm890_vm1, %v885_v49 }
 0x22b   : > { %4862 = vmatprep.mubr.msk.bf16.mxu1 %vm5731_vm0, %v5730_v20 }
 0x230   : > { %v4846_v46 = vpop.f32.mrf.mxu0 }
 0x231   : > { %v878_v49 = vadd.f32 %v4846_v46, %v6115_v47 }
 0x232   : > { %v869_v48 = vpop.f32.mrf.mxu0 }
 0x233   : > { %v870_v51 = vadd.f32 %v869_v48, %v6115_v47 }
 0x234   : > { %v4847_v50 = vpop.f32.mrf.mxu0 }
 0x235   : > { %v881_v52 = vadd.f32 %v4847_v50, %v6115_v47 }
 0x236   : > { %v872_v53 = vpop.f32.mrf.mxu0 }
 0x237   : > { %v889_v54 = vpack.c.bf16 %v881_v52, %v878_v49  ;;  %v873_v55 = vadd.f32 %v872_v53, %v6115_v47  ;;  %v5307_v52 = vld [vmem:[%s5976_s26 + $0xb0] ss:$12 sps:$4 sm:$0xff]   ;;  %v5308_v53 = vld [vmem:[%s5976_s26 + $0x98] ss:$12 sps:$4 sm:$0xff]  }
 0x239   : > { %v888_v56 = vpack.c.bf16 %v873_v55, %v870_v51  ;;  %v5310_v55 = vld [vmem:[%s5976_s26 + $0x68] ss:$12 sps:$4 sm:$0xff]  }
 0x23b   : > { %4861 = vmatpush3.bf16.msra.mxu1 %v888_v56  ;;  %v5312_v56 = vld [vmem:[%s5976_s26 + $0x38] ss:$12 sps:$4 sm:$0xff]  }
 0x23c   : > { %4866 = vmatprep.subr.bf16.mxu1 %v5730_v20 }
 0x2e2   : > { %v931_v0 = vpop.f32.mrf.mxu1 }
 0x2e3   : > { %v985_v1 = vmul.f32 0.17677669, %v931_v0  ;;  %v5300_v0 = vld [vmem:[%s5976_s26 + $0x48] ss:$12 sps:$4 sm:$0xff]  }
 0x2e4   : > { %v4852_v2 = vpop.f32.mrf.mxu1 }
 0x2e5   : > { %v1001_v3 = vadd.f32 %v6087_v62, %v985_v1  ;;  %v5302_v1 = vld [vmem:[%s5976_s26 + $0x30] ss:$12 sps:$4 sm:$0xff]   ;;  %v5304_v2 = vld [vmem:[%s5976_s26 + $0x18] ss:$12 sps:$4 sm:$0xff]  }
 0x2e6   : > { %v934_v5 = vpop.f32.mrf.mxu1 }
 0x2e7   : > { %v986_v6 = vmul.f32 0.17677669, %v934_v5  ;;  %v1006_v7 = vsel %vm1005_vm2, %v1001_v3, -inf  ;;  %v5293_v5 = vld [vmem:[%s5976_s26 + $0xa8] ss:$12 sps:$4 sm:$0xff]  }
 0x2e8   : > { %1007 = vmax.xlane.f32.xlu0 %v1006_v7  ;;  %v4853_v8 = vpop.f32.mrf.mxu1  ;;  %v5297_v7 = vld [vmem:[%s5976_s26 + $0x64] ss:$12 sps:$4 sm:$0xff]  }
 0x2e9   : > { %v1002_v9 = vadd.f32 %v6087_v62, %v986_v6  ;;  %v5295_v6 = vld [vmem:[%s5976_s26 + $0x7c] ss:$12 sps:$4 sm:$0xff]   ;;  %v5299_v8 = vld [vmem:[%s5976_s26 + $0x4c] ss:$12 sps:$4 sm:$0xff]  }
 0x2ea   : > { %v978_v11 = vpop.f32.mrf.mxu1 }
 0x2eb   : > { %v987_v13 = vmul.f32 0.17677669, %v978_v11  ;;  %v1009_v14 = vsel %vm1005_vm2, %v1002_v9, -inf  ;;  %v5303_v11 = vld [vmem:[%s5976_s26 + $0x1c] ss:$12 sps:$4 sm:$0xff]  }
 0x2ec   : > { %1010 = vmax.xlane.f32.xlu0 %v1009_v14  ;;  %v4858_v15 = vpop.f32.mrf.mxu1  ;;  %v5306_v14 = vld [vmem:[%s5976_s26] ss:$12 sps:$4 sm:$0xff]  }
 0x2ed   : > { %v1003_v16 = vadd.f32 %v6093_v10, %v987_v13  ;;  %v5305_v13 = vld [vmem:[%s5976_s26 + $0x4] ss:$12 sps:$4 sm:$0xff]  }
 0x2ee   : > { %v981_v17 = vpop.f32.mrf.mxu1 }
 0x2ef   : > { %v988_v18 = vmul.f32 0.17677669, %v981_v17  ;;  %v1012_v21 = vsel %vm1005_vm2, %v1003_v16, -inf }
 0x2f0   : > { %1013 = vmax.xlane.f32.xlu1 %v1012_v21  ;;  %v4859_v23 = vpop.f32.mrf.mxu1 }
 0x2f1   : > { %v1004_v25 = vadd.f32 %v6093_v10, %v988_v18 }
 0x2f3   : > { %v1015_v26 = vsel %vm1005_vm2, %v1004_v25, -inf }
 0x2f4   : > { %1016 = vmax.xlane.f32.xlu1 %v1015_v26 }
 0x371   : > { %v1008_v27 = vpop.xlane.xlu0 %1007 }
 0x372   : > { %v1018_v28 = vsub.f32 %v1001_v3, %v1008_v27 }
 0x374   : > { %v1022_v29 = vmul.f32 1.442695, %v1018_v28 }
 0x375   : > { %v1011_v31 = vpop.xlane.xlu0 %1010 }
 0x376   : > { %5451 = vpow2.f32 %v1022_v29  ;;  %v1019_v32 = vsub.f32 %v1002_v9, %v1011_v31  ;;  %v5301_v9 = vld [vmem:[%s5976_s26 + $0x34] ss:$12 sps:$4 sm:$0xff]  }
 0x378   : > { %v1024_v33 = vmul.f32 1.442695, %v1019_v32 }
 0x379   : > { %v1014_v34 = vpop.xlane.xlu1 %1013 }
 0x37a   : > { %5453 = vpow2.f32 %v1024_v33  ;;  %v1020_v35 = vsub.f32 %v1003_v16, %v1014_v34 }
 0x37c   : > { %v1026_v37 = vmul.f32 1.442695, %v1020_v35 }
 0x37d   : > { %v1017_v57 = vpop.xlane.xlu1 %1016 }
 0x37e   : > { %5455 = vpow2.f32 %v1026_v37  ;;  %v1021_v59 = vsub.f32 %v1004_v25, %v1017_v57  ;;  %v5313_v57 = vld [vmem:[%s5976_s26 + $0x20] ss:$12 sps:$4 sm:$0xff]  }
 0x380   : > { %v1028_v61 = vmul.f32 1.442695, %v1021_v59 }
 0x382   : > { %5457 = vpow2.f32 %v1028_v61 }
 0x383   : > { %v6100_v38 = vpop.eup %5451 }
 0x384   : > { %v1030_v39 = vsel %vm1005_vm2, %v6100_v38, 0.0 }
 0x385   : > { %1031 = vadd.xlane.f32.xlu0 %v1030_v39 }
 0x387   : > { %v6104_v40 = vpop.eup %5453 }
 0x388   : > { %v1033_v41 = vsel %vm1005_vm2, %v6104_v40, 0.0 }
 0x389   : > { %1034 = vadd.xlane.f32.xlu1 %v1033_v41 }
 0x38b   : > { %v6108_v42 = vpop.eup %5455 }
 0x38c   : > { %v1036_v43 = vsel %vm1005_vm2, %v6108_v42, 0.0 }
 0x38d   : > { %1037 = vadd.xlane.f32.xlu0 %v1036_v43 }
 0x38f   : > { %v5458_v3 = vpop.eup %5457 }
 0x390   : > { %v1039_v4 = vsel %vm1005_vm2, %v5458_v3, 0.0 }
 0x39a   : > { %1341 = vrot.lane.b32.xlu1 %v5291_v44, %s5732_s22 }
 0x3a3   : > { %1343 = vrot.lane.b32.xlu0 %v5292_v24, %s5732_s22  ;;  %v5311_v24 = vld [vmem:[%s5976_s26 + $0x50] ss:$12 sps:$4 sm:$0xff]  }
 0x3a7   : > { %1208 = vrot.lane.b32.xlu0 %v5294_v58, %s5732_s22  ;;  %v5314_v58 = vld [vmem:[%s5976_s26 + $0x8] ss:$12 sps:$4 sm:$0xff]  }
 0x3ab   : > { %1206 = vrot.lane.b32.xlu0 %v5296_v60, %s5732_s22 }
 0x3af   : > { %1204 = vrot.lane.b32.xlu0 %v5298_v63, %s5732_s22 }
 0x3b3   : > { %1202 = vrot.lane.b32.xlu0 %v5300_v0, %s5732_s22 }
 0x3b7   : > { %1200 = vrot.lane.b32.xlu0 %v5302_v1, %s5732_s22 }
 0x3bb   : > { %1198 = vrot.lane.b32.xlu0 %v5304_v2, %s5732_s22 }
 0x3be   : > { %1040 = vadd.xlane.f32.xlu1 %v1039_v4 }
 0x3bf   : > { %1354 = vrot.lane.b32.xlu0 %v6046_v30, %s5732_s22 }
 0x3c3   : > { %1476 = vrot.lane.b32.xlu0 %v5307_v52, %s5732_s22 }
 0x3cf   : > { %1210 = vrot.lane.b32.xlu1 %v5293_v5, %s5732_s22 }
 0x3d3   : > { %1339 = vrot.lane.b32.xlu1 %v5295_v6, %s5732_s22 }
 0x3d7   : > { %1337 = vrot.lane.b32.xlu1 %v5297_v7, %s5732_s22 }
 0x3db   : > { %1335 = vrot.lane.b32.xlu1 %v5299_v8, %s5732_s22 }
 0x3df   : > { %1333 = vrot.lane.b32.xlu1 %v5301_v9, %s5732_s22 }
 0x3e3   : > { %1331 = vrot.lane.b32.xlu1 %v5303_v11, %s5732_s22 }
 0x3e7   : > { %1329 = vrot.lane.b32.xlu1 %v5305_v13, %s5732_s22 }
 0x3eb   : > { %1196 = vrot.lane.b32.xlu1 %v5306_v14, %s5732_s22 }
 0x3ef   : > { %1221 = vrot.lane.b32.xlu1 %v6052_v36, %s5732_s22 }
 0x3f3   : > { %1474 = vrot.lane.b32.xlu1 %v5308_v53, %s5732_s22 }
 0x3f7   : > { %1470 = vrot.lane.b32.xlu1 %v5310_v55, %s5732_s22 }
 0x3fb   : > { %1466 = vrot.lane.b32.xlu1 %v5312_v56, %s5732_s22 }
 0x3ff   : > { %1462 = vrot.lane.b32.xlu1 %v5314_v58, %s5732_s22 }
 0x40e   : > { %v1032_v15 = vpop.xlane.xlu0 %1031 }
 0x40f   : > { %5459 = vrcp.f32 %v1032_v15 }
 0x412   : > { %v1035_v16 = vpop.xlane.xlu1 %1034 }
 0x413   : > { %5461 = vrcp.f32 %v1035_v16 }
 0x416   : > { %v1038_v21 = vpop.xlane.xlu0 %1037  ;;  %v1342_v29 = vpop.permute.xlu1 %1341 }
 0x417   : > { %5463 = vrcp.f32 %v1038_v21 }
 0x41a   : > { %v1344_v27 = vpop.permute.xlu0 %1343 }
 0x41c   : > { %v5460_v17 = vpop.eup %5459 }
 0x41d   : > { %v1043_v23 = vmul.f32 %v5460_v17, %v6100_v38 }
 0x41e   : > { %v1209_v28 = vpop.permute.xlu0 %1208 }
 0x420   : > { %v5462_v18 = vpop.eup %5461 }
 0x421   : > { %v1045_v25 = vmul.f32 %v5462_v18, %v6104_v40 }
 0x422   : > { %v1207_v32 = vpop.permute.xlu0 %1206 }
 0x423   : > { %v1050_v26 = vpack.c.bf16 %v1045_v25, %v1043_v23 }
 0x424   : > { %v5464_v37 = vpop.eup %5463 }
 0x425   : > { %4863 = vmatmul.mubr.msk.bf16.vlgmr.msra.gmra.mxu1 %vm1005_vm2, %v1050_v26  ;;  %v1047_v41 = vmul.f32 %v5464_v37, %v6108_v42 }
 0x426   : > { %4867 = vmatpush3.bf16.msra.mxu1 %v889_v54  ;;  %4868 = vmatprep.mubr.msk.bf16.mxu1 %vm5731_vm0, %v5730_v20  ;;  %v1205_v34 = vpop.permute.xlu0 %1204  ;;  %v5309_v54 = vld [vmem:[%s5976_s26 + $0x80] ss:$12 sps:$4 sm:$0xff]  }
 0x427   : > { %4892 = vmatprep.subr.bf16.mxu1 %v1344_v27  ;;  %1472 = vrot.lane.b32.xlu0 %v5309_v54, %s5732_s22 }
 0x42a   : > { %v1203_v39 = vpop.permute.xlu0 %1202 }
 0x42b   : > { %1468 = vrot.lane.b32.xlu0 %v5311_v24, %s5732_s22 }
 0x42e   : > { %v1201_v46 = vpop.permute.xlu0 %1200 }
 0x42f   : > { %1464 = vrot.lane.b32.xlu0 %v5313_v57, %s5732_s22 }
 0x432   : > { %v1199_v50 = vpop.permute.xlu0 %1198 }
 0x436   : > { %v1355_v9 = vpop.permute.xlu0 %1354 }
 0x447   : > { %v1041_v31 = vpop.xlane.xlu1 %1040 }
 0x448   : > { %5465 = vrcp.f32 %v1041_v31 }
 0x44b   : > { %v1211_v33 = vpop.permute.xlu1 %1210 }
 0x44c   : > { %4872 = vmatprep.subr.bf16.mxu0 %v1211_v33 }
 0x44d   : > { %4873 = vmatpush3.bf16.msra.mxu0 %v1211_v33 }
 0x44e   : > { %4874 = vmatprep.subr.bf16.mxu0 %v1209_v28 }
 0x44f   : > { %v1340_v35 = vpop.permute.xlu1 %1339 }
 0x451   : > { %4875 = vmatpush3.bf16.msra.mxu0 %v1209_v28 }
 0x452   : > { %4876 = vmatprep.subr.bf16.mxu0 %v1207_v32 }
 0x453   : > { %v1338_v38 = vpop.permute.xlu1 %1337 }
 0x455   : > { %v5466_v40 = vpop.eup %5465  ;;  %4877 = vmatpush3.bf16.msra.mxu0 %v1207_v32 }
 0x456   : > { %v1049_v43 = vmul.f32 %v5466_v40, %v5458_v3  ;;  %4878 = vmatprep.subr.bf16.mxu0 %v1205_v34 }
 0x457   : > { %v1336_v44 = vpop.permute.xlu1 %1335 }
 0x458   : > { %v1051_v45 = vpack.c.bf16 %v1049_v43, %v1047_v41 }
 0x459   : > { %4879 = vmatpush3.bf16.msra.mxu0 %v1205_v34 }
 0x45a   : > { %4869 = vmatmul.mubr.msk.bf16.vlgmr.msra.gmra.mxu1 %vm1005_vm2, %v1051_v45  ;;  %4880 = vmatprep.subr.bf16.mxu0 %v1203_v39 }
 0x45b   : > { %4893 = vmatpush3.bf16.msra.mxu1 %v1344_v27  ;;  %v1334_v48 = vpop.permute.xlu1 %1333  ;;  %4908 = vmatprep.mubr.bf16.mxu1 %v6023_v12 }
 0x45c   : > { %4894 = vmatprep.subr.bf16.mxu1 %v1342_v29 }
 0x45d   : > { %4881 = vmatpush3.bf16.msra.mxu0 %v1203_v39 }
 0x45e   : > { %4882 = vmatprep.subr.bf16.mxu0 %v1201_v46 }
 0x45f   : > { %4895 = vmatpush3.bf16.msra.mxu1 %v1342_v29  ;;  %v1332_v49 = vpop.permute.xlu1 %1331 }
 0x460   : > { %4896 = vmatprep.subr.bf16.mxu1 %v1340_v35 }
 0x461   : > { %4883 = vmatpush3.bf16.msra.mxu0 %v1201_v46 }
 0x462   : > { %4884 = vmatprep.subr.bf16.mxu0 %v1199_v50 }
 0x463   : > { %4897 = vmatpush3.bf16.msra.mxu1 %v1340_v35  ;;  %v1330_v42 = vpop.permute.xlu1 %1329  ;;  %v1477_v35 = vpop.permute.xlu0 %1476 }
 0x464   : > { %4898 = vmatprep.subr.bf16.mxu1 %v1338_v38 }
 0x465   : > { %4885 = vmatpush3.bf16.msra.mxu0 %v1199_v50 }
 0x467   : > { %4899 = vmatpush3.bf16.msra.mxu1 %v1338_v38  ;;  %v1197_v51 = vpop.permute.xlu1 %1196 }
 0x468   : > { %4900 = vmatprep.subr.bf16.mxu1 %v1336_v44  ;;  %4886 = vmatprep.subr.bf16.mxu0 %v1197_v51 }
 0x469   : > { %4887 = vmatpush3.bf16.msra.mxu0 %v1197_v51 }
 0x46a   : > { %4912 = vmatprep.subr.bf16.mxu0 %v1477_v35 }
 0x46b   : > { %4901 = vmatpush3.bf16.msra.mxu1 %v1336_v44  ;;  %v1222_v18 = vpop.permute.xlu1 %1221 }
 0x46c   : > { %4902 = vmatprep.subr.bf16.mxu1 %v1334_v48  ;;  %4889 = vmatmul.mubr.bf16.vlgmr.msra.gmra.mxu0 %v6031_v19 }
 0x46d   : > { %4928 = vmatprep.mubr.bf16.mxu0 %v6023_v12  ;;  %4913 = vmatpush3.bf16.msra.mxu0 %v1477_v35  ;;  %v5326_v35 = vld [vmem:[%s5976_s26 + $0x1c] ss:$12 sps:$4 sm:$0xff]  }
 0x46f   : > { %4903 = vmatpush3.bf16.msra.mxu1 %v1334_v48  ;;  %v1475_v37 = vpop.permute.xlu1 %1474 }
 0x470   : > { %4904 = vmatprep.subr.bf16.mxu1 %v1332_v49  ;;  %4914 = vmatprep.subr.bf16.mxu0 %v1475_v37 }
 0x471   : > { %4915 = vmatpush3.bf16.msra.mxu0 %v1475_v37  ;;  %v5328_v37 = vld [vmem:[%s5976_s26 + $0x4] ss:$12 sps:$4 sm:$0xff]  }
 0x473   : > { %4905 = vmatpush3.bf16.msra.mxu1 %v1332_v49  ;;  %v1471_v39 = vpop.permute.xlu1 %1470 }
 0x474   : > { %4906 = vmatprep.subr.bf16.mxu1 %v1330_v42 }
 0x477   : > { %4907 = vmatpush3.bf16.msra.mxu1 %v1330_v42  ;;  %v1467_v41 = vpop.permute.xlu1 %1466 }
 0x478   : > { %4932 = vmatprep.subr.bf16.mxu1 %v5730_v20 }
 0x47a   : > { %4909 = vmatmul.mubr.bf16.vlgmr.msra.gmra.mxu1 %v6031_v19 }
 0x47b   : > { %4934 = vmatprep.mubr.msk.bf16.mxu1 %vm5731_vm0, %v5730_v20  ;;  %v1463_v44 = vpop.permute.xlu1 %1462 }
 0x499   : > { %v1473_v38 = vpop.permute.xlu0 %1472 }
 0x49a   : > { %4916 = vmatprep.subr.bf16.mxu0 %v1473_v38 }
 0x49b   : > { %4917 = vmatpush3.bf16.msra.mxu0 %v1473_v38 }
 0x49c   : > { %4918 = vmatprep.subr.bf16.mxu0 %v1471_v39 }
 0x49d   : > { %v1469_v40 = vpop.permute.xlu0 %1468 }
 0x49f   : > { %4919 = vmatpush3.bf16.msra.mxu0 %v1471_v39  ;;  %v5330_v39 = vld [vmem:[%s5976_s26] ss:$12 sps:$4 sm:$0xff]  }
 0x4a0   : > { %4920 = vmatprep.subr.bf16.mxu0 %v1469_v40 }
 0x4a1   : > { %v1465_v43 = vpop.permute.xlu0 %1464 }
 0x4a3   : > { %4921 = vmatpush3.bf16.msra.mxu0 %v1469_v40 }
 0x4a4   : > { %4922 = vmatprep.subr.bf16.mxu0 %v1467_v41 }
 0x4a7   : > { %4923 = vmatpush3.bf16.msra.mxu0 %v1467_v41  ;;  %v5316_v41 = vld [vmem:[%s5976_s26 + $0x94] ss:$12 sps:$4 sm:$0xff]  }
 0x4a8   : > { %4924 = vmatprep.subr.bf16.mxu0 %v1465_v43 }
 0x4ab   : > { %4925 = vmatpush3.bf16.msra.mxu0 %v1465_v43  ;;  %v5317_v43 = vld [vmem:[%s5976_s26 + $0xa8] ss:$12 sps:$4 sm:$0xff]  }
 0x4ac   : > { %4926 = vmatprep.subr.bf16.mxu0 %v1463_v44 }
 0x4af   : > { %4927 = vmatpush3.bf16.msra.mxu0 %v1463_v44  ;;  %v5319_v44 = vld [vmem:[%s5976_s26 + $0x90] ss:$12 sps:$4 sm:$0xff]  }
 0x4b2   : > { %4929 = vmatmul.mubr.bf16.vlgmr.msra.gmra.mxu0 %v6031_v19 }
 0x4b3   : > { %4972 = vmatprep.mubr.bf16.mxu0 %v6023_v12 }
 0x4e5   : > { %v6188_v59 = vpop.f32.mrf.mxu1 }
 0x4e7   : > { %v4864_v60 = vpop.f32.mrf.mxu1 }
 0x4e9   : > { %v6190_v61 = vpop.f32.mrf.mxu1 }
 0x4eb   : > { %v4865_v63 = vpop.f32.mrf.mxu1 }
 0x51a   : > { %v6192_v0 = vpop.f32.mrf.mxu1 }
 0x51c   : > { %v4870_v1 = vpop.f32.mrf.mxu1 }
 0x51e   : > { %v6194_v2 = vpop.f32.mrf.mxu1 }
 0x520   : > { %v4871_v3 = vpop.f32.mrf.mxu1 }
 0x52c   : > { %v4890_v4 = vpop.f32.mrf.mxu0 }
 0x52d   : > { %v1267_v32 = vadd.f32 %v4890_v4, %v1222_v18 }
 0x52e   : > { %v1258_v7 = vpop.f32.mrf.mxu0 }
 0x52f   : > { %v1259_v26 = vadd.f32 %v1258_v7, %v1222_v18 }
 0x530   : > { %v4891_v11 = vpop.f32.mrf.mxu0 }
 0x531   : > { %v1270_v33 = vadd.f32 %v4891_v11, %v1222_v18 }
 0x532   : > { %v1261_v17 = vpop.f32.mrf.mxu0 }
 0x533   : > { %v1262_v27 = vadd.f32 %v1261_v17, %v1222_v18  ;;  %v1540_v34 = vpack.c.bf16 %v1270_v33, %v1267_v32  ;;  %v5322_v33 = vld [vmem:[%s5976_s26 + $0x4c] ss:$12 sps:$4 sm:$0xff]  }
 0x535   : > { %v1539_v29 = vpack.c.bf16 %v1262_v27, %v1259_v26  ;;  %v5315_v26 = vld [vmem:[%s5976_s26 + $0xac] ss:$12 sps:$4 sm:$0xff]  }
 0x53a   : > { %v4910_v5 = vpop.f32.mrf.mxu1 }
 0x53b   : > { %v1400_v25 = vadd.f32 %v4910_v5, %v1355_v9 }
 0x53c   : > { %v1391_v6 = vpop.f32.mrf.mxu1 }
 0x53d   : > { %v1392_v14 = vadd.f32 %v1391_v6, %v1355_v9 }
 0x53e   : > { %v4911_v8 = vpop.f32.mrf.mxu1 }
 0x53f   : > { %v1403_v21 = vadd.f32 %v4911_v8, %v1355_v9 }
 0x540   : > { %v1394_v13 = vpop.f32.mrf.mxu1 }
 0x541   : > { %v1395_v15 = vadd.f32 %v1394_v13, %v1355_v9  ;;  %v1542_v28 = vpack.c.bf16 %v1403_v21, %v1400_v25 }
 0x543   : > { %v1541_v16 = vpack.c.bf16 %v1395_v15, %v1392_v14  ;;  %v1596_v31 = vsel %vm890_vm1, %v1542_v28, 0  ;;  %v5318_v28 = vld [vmem:[%s5976_s26 + $0x7c] ss:$12 sps:$4 sm:$0xff]  }
 0x545   : > { %v1549_v23 = vsel %vm890_vm1, %v1541_v16, 0 }
 0x546   : > { %4933 = vmatpush3.bf16.xpose.msra.mxu1 %v1549_v23 }
 0x547   : > { %4938 = vmatprep.subr.bf16.mxu1 %v5730_v20 }
 0x54d   : > { %4935 = vmatmul.mubr.msk.bf16.vlgmr.msra.gmra.mxu1 %vm890_vm1, %v1539_v29 }
 0x54e   : > { %4939 = vmatpush3.bf16.xpose.msra.mxu1 %v1596_v31  ;;  %4940 = vmatprep.mubr.msk.bf16.mxu1 %vm5731_vm0, %v5730_v20  ;;  %v5320_v31 = vld [vmem:[%s5976_s26 + $0x64] ss:$12 sps:$4 sm:$0xff]  }
 0x54f   : > { %4944 = vmatprep.subr.bf16.mxu1 %v5730_v20 }
 0x555   : > { %4941 = vmatmul.mubr.msk.bf16.vlgmr.msra.gmra.mxu1 %vm890_vm1, %v1540_v34  ;;  %v5324_v34 = vld [vmem:[%s5976_s26 + $0x34] ss:$12 sps:$4 sm:$0xff]  }
 0x556   : > { %4946 = vmatprep.mubr.msk.bf16.mxu1 %vm5731_vm0, %v5730_v20 }
 0x60d   : > { %v1585_v45 = vpop.f32.mrf.mxu1 }
 0x60e   : > { %v1639_v46 = vmul.f32 0.17677669, %v1585_v45  ;;  %v5321_v45 = vld [vmem:[%s5976_s26 + $0x78] ss:$12 sps:$4 sm:$0xff]  }
 0x60f   : > { %v4936_v48 = vpop.f32.mrf.mxu1 }
 0x610   : > { %v1643_v49 = vadd.f32 %v1639_v46, %v6087_v62  ;;  %v5323_v46 = vld [vmem:[%s5976_s26 + $0x60] ss:$12 sps:$4 sm:$0xff]   ;;  %v5325_v48 = vld [vmem:[%s5976_s26 + $0x48] ss:$12 sps:$4 sm:$0xff]  }
 0x611   : > { %v1588_v50 = vpop.f32.mrf.mxu1 }
 0x612   : > { %v1640_v42 = vmul.f32 0.17677669, %v1588_v50  ;;  %v1647_v51 = vsel %vm1005_vm2, %v1643_v49, -inf  ;;  %v5329_v50 = vld [vmem:[%s5976_s26 + $0x18] ss:$12 sps:$4 sm:$0xff]  }
 0x613   : > { %1648 = vmax.xlane.f32.xlu0 %v1647_v51  ;;  %v4937_v52 = vpop.f32.mrf.mxu1 }
 0x614   : > { %v1644_v53 = vadd.f32 %v1640_v42, %v6087_v62  ;;  %v4930_v42 = vpop.f32.mrf.mxu0 }
 0x615   : > { %v1632_v54 = vpop.f32.mrf.mxu1 }
 0x616   : > { %v1641_v55 = vmul.f32 0.17677669, %v1632_v54  ;;  %v1650_v24 = vsel %vm1005_vm2, %v1644_v53, -inf  ;;  %v1524_v52 = vpop.f32.mrf.mxu0 }
 0x617   : > { %1651 = vmax.xlane.f32.xlu1 %v1650_v24  ;;  %v4942_v56 = vpop.f32.mrf.mxu1 }
 0x618   : > { %v1645_v57 = vadd.f32 %v1641_v55, %v6093_v10  ;;  %v4931_v54 = vpop.f32.mrf.mxu0 }
 0x619   : > { %v1635_v58 = vpop.f32.mrf.mxu1 }
 0x61a   : > { %v1642_v60 = vmul.f32 0.17677669, %v1635_v58  ;;  %v1653_v63 = vsel %vm1005_vm2, %v1645_v57, -inf  ;;  %v1527_v24 = vpop.f32.mrf.mxu0 }
 0x61b   : > { %1654 = vmax.xlane.f32.xlu0 %v1653_v63  ;;  %v4943_v1 = vpop.f32.mrf.mxu1 }
 0x61c   : > { %v1646_v3 = vadd.f32 %v1642_v60, %v6093_v10 }
 0x61e   : > { %v1656_v4 = vsel %vm1005_vm2, %v1646_v3, -inf }
 0x61f   : > { %1657 = vmax.xlane.f32.xlu0 %v1656_v4 }
 0x69c   : > { %v1649_v5 = vpop.xlane.xlu0 %1648 }
 0x69d   : > { %v1659_v6 = vsub.f32 %v1643_v49, %v1649_v5  ;;  %v5327_v49 = vld [vmem:[%s5976_s26 + $0x30] ss:$12 sps:$4 sm:$0xff]  }
 0x69f   : > { %v1663_v7 = vmul.f32 1.442695, %v1659_v6 }
 0x6a0   : > { %v1652_v8 = vpop.xlane.xlu1 %1651 }
 0x6a1   : > { %5467 = vpow2.f32 %v1663_v7  ;;  %v1660_v9 = vsub.f32 %v1644_v53, %v1652_v8 }
 0x6a3   : > { %v1665_v11 = vmul.f32 1.442695, %v1660_v9 }
 0x6a4   : > { %v1655_v13 = vpop.xlane.xlu0 %1654 }
 0x6a5   : > { %5469 = vpow2.f32 %v1665_v11  ;;  %v1661_v14 = vsub.f32 %v1645_v57, %v1655_v13 }
 0x6a7   : > { %v1667_v15 = vmul.f32 1.442695, %v1661_v14 }
 0x6a8   : > { %v1658_v27 = vpop.xlane.xlu0 %1657 }
 0x6a9   : > { %5471 = vpow2.f32 %v1667_v15  ;;  %v1662_v29 = vsub.f32 %v1646_v3, %v1658_v27 }
 0x6ab   : > { %v1669_v32 = vmul.f32 1.442695, %v1662_v29 }
 0x6ad   : > { %5473 = vpow2.f32 %v1669_v32 }
 0x6ae   : > { %v6216_v16 = vpop.eup %5467 }
 0x6af   : > { %v1671_v17 = vsel %vm1005_vm2, %v6216_v16, 0.0 }
 0x6b0   : > { %1672 = vadd.xlane.f32.xlu0 %v1671_v17 }
 0x6b2   : > { %v6220_v18 = vpop.eup %5469 }
 0x6b3   : > { %v1674_v21 = vsel %vm1005_vm2, %v6220_v18, 0.0 }
 0x6b4   : > { %1675 = vadd.xlane.f32.xlu1 %v1674_v21 }
 0x6b6   : > { %v6224_v23 = vpop.eup %5471 }
 0x6b7   : > { %v1677_v25 = vsel %vm1005_vm2, %v6224_v23, 0.0 }
 0x6b8   : > { %1678 = vadd.xlane.f32.xlu0 %v1677_v25 }
 0x6ba   : > { %v6243_v38 = vpop.eup %5473 }
 0x6bb   : > { %v1680_v40 = vsel %vm1005_vm2, %v6243_v38, 0.0 }
 0x6c5   : > { %1983 = vrot.lane.b32.xlu1 %v5315_v26, %s5733_s27 }
 0x6ce   : > { %1487 = vrot.lane.b32.xlu0 %v6115_v47, %s5732_s22 }
 0x6d2   : > { %1979 = vrot.lane.b32.xlu0 %v5318_v28, %s5733_s27 }
 0x6d6   : > { %1977 = vrot.lane.b32.xlu0 %v5320_v31, %s5733_s27 }
 0x6da   : > { %1975 = vrot.lane.b32.xlu0 %v5322_v33, %s5733_s27 }
 0x6de   : > { %1973 = vrot.lane.b32.xlu0 %v5324_v34, %s5733_s27 }
 0x6e2   : > { %1971 = vrot.lane.b32.xlu0 %v5326_v35, %s5733_s27 }
 0x6e6   : > { %1969 = vrot.lane.b32.xlu0 %v5328_v37, %s5733_s27 }
 0x6e9   : > { %1681 = vadd.xlane.f32.xlu1 %v1680_v40  ;;  %v5332_v40 = vld [vmem:[%s5976_s26 + $0x98] ss:$12 sps:$4 sm:$0xff]  }
 0x6ea   : > { %1837 = vrot.lane.b32.xlu0 %v5330_v39, %s5733_s27  ;;  %v5331_v39 = vld [vmem:[%s5976_s26 + $0xb0] ss:$12 sps:$4 sm:$0xff]  }
 0x6ee   : > { %1861 = vrot.lane.b32.xlu0 %v6052_v36, %s5733_s27 }
 0x6f2   : > { %2113 = vrot.lane.b32.xlu0 %v5332_v40, %s5733_s27 }
 0x6fa   : > { %1981 = vrot.lane.b32.xlu1 %v5316_v41, %s5733_s27  ;;  %v5333_v41 = vld [vmem:[%s5976_s26 + $0x80] ss:$12 sps:$4 sm:$0xff]  }
 0x6fe   : > { %1851 = vrot.lane.b32.xlu1 %v5317_v43, %s5733_s27  ;;  %v5334_v43 = vld [vmem:[%s5976_s26 + $0x68] ss:$12 sps:$4 sm:$0xff]  }
 0x6ff   : > { %2109 = vrot.lane.b32.xlu0 %v5334_v43, %s5733_s27 }
 0x702   : > { %1849 = vrot.lane.b32.xlu1 %v5319_v44, %s5733_s27  ;;  %v5335_v44 = vld [vmem:[%s5976_s26 + $0x50] ss:$12 sps:$4 sm:$0xff]  }
 0x706   : > { %1847 = vrot.lane.b32.xlu1 %v5321_v45, %s5733_s27  ;;  %v5336_v45 = vld [vmem:[%s5976_s26 + $0x38] ss:$12 sps:$4 sm:$0xff]  }
 0x707   : > { %2105 = vrot.lane.b32.xlu0 %v5336_v45, %s5733_s27 }
 0x70a   : > { %1845 = vrot.lane.b32.xlu1 %v5323_v46, %s5733_s27  ;;  %v5337_v46 = vld [vmem:[%s5976_s26 + $0x20] ss:$12 sps:$4 sm:$0xff]  }
 0x70e   : > { %1843 = vrot.lane.b32.xlu1 %v5325_v48, %s5733_s27  ;;  %v5338_v48 = vld [vmem:[%s5976_s26 + $0x8] ss:$12 sps:$4 sm:$0xff]  }
 0x70f   : > { %2101 = vrot.lane.b32.xlu0 %v5338_v48, %s5733_s27 }
 0x712   : > { %1841 = vrot.lane.b32.xlu1 %v5327_v49, %s5733_s27 }
 0x716   : > { %1839 = vrot.lane.b32.xlu1 %v5329_v50, %s5733_s27 }
 0x71a   : > { %1993 = vrot.lane.b32.xlu1 %v6046_v30, %s5733_s27 }
 0x71e   : > { %2115 = vrot.lane.b32.xlu1 %v5331_v39, %s5733_s27 }
 0x722   : > { %2111 = vrot.lane.b32.xlu1 %v5333_v41, %s5733_s27 }
 0x726   : > { %2107 = vrot.lane.b32.xlu1 %v5335_v44, %s5733_s27 }
 0x72a   : > { %2103 = vrot.lane.b32.xlu1 %v5337_v46, %s5733_s27 }
 0x739   : > { %v1673_v51 = vpop.xlane.xlu0 %1672 }
 0x73a   : > { %5475 = vrcp.f32 %v1673_v51 }
 0x73d   : > { %v1676_v53 = vpop.xlane.xlu1 %1675 }
 0x73e   : > { %5477 = vrcp.f32 %v1676_v53 }
 0x741   : > { %v1679_v55 = vpop.xlane.xlu0 %1678  ;;  %v1984_v9 = vpop.permute.xlu1 %1983 }
 0x742   : > { %5479 = vrcp.f32 %v1679_v55 }
 0x745   : > { %v1488_v56 = vpop.permute.xlu0 %1487 }
 0x746   : > { %v1525_v57 = vadd.f32 %v1524_v52, %v1488_v56  ;;  %v1528_v58 = vadd.f32 %v1527_v24, %v1488_v56  ;;  %v1533_v1 = vadd.f32 %v4930_v42, %v1488_v56  ;;  %v1536_v3 = vadd.f32 %v4931_v54, %v1488_v56 }
 0x747   : > { %v5476_v63 = vpop.eup %5475 }
 0x748   : > { %v1543_v60 = vpack.c.bf16 %v1528_v58, %v1525_v57  ;;  %v1684_v5 = vmul.f32 %v5476_v63, %v6216_v16  ;;  %v1544_v7 = vpack.c.bf16 %v1536_v3, %v1533_v1 }
 0x749   : > { %v1980_v11 = vpop.permute.xlu0 %1979 }
 0x74a   : > { %4945 = vmatpush3.bf16.msra.mxu1 %v1543_v60 }
 0x74b   : > { %v5478_v4 = vpop.eup %5477  ;;  %4950 = vmatprep.subr.bf16.mxu1 %v5730_v20 }
 0x74c   : > { %v1686_v6 = vmul.f32 %v5478_v4, %v6220_v18 }
 0x74d   : > { %v1978_v14 = vpop.permute.xlu0 %1977 }
 0x74e   : > { %v1691_v8 = vpack.c.bf16 %v1686_v6, %v1684_v5 }
 0x74f   : > { %v5480_v18 = vpop.eup %5479 }
 0x750   : > { %4947 = vmatmul.mubr.msk.bf16.vlgmr.msra.gmra.mxu1 %vm1005_vm2, %v1691_v8  ;;  %v1688_v27 = vmul.f32 %v5480_v18, %v6224_v23 }
 0x751   : > { %4951 = vmatpush3.bf16.msra.mxu1 %v1544_v7  ;;  %4952 = vmatprep.mubr.msk.bf16.mxu1 %vm5731_vm0, %v5730_v20  ;;  %v1976_v16 = vpop.permute.xlu0 %1975 }
 0x752   : > { %4976 = vmatprep.subr.bf16.mxu1 %v1984_v9 }
 0x755   : > { %v1974_v26 = vpop.permute.xlu0 %1973 }
 0x759   : > { %v1972_v33 = vpop.permute.xlu0 %1971 }
 0x75d   : > { %v1970_v23 = vpop.permute.xlu0 %1969 }
 0x772   : > { %v1682_v13 = vpop.xlane.xlu1 %1681 }
 0x773   : > { %5481 = vrcp.f32 %v1682_v13 }
 0x776   : > { %v1982_v15 = vpop.permute.xlu1 %1981 }
 0x77a   : > { %v1852_v17 = vpop.permute.xlu1 %1851 }
 0x77b   : > { %4956 = vmatprep.subr.bf16.mxu0 %v1852_v17 }
 0x77c   : > { %4957 = vmatpush3.bf16.msra.mxu0 %v1852_v17 }
 0x77e   : > { %v1850_v21 = vpop.permute.xlu1 %1849 }
 0x77f   : > { %4958 = vmatprep.subr.bf16.mxu0 %v1850_v21 }
 0x780   : > { %v5482_v25 = vpop.eup %5481  ;;  %4959 = vmatpush3.bf16.msra.mxu0 %v1850_v21 }
 0x781   : > { %v1690_v28 = vmul.f32 %v5482_v25, %v6243_v38  ;;  %v1838_v38 = vpop.permute.xlu0 %1837 }
 0x782   : > { %v1848_v29 = vpop.permute.xlu1 %1847 }
 0x783   : > { %v1692_v31 = vpack.c.bf16 %v1690_v28, %v1688_v27  ;;  %4960 = vmatprep.subr.bf16.mxu0 %v1848_v29 }
 0x784   : > { %4961 = vmatpush3.bf16.msra.mxu0 %v1848_v29 }
 0x785   : > { %4953 = vmatmul.mubr.msk.bf16.vlgmr.msra.gmra.mxu1 %vm1005_vm2, %v1692_v31 }
 0x786   : > { %4977 = vmatpush3.bf16.msra.mxu1 %v1984_v9  ;;  %v1846_v32 = vpop.permute.xlu1 %1845  ;;  %4992 = vmatprep.mubr.bf16.mxu1 %v6023_v12 }
 0x787   : > { %4978 = vmatprep.subr.bf16.mxu1 %v1982_v15  ;;  %4962 = vmatprep.subr.bf16.mxu0 %v1846_v32 }
 0x788   : > { %4963 = vmatpush3.bf16.msra.mxu0 %v1846_v32 }
 0x78a   : > { %4979 = vmatpush3.bf16.msra.mxu1 %v1982_v15  ;;  %v1844_v34 = vpop.permute.xlu1 %1843 }
 0x78b   : > { %4980 = vmatprep.subr.bf16.mxu1 %v1980_v11  ;;  %4964 = vmatprep.subr.bf16.mxu0 %v1844_v34 }
 0x78c   : > { %4965 = vmatpush3.bf16.msra.mxu0 %v1844_v34 }
 0x78e   : > { %4981 = vmatpush3.bf16.msra.mxu1 %v1980_v11  ;;  %v1842_v35 = vpop.permute.xlu1 %1841  ;;  %v1862_v11 = vpop.permute.xlu0 %1861 }
 0x78f   : > { %4982 = vmatprep.subr.bf16.mxu1 %v1978_v14  ;;  %4966 = vmatprep.subr.bf16.mxu0 %v1842_v35 }
 0x790   : > { %4967 = vmatpush3.bf16.msra.mxu0 %v1842_v35 }
 0x792   : > { %4983 = vmatpush3.bf16.msra.mxu1 %v1978_v14  ;;  %v1840_v37 = vpop.permute.xlu1 %1839  ;;  %v2114_v31 = vpop.permute.xlu0 %2113 }
 0x793   : > { %4984 = vmatprep.subr.bf16.mxu1 %v1976_v16  ;;  %4968 = vmatprep.subr.bf16.mxu0 %v1840_v37 }
 0x794   : > { %4969 = vmatpush3.bf16.msra.mxu0 %v1840_v37 }
 0x795   : > { %4970 = vmatprep.subr.bf16.mxu0 %v1838_v38 }
 0x796   : > { %4985 = vmatpush3.bf16.msra.mxu1 %v1976_v16  ;;  %v1994_v3 = vpop.permute.xlu1 %1993 }
 0x797   : > { %4986 = vmatprep.subr.bf16.mxu1 %v1974_v26 }
 0x798   : > { %4971 = vmatpush3.bf16.msra.mxu0 %v1838_v38 }
 0x79a   : > { %4987 = vmatpush3.bf16.msra.mxu1 %v1974_v26  ;;  %v2116_v29 = vpop.permute.xlu1 %2115 }
 0x79b   : > { %4988 = vmatprep.subr.bf16.mxu1 %v1972_v33  ;;  %4973 = vmatmul.mubr.bf16.vlgmr.msra.gmra.mxu0 %v6031_v19 }
 0x79c   : > { %5012 = vmatprep.mubr.bf16.mxu0 %v6023_v12  ;;  %4996 = vmatprep.subr.bf16.mxu0 %v2116_v29 }
 0x79d   : > { %4997 = vmatpush3.bf16.msra.mxu0 %v2116_v29  ;;  %v5340_v29 = vld [vmem:[%s5976_s26 + $0xac] ss:$12 sps:$4 sm:$0xff]  }
 0x79e   : > { %4989 = vmatpush3.bf16.msra.mxu1 %v1972_v33  ;;  %4998 = vmatprep.subr.bf16.mxu0 %v2114_v31  ;;  %v2112_v32 = vpop.permute.xlu1 %2111  ;;  %v2110_v33 = vpop.permute.xlu0 %2109 }
 0x79f   : > { %4990 = vmatprep.subr.bf16.mxu1 %v1970_v23 }
 0x7a1   : > { %4999 = vmatpush3.bf16.msra.mxu0 %v2114_v31 }
 0x7a2   : > { %4991 = vmatpush3.bf16.msra.mxu1 %v1970_v23  ;;  %5000 = vmatprep.subr.bf16.mxu0 %v2112_v32  ;;  %v2108_v34 = vpop.permute.xlu1 %2107  ;;  %v2106_v23 = vpop.permute.xlu0 %2105 }
 0x7a3   : > { %5016 = vmatprep.subr.bf16.mxu1 %v5730_v20 }
 0x7a5   : > { %4993 = vmatmul.mubr.bf16.vlgmr.msra.gmra.mxu1 %v6031_v19  ;;  %5001 = vmatpush3.bf16.msra.mxu0 %v2112_v32  ;;  %v5343_v32 = vld [vmem:[%s5976_s26 + $0x90] ss:$12 sps:$4 sm:$0xff]  }
 0x7a6   : > { %5018 = vmatprep.mubr.msk.bf16.mxu1 %vm5731_vm0, %v5730_v20  ;;  %5002 = vmatprep.subr.bf16.mxu0 %v2110_v33  ;;  %v2104_v35 = vpop.permute.xlu1 %2103  ;;  %v2102_v37 = vpop.permute.xlu0 %2101 }
 0x7a9   : > { %5003 = vmatpush3.bf16.msra.mxu0 %v2110_v33  ;;  %v5345_v33 = vld [vmem:[%s5976_s26 + $0x78] ss:$12 sps:$4 sm:$0xff]  }
 0x7aa   : > { %5004 = vmatprep.subr.bf16.mxu0 %v2108_v34 }
 0x7ad   : > { %5005 = vmatpush3.bf16.msra.mxu0 %v2108_v34  ;;  %v5347_v34 = vld [vmem:[%s5976_s26 + $0x60] ss:$12 sps:$4 sm:$0xff]  }
 0x7ae   : > { %5006 = vmatprep.subr.bf16.mxu0 %v2106_v23 }
 0x7b1   : > { %5007 = vmatpush3.bf16.msra.mxu0 %v2106_v23  ;;  %v5349_v23 = vld [vmem:[%s5976_s26 + $0x48] ss:$12 sps:$4 sm:$0xff]  }
 0x7b2   : > { %5008 = vmatprep.subr.bf16.mxu0 %v2104_v35 }
 0x7b5   : > { %5009 = vmatpush3.bf16.msra.mxu0 %v2104_v35 }
 0x7b6   : > { %5010 = vmatprep.subr.bf16.mxu0 %v2102_v37 }
 0x7b9   : > { %5011 = vmatpush3.bf16.msra.mxu0 %v2102_v37  ;;  %v5351_v37 = vld [vmem:[%s5976_s26 + $0x30] ss:$12 sps:$4 sm:$0xff]  }
 0x7bc   : > { %5013 = vmatmul.mubr.bf16.vlgmr.msra.gmra.mxu0 %v6031_v19 }
 0x7bd   : > { %5056 = vmatprep.mubr.bf16.mxu0 %v6023_v12 }
 0x810   : > { %v6302_v49 = vpop.f32.mrf.mxu1 }
 0x812   : > { %v4948_v50 = vpop.f32.mrf.mxu1 }
 0x814   : > { %v6304_v42 = vpop.f32.mrf.mxu1 }
 0x815   : > { %v5237_v51 = vpack.i.bf16 %v6304_v42, %v6302_v49 }
 0x816   : > { %v4949_v52 = vpop.f32.mrf.mxu1 }
 0x845   : > { %v6308_v53 = vpop.f32.mrf.mxu1 }
 0x847   : > { %v4954_v54 = vpop.f32.mrf.mxu1 }
 0x849   : > { %v6310_v55 = vpop.f32.mrf.mxu1 }
 0x84a   : > { %v5242_v24 = vpack.i.bf16 %v6310_v55, %v6308_v53 }
 0x84b   : > { %v4955_v56 = vpop.f32.mrf.mxu1 }
 0x85b   : > { %v4974_v57 = vpop.f32.mrf.mxu0 }
 0x85c   : > { %v1907_v26 = vadd.f32 %v4974_v57, %v1862_v11 }
 0x85d   : > { %v1898_v63 = vpop.f32.mrf.mxu0 }
 0x85e   : > { %v1899_v17 = vadd.f32 %v1898_v63, %v1862_v11 }
 0x85f   : > { %v4975_v4 = vpop.f32.mrf.mxu0 }
 0x860   : > { %v1910_v27 = vadd.f32 %v4975_v4, %v1862_v11 }
 0x861   : > { %v1901_v9 = vpop.f32.mrf.mxu0 }
 0x862   : > { %v1902_v16 = vadd.f32 %v1901_v9, %v1862_v11  ;;  %v2178_v28 = vpack.c.bf16 %v1910_v27, %v1907_v26 }
 0x864   : > { %v2177_v21 = vpack.c.bf16 %v1902_v16, %v1899_v17 }
 0x865   : > { %v4994_v58 = vpop.f32.mrf.mxu1 }
 0x866   : > { %v2039_v15 = vadd.f32 %v4994_v58, %v1994_v3 }
 0x867   : > { %v2030_v60 = vpop.f32.mrf.mxu1 }
 0x868   : > { %v2031_v6 = vadd.f32 %v2030_v60, %v1994_v3 }
 0x869   : > { %v4995_v1 = vpop.f32.mrf.mxu1 }
 0x86a   : > { %v2042_v13 = vadd.f32 %v4995_v1, %v1994_v3 }
 0x86b   : > { %v2033_v5 = vpop.f32.mrf.mxu1 }
 0x86c   : > { %v2034_v7 = vadd.f32 %v2033_v5, %v1994_v3  ;;  %v2180_v18 = vpack.c.bf16 %v2042_v13, %v2039_v15 }
 0x86e   : > { %v2179_v8 = vpack.c.bf16 %v2034_v7, %v2031_v6  ;;  %v2234_v25 = vsel %vm890_vm1, %v2180_v18, 0 }
 0x870   : > { %v2187_v14 = vsel %vm890_vm1, %v2179_v8, 0 }
 0x871   : > { %5017 = vmatpush3.bf16.xpose.msra.mxu1 %v2187_v14 }
 0x872   : > { %5022 = vmatprep.subr.bf16.mxu1 %v5730_v20 }
 0x878   : > { %5019 = vmatmul.mubr.msk.bf16.vlgmr.msra.gmra.mxu1 %vm890_vm1, %v2177_v21 }
 0x879   : > { %5023 = vmatpush3.bf16.xpose.msra.mxu1 %v2234_v25  ;;  %5024 = vmatprep.mubr.msk.bf16.mxu1 %vm5731_vm0, %v5730_v20 }
 0x87a   : > { %5028 = vmatprep.subr.bf16.mxu1 %v5730_v20 }
 0x880   : > { %5025 = vmatmul.mubr.msk.bf16.vlgmr.msra.gmra.mxu1 %vm890_vm1, %v2178_v28 }
 0x881   : > { %5030 = vmatprep.mubr.msk.bf16.mxu1 %vm5731_vm0, %v5730_v20 }
 0x938   : > { %v2223_v38 = vpop.f32.mrf.mxu1 }
 0x939   : > { %v2277_v39 = vmul.f32 0.17677669, %v2223_v38 }
 0x93a   : > { %v5020_v40 = vpop.f32.mrf.mxu1 }
 0x93b   : > { %v2281_v41 = vadd.f32 %v2277_v39, %v6087_v62  ;;  %v5353_v39 = vld [vmem:[%s5976_s26 + $0x18] ss:$12 sps:$4 sm:$0xff]   ;;  %v5339_v40 = vld [vmem:[%s5976_s26 + $0x94] ss:$12 sps:$4 sm:$0xff]  }
 0x93c   : > { %v2226_v43 = vpop.f32.mrf.mxu1 }
 0x93d   : > { %v2278_v44 = vmul.f32 0.17677669, %v2226_v43  ;;  %v2285_v45 = vsel %vm1005_vm2, %v2281_v41, -inf  ;;  %v5342_v43 = vld [vmem:[%s5976_s26 + $0x7c] ss:$12 sps:$4 sm:$0xff]  }
 0x93e   : > { %2286 = vmax.xlane.f32.xlu1 %v2285_v45  ;;  %v5021_v46 = vpop.f32.mrf.mxu1  ;;  %v5346_v45 = vld [vmem:[%s5976_s26 + $0x4c] ss:$12 sps:$4 sm:$0xff]  }
 0x93f   : > { %v2282_v48 = vadd.f32 %v2278_v44, %v6087_v62  ;;  %v5344_v44 = vld [vmem:[%s5976_s26 + $0x64] ss:$12 sps:$4 sm:$0xff]   ;;  %v5348_v46 = vld [vmem:[%s5976_s26 + $0x34] ss:$12 sps:$4 sm:$0xff]  }
 0x940   : > { %v2270_v50 = vpop.f32.mrf.mxu1 }
 0x941   : > { %v2279_v52 = vmul.f32 0.17677669, %v2270_v50  ;;  %v2288_v54 = vsel %vm1005_vm2, %v2282_v48, -inf  ;;  %v5354_v50 = vld [vmem:[%s5976_s26] ss:$12 sps:$4 sm:$0xff]  }
 0x942   : > { %2289 = vmax.xlane.f32.xlu0 %v2288_v54  ;;  %v5026_v56 = vpop.f32.mrf.mxu1 }
 0x943   : > { %v2283_v57 = vadd.f32 %v2279_v52, %v6093_v10  ;;  %v5014_v52 = vpop.f32.mrf.mxu0 }
 0x944   : > { %v2273_v58 = vpop.f32.mrf.mxu1 }
 0x945   : > { %v2280_v60 = vmul.f32 0.17677669, %v2273_v58  ;;  %v2291_v63 = vsel %vm1005_vm2, %v2283_v57, -inf  ;;  %v2162_v54 = vpop.f32.mrf.mxu0 }
 0x946   : > { %2292 = vmax.xlane.f32.xlu0 %v2291_v63  ;;  %v5027_v1 = vpop.f32.mrf.mxu1 }
 0x947   : > { %v2284_v3 = vadd.f32 %v2280_v60, %v6093_v10  ;;  %v5015_v56 = vpop.f32.mrf.mxu0 }
 0x949   : > { %v2294_v4 = vsel %vm1005_vm2, %v2284_v3, -inf  ;;  %v2165_v58 = vpop.f32.mrf.mxu0 }
 0x94a   : > { %2295 = vmax.xlane.f32.xlu0 %v2294_v4 }
 0x9c7   : > { %v2287_v5 = vpop.xlane.xlu1 %2286 }
 0x9c8   : > { %v2297_v6 = vsub.f32 %v2281_v41, %v2287_v5  ;;  %v5341_v41 = vld [vmem:[%s5976_s26 + $0xa8] ss:$12 sps:$4 sm:$0xff]  }
 0x9ca   : > { %v2301_v7 = vmul.f32 1.442695, %v2297_v6 }
 0x9cb   : > { %v2290_v8 = vpop.xlane.xlu0 %2289 }
 0x9cc   : > { %5483 = vpow2.f32 %v2301_v7  ;;  %v2298_v9 = vsub.f32 %v2282_v48, %v2290_v8  ;;  %v5352_v48 = vld [vmem:[%s5976_s26 + $0x4] ss:$12 sps:$4 sm:$0xff]  }
 0x9ce   : > { %v2303_v11 = vmul.f32 1.442695, %v2298_v9 }
 0x9cf   : > { %v2293_v13 = vpop.xlane.xlu0 %2292 }
 0x9d0   : > { %5485 = vpow2.f32 %v2303_v11  ;;  %v2299_v28 = vsub.f32 %v2283_v57, %v2293_v13 }
 0x9d2   : > { %v2305_v31 = vmul.f32 1.442695, %v2299_v28 }
 0x9d3   : > { %v2296_v14 = vpop.xlane.xlu0 %2295 }
 0x9d4   : > { %v2300_v15 = vsub.f32 %v2284_v3, %v2296_v14 }
 0x9d6   : > { %v2307_v17 = vmul.f32 1.442695, %v2300_v15 }
 0x9d8   : > { %5487 = vpow2.f32 %v2307_v17 }
 0x9d9   : > { %v6334_v16 = vpop.eup %5483  ;;  %5489 = vpow2.f32 %v2305_v31 }
 0x9da   : > { %v2309_v18 = vsel %vm1005_vm2, %v6334_v16, 0.0 }
 0x9db   : > { %2310 = vadd.xlane.f32.xlu1 %v2309_v18 }
 0x9dd   : > { %v6338_v21 = vpop.eup %5485 }
 0x9de   : > { %v2312_v25 = vsel %vm1005_vm2, %v6338_v21, 0.0 }
 0x9df   : > { %2313 = vadd.xlane.f32.xlu0 %v2312_v25 }
 0x9e5   : > { %v6342_v26 = vpop.eup %5487 }
 0x9e6   : > { %v2318_v27 = vsel %vm1005_vm2, %v6342_v26, 0.0  ;;  %v6357_v35 = vpop.eup %5489 }
 0x9e7   : > { %2319 = vadd.xlane.f32.xlu0 %v2318_v27  ;;  %v2315_v38 = vsel %vm1005_vm2, %v6357_v35, 0.0 }
 0x9ec   : > { %2125 = vrot.lane.b32.xlu1 %v6115_v47, %s5733_s27 }
 0x9fd   : > { %2621 = vrot.lane.b32.xlu0 %v5340_v29, %s5734_s11 }
 0xa01   : > { %2487 = vrot.lane.b32.xlu0 %v5343_v32, %s5734_s11 }
 0xa05   : > { %2485 = vrot.lane.b32.xlu0 %v5345_v33, %s5734_s11 }
 0xa09   : > { %2483 = vrot.lane.b32.xlu0 %v5347_v34, %s5734_s11 }
 0xa0d   : > { %2481 = vrot.lane.b32.xlu0 %v5349_v23, %s5734_s11 }
 0xa10   : > { %2316 = vadd.xlane.f32.xlu1 %v2315_v38 }
 0xa11   : > { %2479 = vrot.lane.b32.xlu0 %v5351_v37, %s5734_s11 }
 0xa15   : > { %2477 = vrot.lane.b32.xlu0 %v5353_v39, %s5734_s11 }
 0xa19   : > { %2631 = vrot.lane.b32.xlu0 %v6046_v30, %s5734_s11  ;;  %v5350_v30 = vld [vmem:[%s5976_s26 + $0x1c] ss:$12 sps:$4 sm:$0xff]  }
 0xa21   : > { %2619 = vrot.lane.b32.xlu1 %v5339_v40, %s5734_s11 }
 0xa25   : > { %2489 = vrot.lane.b32.xlu1 %v5341_v41, %s5734_s11 }
 0xa29   : > { %2617 = vrot.lane.b32.xlu1 %v5342_v43, %s5734_s11 }
 0xa2d   : > { %2615 = vrot.lane.b32.xlu1 %v5344_v44, %s5734_s11  ;;  %v5355_v44 = vld [vmem:[%s5976_s26 + $0xb0] ss:$12 sps:$4 sm:$0xff]  }
 0xa2e   : > { %2753 = vrot.lane.b32.xlu0 %v5355_v44, %s5734_s11 }
 0xa31   : > { %2613 = vrot.lane.b32.xlu1 %v5346_v45, %s5734_s11  ;;  %v5356_v45 = vld [vmem:[%s5976_s26 + $0x98] ss:$12 sps:$4 sm:$0xff]  }
 0xa35   : > { %2611 = vrot.lane.b32.xlu1 %v5348_v46, %s5734_s11  ;;  %v5358_v46 = vld [vmem:[%s5976_s26 + $0x68] ss:$12 sps:$4 sm:$0xff]  }
 0xa39   : > { %2609 = vrot.lane.b32.xlu1 %v5350_v30, %s5734_s11  ;;  %v5359_v30 = vld [vmem:[%s5976_s26 + $0x50] ss:$12 sps:$4 sm:$0xff]  }
 0xa3d   : > { %2607 = vrot.lane.b32.xlu1 %v5352_v48, %s5734_s11  ;;  %v5360_v48 = vld [vmem:[%s5976_s26 + $0x38] ss:$12 sps:$4 sm:$0xff]  }
 0xa41   : > { %2475 = vrot.lane.b32.xlu1 %v5354_v50, %s5734_s11  ;;  %v5361_v50 = vld [vmem:[%s5976_s26 + $0x20] ss:$12 sps:$4 sm:$0xff]  }
 0xa45   : > { %2499 = vrot.lane.b32.xlu1 %v6052_v36, %s5734_s11 }
 0xa49   : > { %2751 = vrot.lane.b32.xlu1 %v5356_v45, %s5734_s11 }
 0xa4d   : > { %2747 = vrot.lane.b32.xlu1 %v5358_v46, %s5734_s11 }
 0xa51   : > { %2743 = vrot.lane.b32.xlu1 %v5360_v48, %s5734_s11 }
 0xa64   : > { %v2311_v57 = vpop.xlane.xlu1 %2310 }
 0xa65   : > { %5491 = vrcp.f32 %v2311_v57 }
 0xa68   : > { %v2126_v60 = vpop.permute.xlu1 %2125  ;;  %v2314_v63 = vpop.xlane.xlu0 %2313 }
 0xa69   : > { %v2163_v1 = vadd.f32 %v2162_v54, %v2126_v60  ;;  %v2166_v3 = vadd.f32 %v2165_v58, %v2126_v60  ;;  %5493 = vrcp.f32 %v2314_v63  ;;  %v2171_v7 = vadd.f32 %v5014_v52, %v2126_v60  ;;  %v5362_v52 = vld [vmem:[%s5976_s26 + $0x8] ss:$12 sps:$4 sm:$0xff]  }
 0xa6a   : > { %v2174_v8 = vadd.f32 %v5015_v56, %v2126_v60  ;;  %2739 = vrot.lane.b32.xlu1 %v5362_v52, %s5734_s11 }
 0xa6b   : > { %v2181_v4 = vpack.c.bf16 %v2166_v3, %v2163_v1 }
 0xa6c   : > { %v2182_v14 = vpack.c.bf16 %v2174_v8, %v2171_v7 }
 0xa6d   : > { %5029 = vmatpush3.bf16.msra.mxu1 %v2181_v4 }
 0xa6e   : > { %5034 = vmatprep.subr.bf16.mxu1 %v5730_v20 }
 0xa70   : > { %v2320_v36 = vpop.xlane.xlu0 %2319 }
 0xa71   : > { %5495 = vrcp.f32 %v2320_v36 }
 0xa72   : > { %v5492_v5 = vpop.eup %5491 }
 0xa73   : > { %v2322_v9 = vmul.f32 %v5492_v5, %v6334_v16 }
 0xa74   : > { %v2622_v15 = vpop.permute.xlu0 %2621 }
 0xa76   : > { %v5494_v6 = vpop.eup %5493 }
 0xa77   : > { %v2324_v11 = vmul.f32 %v5494_v6, %v6338_v21 }
 0xa78   : > { %v2488_v17 = vpop.permute.xlu0 %2487 }
 0xa79   : > { %v2329_v13 = vpack.c.bf16 %v2324_v11, %v2322_v9 }
 0xa7b   : > { %5031 = vmatmul.mubr.msk.bf16.vlgmr.msra.gmra.mxu1 %vm1005_vm2, %v2329_v13 }
 0xa7c   : > { %5035 = vmatpush3.bf16.msra.mxu1 %v2182_v14  ;;  %5036 = vmatprep.mubr.msk.bf16.mxu1 %vm5731_vm0, %v5730_v20  ;;  %v2486_v27 = vpop.permute.xlu0 %2485 }
 0xa7d   : > { %5060 = vmatprep.subr.bf16.mxu1 %v2622_v15 }
 0xa7e   : > { %v5496_v21 = vpop.eup %5495 }
 0xa7f   : > { %v2328_v33 = vmul.f32 %v5496_v21, %v6342_v26 }
 0xa80   : > { %v2484_v16 = vpop.permute.xlu0 %2483 }
 0xa84   : > { %v2482_v23 = vpop.permute.xlu0 %2481 }
 0xa88   : > { %v2480_v39 = vpop.permute.xlu0 %2479 }
 0xa8c   : > { %v2478_v40 = vpop.permute.xlu0 %2477 }
 0xa90   : > { %v2632_v11 = vpop.permute.xlu0 %2631 }
 0xa99   : > { %v2317_v18 = vpop.xlane.xlu1 %2316 }
 0xa9a   : > { %5497 = vrcp.f32 %v2317_v18 }
 0xa9d   : > { %v2620_v25 = vpop.permute.xlu1 %2619 }
 0xaa1   : > { %v2490_v28 = vpop.permute.xlu1 %2489 }
 0xaa2   : > { %5040 = vmatprep.subr.bf16.mxu0 %v2490_v28 }
 0xaa3   : > { %5041 = vmatpush3.bf16.msra.mxu0 %v2490_v28 }
 0xaa4   : > { %5042 = vmatprep.subr.bf16.mxu0 %v2488_v17 }
 0xaa5   : > { %v2618_v29 = vpop.permute.xlu1 %2617 }
 0xaa7   : > { %v5498_v31 = vpop.eup %5497  ;;  %5043 = vmatpush3.bf16.msra.mxu0 %v2488_v17 }
 0xaa8   : > { %v2326_v32 = vmul.f32 %v5498_v31, %v6357_v35  ;;  %5044 = vmatprep.subr.bf16.mxu0 %v2486_v27 }
 0xaa9   : > { %v2616_v34 = vpop.permute.xlu1 %2615 }
 0xaaa   : > { %v2330_v37 = vpack.c.bf16 %v2328_v33, %v2326_v32 }
 0xaab   : > { %5045 = vmatpush3.bf16.msra.mxu0 %v2486_v27 }
 0xaac   : > { %5037 = vmatmul.mubr.msk.bf16.vlgmr.msra.gmra.mxu1 %vm1005_vm2, %v2330_v37  ;;  %5046 = vmatprep.subr.bf16.mxu0 %v2484_v16 }
 0xaad   : > { %5061 = vmatpush3.bf16.msra.mxu1 %v2622_v15  ;;  %v2614_v38 = vpop.permute.xlu1 %2613  ;;  %5076 = vmatprep.mubr.bf16.mxu1 %v6023_v12 }
 0xaae   : > { %5062 = vmatprep.subr.bf16.mxu1 %v2620_v25 }
 0xaaf   : > { %5047 = vmatpush3.bf16.msra.mxu0 %v2484_v16 }
 0xab0   : > { %5048 = vmatprep.subr.bf16.mxu0 %v2482_v23 }
 0xab1   : > { %5063 = vmatpush3.bf16.msra.mxu1 %v2620_v25  ;;  %v2612_v35 = vpop.permute.xlu1 %2611 }
 0xab2   : > { %5064 = vmatprep.subr.bf16.mxu1 %v2618_v29 }
 0xab3   : > { %5049 = vmatpush3.bf16.msra.mxu0 %v2482_v23 }
 0xab4   : > { %5050 = vmatprep.subr.bf16.mxu0 %v2480_v39 }
 0xab5   : > { %5065 = vmatpush3.bf16.msra.mxu1 %v2618_v29  ;;  %v2610_v26 = vpop.permute.xlu1 %2609 }
 0xab6   : > { %5066 = vmatprep.subr.bf16.mxu1 %v2616_v34 }
 0xab7   : > { %5051 = vmatpush3.bf16.msra.mxu0 %v2480_v39  ;;  %v2754_v39 = vpop.permute.xlu0 %2753 }
 0xab8   : > { %5052 = vmatprep.subr.bf16.mxu0 %v2478_v40 }
 0xab9   : > { %5067 = vmatpush3.bf16.msra.mxu1 %v2616_v34  ;;  %v2608_v41 = vpop.permute.xlu1 %2607 }
 0xaba   : > { %5068 = vmatprep.subr.bf16.mxu1 %v2614_v38 }
 0xabb   : > { %5053 = vmatpush3.bf16.msra.mxu0 %v2478_v40 }
 0xabd   : > { %5069 = vmatpush3.bf16.msra.mxu1 %v2614_v38  ;;  %v2476_v43 = vpop.permute.xlu1 %2475 }
 0xabe   : > { %5070 = vmatprep.subr.bf16.mxu1 %v2612_v35  ;;  %5054 = vmatprep.subr.bf16.mxu0 %v2476_v43 }
 0xabf   : > { %5055 = vmatpush3.bf16.msra.mxu0 %v2476_v43 }
 0xac0   : > { %5080 = vmatprep.subr.bf16.mxu0 %v2754_v39 }
 0xac1   : > { %5071 = vmatpush3.bf16.msra.mxu1 %v2612_v35  ;;  %v2500_v25 = vpop.permute.xlu1 %2499 }
 0xac2   : > { %5072 = vmatprep.subr.bf16.mxu1 %v2610_v26  ;;  %5057 = vmatmul.mubr.bf16.vlgmr.msra.gmra.mxu0 %v6031_v19 }
 0xac3   : > { %5096 = vmatprep.mubr.bf16.mxu0 %v6023_v12  ;;  %v5357_v12 = vld [vmem:[%s5976_s26 + $0x80] ss:$12 sps:$4 sm:$0xff]   ;;  %5081 = vmatpush3.bf16.msra.mxu0 %v2754_v39 }
 0xac4   : > { %2749 = vrot.lane.b32.xlu0 %v5357_v12, %s5734_s11 }
 0xac5   : > { %5073 = vmatpush3.bf16.msra.mxu1 %v2610_v26  ;;  %v2752_v35 = vpop.permute.xlu1 %2751 }
 0xac6   : > { %5074 = vmatprep.subr.bf16.mxu1 %v2608_v41  ;;  %5082 = vmatprep.subr.bf16.mxu0 %v2752_v35 }
 0xac7   : > { %5083 = vmatpush3.bf16.msra.mxu0 %v2752_v35 }
 0xac8   : > { %2745 = vrot.lane.b32.xlu0 %v5359_v30, %s5734_s11 }
 0xac9   : > { %5075 = vmatpush3.bf16.msra.mxu1 %v2608_v41  ;;  %v2748_v40 = vpop.permute.xlu1 %2747 }
 0xaca   : > { %5100 = vmatprep.subr.bf16.mxu1 %v5730_v20 }
 0xacc   : > { %5077 = vmatmul.mubr.bf16.vlgmr.msra.gmra.mxu1 %v6031_v19  ;;  %2741 = vrot.lane.b32.xlu0 %v5361_v50, %s5734_s11 }
 0xacd   : > { %5102 = vmatprep.mubr.msk.bf16.mxu1 %vm5731_vm0, %v5730_v20  ;;  %v2744_v43 = vpop.permute.xlu1 %2743 }
 0xadc   : > { %v2740_v45 = vpop.permute.xlu1 %2739 }
 0xb36   : > { %v2750_v26 = vpop.permute.xlu0 %2749 }
 0xb37   : > { %5084 = vmatprep.subr.bf16.mxu0 %v2750_v26 }
 0xb38   : > { %5085 = vmatpush3.bf16.msra.mxu0 %v2750_v26 }
 0xb39   : > { %5086 = vmatprep.subr.bf16.mxu0 %v2748_v40 }
 0xb3a   : > { %v2746_v41 = vpop.permute.xlu0 %2745 }
 0xb3b   : > { %v6420_v54 = vpop.f32.mrf.mxu1 }
 0xb3c   : > { %5087 = vmatpush3.bf16.msra.mxu0 %v2748_v40 }
 0xb3d   : > { %v5032_v56 = vpop.f32.mrf.mxu1  ;;  %5088 = vmatprep.subr.bf16.mxu0 %v2746_v41 }
 0xb3e   : > { %v2742_v44 = vpop.permute.xlu0 %2741 }
 0xb3f   : > { %v6422_v57 = vpop.f32.mrf.mxu1 }
 0xb40   : > { %v5247_v58 = vpack.i.bf16 %v6422_v57, %v6420_v54  ;;  %5089 = vmatpush3.bf16.msra.mxu0 %v2746_v41 }
 0xb41   : > { %v5033_v60 = vpop.f32.mrf.mxu1  ;;  %5090 = vmatprep.subr.bf16.mxu0 %v2744_v43 }
 0xb44   : > { %5091 = vmatpush3.bf16.msra.mxu0 %v2744_v43 }
 0xb45   : > { %5092 = vmatprep.subr.bf16.mxu0 %v2742_v44 }
 0xb48   : > { %5093 = vmatpush3.bf16.msra.mxu0 %v2742_v44 }
 0xb49   : > { %5094 = vmatprep.subr.bf16.mxu0 %v2740_v45 }
 0xb4c   : > { %5095 = vmatpush3.bf16.msra.mxu0 %v2740_v45 }
 0xb4f   : > { %5097 = vmatmul.mubr.bf16.vlgmr.msra.gmra.mxu0 %v6031_v19 }
 0xb6c   : > { %v6426_v63 = vpop.f32.mrf.mxu1 }
 0xb6e   : > { %v5038_v1 = vpop.f32.mrf.mxu1 }
 0xb70   : > { %v6428_v3 = vpop.f32.mrf.mxu1 }
 0xb71   : > { %v5252_v4 = vpack.i.bf16 %v6428_v3, %v6426_v63 }
 0xb72   : > { %v5039_v5 = vpop.f32.mrf.mxu1 }
 0xb82   : > { %v5058_v6 = vpop.f32.mrf.mxu0 }
 0xb83   : > { %v2545_v23 = vadd.f32 %v5058_v6, %v2500_v25 }
 0xb84   : > { %v2536_v36 = vpop.f32.mrf.mxu0 }
 0xb85   : > { %v2537_v29 = vadd.f32 %v2536_v36, %v2500_v25 }
 0xb86   : > { %v5059_v13 = vpop.f32.mrf.mxu0 }
 0xb87   : > { %v2548_v37 = vadd.f32 %v5059_v13, %v2500_v25 }
 0xb88   : > { %v2539_v27 = vpop.f32.mrf.mxu0 }
 0xb89   : > { %v2540_v31 = vadd.f32 %v2539_v27, %v2500_v25  ;;  %v2816_v38 = vpack.c.bf16 %v2548_v37, %v2545_v23 }
 0xb8b   : > { %v2815_v33 = vpack.c.bf16 %v2540_v31, %v2537_v29 }
 0xb8c   : > { %v5078_v7 = vpop.f32.mrf.mxu1 }
 0xb8d   : > { %v2677_v21 = vadd.f32 %v5078_v7, %v2632_v11 }
 0xb8e   : > { %v2668_v8 = vpop.f32.mrf.mxu1 }
 0xb8f   : > { %v2669_v15 = vadd.f32 %v2668_v8, %v2632_v11 }
 0xb90   : > { %v5079_v9 = vpop.f32.mrf.mxu1 }
 0xb91   : > { %v2680_v28 = vadd.f32 %v5079_v9, %v2632_v11 }
 0xb92   : > { %v2671_v14 = vpop.f32.mrf.mxu1 }
 0xb93   : > { %v2672_v17 = vadd.f32 %v2671_v14, %v2632_v11  ;;  %v2818_v32 = vpack.c.bf16 %v2680_v28, %v2677_v21 }
 0xb95   : > { %v2817_v18 = vpack.c.bf16 %v2672_v17, %v2669_v15  ;;  %v2872_v34 = vsel %vm890_vm1, %v2818_v32, 0 }
 0xb97   : > { %v2825_v16 = vsel %vm890_vm1, %v2817_v18, 0 }
 0xb98   : > { %5101 = vmatpush3.bf16.xpose.msra.mxu1 %v2825_v16 }
 0xb99   : > { %5106 = vmatprep.subr.bf16.mxu1 %v5730_v20 }
 0xb9f   : > { %5103 = vmatmul.mubr.msk.bf16.vlgmr.msra.gmra.mxu1 %vm890_vm1, %v2815_v33 }
 0xba0   : > { %5107 = vmatpush3.bf16.xpose.msra.mxu1 %v2872_v34  ;;  %5108 = vmatprep.mubr.msk.bf16.mxu1 %vm5731_vm0, %v5730_v20 }
 0xba1   : > { %5112 = vmatprep.subr.bf16.mxu1 %v5730_v20 }
 0xba7   : > { %5109 = vmatmul.mubr.msk.bf16.vlgmr.msra.gmra.mxu1 %vm890_vm1, %v2816_v38 }
 0xba8   : > { %5114 = vmatprep.mubr.msk.bf16.mxu1 %vm5731_vm0, %v5730_v20 }
 0xc0f   : > { %v5098_v49 = vpop.f32.mrf.mxu0 }
 0xc5f   : > { %v2861_v12 = vpop.f32.mrf.mxu1 }
 0xc60   : > { %v2915_v46 = vmul.f32 0.17677669, %v2861_v12 }
 0xc61   : > { %v5104_v30 = vpop.f32.mrf.mxu1 }
 0xc62   : > { %v2919_v48 = vadd.f32 %v2915_v46, %v6087_v62 }
 0xc63   : > { %v2864_v50 = vpop.f32.mrf.mxu1 }
 0xc64   : > { %v2916_v52 = vmul.f32 0.17677669, %v2864_v50  ;;  %v2923_v56 = vsel %vm1005_vm2, %v2919_v48, -inf }
 0xc65   : > { %2924 = vmax.xlane.f32.xlu0 %v2923_v56  ;;  %v5105_v60 = vpop.f32.mrf.mxu1 }
 0xc66   : > { %v2920_v1 = vadd.f32 %v2916_v52, %v6087_v62  ;;  %v5363_v60 = vld [vmem:[%s5953_s5 + $0x38] sm:$0xff]  }
 0xc67   : > { %v2908_v5 = vpop.f32.mrf.mxu1  ;;  %5124 = vmatprep.subr.bf16.mxu0 %v5363_v60 }
 0xc68   : > { %v2917_v6 = vmul.f32 0.17677669, %v2908_v5  ;;  %v2926_v7 = vsel %vm1005_vm2, %v2920_v1, -inf  ;;  %5125 = vmatpush3.bf16.msra.mxu0 %v5363_v60  ;;  %v5365_v5 = vld [vmem:[%s5953_s5 + $0x28] sm:$0xff]   ;;  %v5565_v60 = vld [vmem:[#allocation2 + $0x18] sm:$0xff] }
 0xc69   : > { %2927 = vmax.xlane.f32.xlu1 %v2926_v7  ;;  %v5110_v8 = vpop.f32.mrf.mxu1  ;;  %v5368_v7 = vld [vmem:[%s5953_s5 + $0x10] sm:$0xff]  }
 0xc6a   : > { %v2921_v19 = vadd.f32 %v2917_v6, %v6093_v10  ;;  %v5366_v6 = vld [vmem:[%s5953_s5 + $0x20] sm:$0xff]   ;;  %v5369_v8 = vld [vmem:[%s5953_s5 + $0x8] sm:$0xff]  }
 0xc6b   : > { %v2911_v36 = vpop.f32.mrf.mxu1 }
 0xc6c   : > { %v2918_v9 = vmul.f32 0.17677669, %v2911_v36  ;;  %v2929_v11 = vsel %vm1005_vm2, %v2921_v19, -inf }
 0xc6d   : > { %2930 = vmax.xlane.f32.xlu0 %v2929_v11  ;;  %v5111_v13 = vpop.f32.mrf.mxu1 }
 0xc6e   : > { %v2922_v14 = vadd.f32 %v2918_v9, %v6093_v10  ;;  %v5370_v9 = vld [vmem:[%s5953_s5] sm:$0xff]  }
 0xc70   : > { %v2932_v15 = vsel %vm1005_vm2, %v2922_v14, -inf }
 0xc71   : > { %2933 = vmax.xlane.f32.xlu0 %v2932_v15 }
 0xcee   : > { %v2925_v62 = vpop.xlane.xlu0 %2924 }
 0xcef   : > { %v2935_v17 = vsub.f32 %v2919_v48, %v2925_v62 }
 0xcf1   : > { %v2939_v18 = vmul.f32 1.442695, %v2935_v17 }
 0xcf2   : > { %v2928_v25 = vpop.xlane.xlu1 %2927 }
 0xcf3   : > { %5499 = vpow2.f32 %v2939_v18  ;;  %v2936_v27 = vsub.f32 %v2920_v1, %v2928_v25  ;;  %v5364_v1 = vld [vmem:[%s5953_s5 + $0x30] sm:$0xff]  }
 0xcf4   : > { %5126 = vmatprep.subr.bf16.mxu0 %v5364_v1 }
 0xcf5   : > { %v2941_v28 = vmul.f32 1.442695, %v2936_v27  ;;  %5127 = vmatpush3.bf16.msra.mxu0 %v5364_v1 }
 0xcf6   : > { %v2931_v16 = vpop.xlane.xlu0 %2930  ;;  %5128 = vmatprep.subr.bf16.mxu0 %v5365_v5 }
 0xcf7   : > { %5501 = vpow2.f32 %v2941_v28  ;;  %v2937_v21 = vsub.f32 %v2921_v19, %v2931_v16 }
 0xcf9   : > { %v2943_v29 = vmul.f32 1.442695, %v2937_v21  ;;  %5129 = vmatpush3.bf16.msra.mxu0 %v5365_v5  ;;  %v5566_v5 = vld [vmem:[#allocation2] sm:$0xff] }
 0xcfa   : > { %v2934_v31 = vpop.xlane.xlu0 %2933  ;;  %5130 = vmatprep.subr.bf16.mxu0 %v5366_v6 }
 0xcfb   : > { %5503 = vpow2.f32 %v2943_v29  ;;  %v2938_v32 = vsub.f32 %v2922_v14, %v2934_v31 }
 0xcfd   : > { %v2945_v33 = vmul.f32 1.442695, %v2938_v32  ;;  %5131 = vmatpush3.bf16.msra.mxu0 %v5366_v6 }
 0xcff   : > { %5505 = vpow2.f32 %v2945_v33 }
 0xd00   : > { %v5500_v10 = vpop.eup %5499 }
 0xd01   : > { %v2947_v34 = vsel %vm1005_vm2, %v5500_v10, 0.0 }
 0xd02   : > { %2948 = vadd.xlane.f32.xlu0 %v2947_v34 }
 0xd04   : > { %v5502_v23 = vpop.eup %5501 }
 0xd05   : > { %v2950_v37 = vsel %vm1005_vm2, %v5502_v23, 0.0 }
 0xd06   : > { %2951 = vadd.xlane.f32.xlu1 %v2950_v37 }
 0xd08   : > { %v5504_v38 = vpop.eup %5503 }
 0xd09   : > { %v2953_v39 = vsel %vm1005_vm2, %v5504_v38, 0.0 }
 0xd0a   : > { %2954 = vadd.xlane.f32.xlu0 %v2953_v39 }
 0xd0c   : > { %v5506_v35 = vpop.eup %5505 }
 0xd0d   : > { %v2956_v26 = vsel %vm1005_vm2, %v5506_v35, 0.0 }
 0xd0e   : > { %2957 = vadd.xlane.f32.xlu1 %v2956_v26 }
 0xd1f   : > { %5238 = vrot.lane.b32.xlu1 %v5237_v51, %s5734_s11  ;;  %v2800_v51 = vpop.f32.mrf.mxu0 }
 0xd20   : > { %2763 = vrot.lane.b32.xlu0 %v6115_v47, %s5734_s11 }
 0xd21   : > { %v5099_v40 = vpop.f32.mrf.mxu0 }
 0xd23   : > { %5243 = vrot.lane.b32.xlu1 %v5242_v24, %s5734_s11  ;;  %v2803_v53 = vpop.f32.mrf.mxu0 }
 0xd24   : > { %5253 = vrot.lane.b32.xlu0 %v5252_v4, %s5733_s27 }
 0xd27   : > { %5248 = vrot.lane.b32.xlu1 %v5247_v58, %s5733_s27 }
 0xd8b   : > { %v2949_v42 = vpop.xlane.xlu0 %2948 }
 0xd8c   : > { %5507 = vrcp.f32 %v2949_v42 }
 0xd8f   : > { %v2952_v47 = vpop.xlane.xlu1 %2951 }
 0xd90   : > { %5509 = vrcp.f32 %v2952_v47 }
 0xd93   : > { %v2955_v41 = vpop.xlane.xlu0 %2954 }
 0xd94   : > { %5511 = vrcp.f32 %v2955_v41 }
 0xd97   : > { %v2958_v55 = vpop.xlane.xlu1 %2957  ;;  %v2764_v24 = vpop.permute.xlu0 %2763 }
 0xd98   : > { %5513 = vrcp.f32 %v2958_v55  ;;  %v2801_v63 = vadd.f32 %v2800_v51, %v2764_v24  ;;  %v2804_v3 = vadd.f32 %v2803_v53, %v2764_v24  ;;  %v2809_v57 = vadd.f32 %v5098_v49, %v2764_v24 }
 0xd99   : > { %v5508_v43 = vpop.eup %5507  ;;  %v2812_v58 = vadd.f32 %v5099_v40, %v2764_v24 }
 0xd9a   : > { %v2819_v4 = vpack.c.bf16 %v2804_v3, %v2801_v63  ;;  %v2960_v44 = vmul.f32 %v5508_v43, %v5500_v10 }
 0xd9b   : > { %v2820_v46 = vpack.c.bf16 %v2812_v58, %v2809_v57  ;;  %v5239_v27 = vpop.permute.xlu1 %5238  ;;  %v5254_v51 = vpop.permute.xlu0 %5253  ;;  %v6506_v58 = vld [vmem:[%s5971_s18] sm:$0xff] }
 0xd9c   : > { %5113 = vmatpush3.bf16.msra.mxu1 %v2819_v4  ;;  %v5241_v21 = vunpack.i.h.bf16 %v5239_v27  ;;  %v5240_v29 = vunpack.i.l.bf16 %v5239_v27  ;;  %v5256_v40 = vunpack.i.h.bf16 %v5254_v51  ;;  %v5255_v41 = vunpack.i.l.bf16 %v5254_v51  ;;  %v5385_v27 = vld [vmem:[%s5960_s23 + $0xa4] ss:$16 sps:$4 sm:$0xff]   ;;  %v5407_v51 = vld [vmem:[%s5960_s23 + $0x20] ss:$16 sps:$4 sm:$0xff]  }
 0xd9d   : > { %v5510_v54 = vpop.eup %5509  ;;  %5118 = vmatprep.subr.bf16.mxu1 %v5730_v20 }
 0xd9e   : > { %v2962_v45 = vmul.f32 %v5510_v54, %v5502_v23  ;;  %v3106_v10 = vsel %vm890_vm1, %v6190_v61, %v5241_v21  ;;  %v3105_v34 = vsel %vm890_vm1, %v6188_v59, %v5240_v29  ;;  %v5386_v21 = vld [vmem:[%s5960_s23 + $0xa8] ss:$16 sps:$4 sm:$0xff]   ;;  %v5391_v29 = vld [vmem:[%s5960_s23 + $0x84] ss:$16 sps:$4 sm:$0xff]  }
 0xd9f   : > { %v5244_v28 = vpop.permute.xlu1 %5243 }
 0xda0   : > { %v2967_v12 = vpack.c.bf16 %v2962_v45, %v2960_v44  ;;  %v5245_v26 = vunpack.i.l.bf16 %v5244_v28 }
 0xda1   : > { %v5512_v30 = vpop.eup %5511 }
 0xda2   : > { %5115 = vmatmul.mubr.msk.bf16.vlgmr.msra.gmra.mxu1 %vm1005_vm2, %v2967_v12  ;;  %v2964_v50 = vmul.f32 %v5512_v30, %v5504_v38  ;;  %v3107_v59 = vsel %vm890_vm1, %v6192_v0, %v5245_v26  ;;  %v5564_v30 = vld [vmem:[#allocation2 + $0x10] sm:$0xff]  ;;  %v5406_v26 = vld [vmem:[%s5960_s23 + $0x4c] ss:$16 sps:$4 sm:$0xff]  }
 0xda3   : > { %5119 = vmatpush3.bf16.msra.mxu1 %v2820_v46  ;;  %5120 = vmatprep.mubr.msk.bf16.mxu1 %vm5731_vm0, %v5730_v20  ;;  %v5367_v20 = vld [vmem:[%s5953_s5 + $0x18] sm:$0xff]   ;;  %v5249_v16 = vpop.permute.xlu1 %5248  ;;  %v3112_v63 = vsel %vm3109_vm3, %v3107_v59, %v5255_v41  ;;  %v5413_v41 = vld [vmem:[%s5960_s23] ss:$16 sps:$4 sm:$0xff]  }
 0xda4   : > { %5132 = vmatprep.subr.bf16.mxu0 %v5367_v20  ;;  %v5251_v31 = vunpack.i.h.bf16 %v5249_v16  ;;  %v5250_v32 = vunpack.i.l.bf16 %v5249_v16  ;;  %v5383_v16 = vld [vmem:[%s5960_s23 + $0xa0] ss:$16 sps:$4 sm:$0xff]   ;;  %v5418_v59 = vld [vmem:[%s5960_s23 + $0xc] ss:$16 sps:$4 sm:$0xff]  }
 0xda5   : > { %v5514_v48 = vpop.eup %5513  ;;  %5133 = vmatpush3.bf16.msra.mxu0 %v5367_v20 }
 0xda6   : > { %v2966_v52 = vmul.f32 %v5514_v48, %v5506_v35  ;;  %5134 = vmatprep.subr.bf16.mxu0 %v5368_v7  ;;  %v3110_v38 = vsel %vm3109_vm3, %v3105_v34, %v5250_v32  ;;  %v3111_v39 = vsel %vm3109_vm3, %v3106_v10, %v5251_v31  ;;  %v5246_v35 = vunpack.i.h.bf16 %v5244_v28  ;;  %v5388_v28 = vld [vmem:[%s5960_s23 + $0xac] ss:$16 sps:$4 sm:$0xff]   ;;  %v5389_v32 = vld [vmem:[%s5960_s23 + $0x80] ss:$16 sps:$4 sm:$0xff]   ;;  %v5397_v10 = vld [vmem:[%s5960_s23 + $0x64] ss:$16 sps:$4 sm:$0xff]  }
 0xda7   : > { %v5394_v31 = vld [vmem:[%s5960_s23 + $0x8c] ss:$16 sps:$4 sm:$0xff]  }
 0xda8   : > { %v2968_v56 = vpack.c.bf16 %v2966_v52, %v2964_v50  ;;  %v3108_v61 = vsel %vm890_vm1, %v6194_v2, %v5246_v35  ;;  %v3139_v2 = vsub.s32 1, %v6039_v22  ;;  %v5400_v34 = vld [vmem:[%s5960_s23 + $0x6c] ss:$16 sps:$4 sm:$0xff]   ;;  %v5404_v35 = vld [vmem:[%s5960_s23 + $0x48] ss:$16 sps:$4 sm:$0xff]  }
 0xda9   : > { %5135 = vmatpush3.bf16.msra.mxu0 %v5368_v7  ;;  %v3113_v3 = vsel %vm3109_vm3, %v3108_v61, %v5256_v40  ;;  %v5415_v61 = vld [vmem:[%s5960_s23 + $0x4] ss:$16 sps:$4 sm:$0xff]   ;;  %v5735_v40 = vmov 0  }
 0xdaa   : > { %5121 = vmatmul.mubr.msk.bf16.vlgmr.msra.gmra.mxu1 %vm1005_vm2, %v2968_v56  ;;  %5136 = vmatprep.subr.bf16.mxu0 %v5369_v8  ;;  %v3140_v0 = vrot.slane %v6506_v58, %v3139_v2 }
 0xdab   : > { %3557 = vmatprep.mubr.bf16.mxu1 %v5735_v40 }
 0xdad   : > { %5137 = vmatpush3.bf16.msra.mxu0 %v5369_v8 }
 0xdae   : > { %5138 = vmatprep.subr.bf16.mxu0 %v5370_v9 }
 0xdb1   : > { %5139 = vmatpush3.bf16.msra.mxu0 %v5370_v9 }
 0xe62   : > { %v3006_v19 = vpop.f32.mrf.mxu1 }
 0xe64   : > { %v5116_v36 = vpop.f32.mrf.mxu1 }
 0xe66   : > { %v3009_v11 = vpop.f32.mrf.mxu1 }
 0xe67   : > { %v5257_v13 = vpack.i.bf16 %v3009_v11, %v3006_v19  ;;  %v5567_v19 = vld [vmem:[#allocation2 + $0x8] sm:$0xff]  ;;  %v5373_v11 = vld [vmem:[%s5960_s23 + $0xe4] ss:$16 sps:$4 sm:$0xff]  }
 0xe68   : > { %v5117_v14 = vpop.f32.mrf.mxu1  ;;  %3525 = vmatprep.subr.bf16.mxu1 %v5373_v11 }
 0xe69   : > { %5258 = vrot.lane.b32.xlu1 %v5257_v13, %s5732_s22  ;;  %v5376_v13 = vld [vmem:[%s5960_s23 + $0xec] ss:$16 sps:$4 sm:$0xff]   ;;  %v5371_v14 = vld [vmem:[%s5960_s23 + $0xe0] ss:$16 sps:$4 sm:$0xff]  }
 0xe6a   : > { %v3050_v15 = vpop.f32.mrf.mxu1  ;;  %3578 = vmatprep.subr.bf16.mxu0 %v5376_v13  ;;  %3526 = vmatpush1.bf16.msra.mxu1 %v5371_v14 }
 0xe6c   : > { %v5122_v62 = vpop.f32.mrf.mxu1 }
 0xe6d   : > { %v5379_v62 = vld [vmem:[%s5960_s23 + $0xc4] ss:$16 sps:$4 sm:$0xff]  }
 0xe6e   : > { %v3053_v17 = vpop.f32.mrf.mxu1  ;;  %3527 = vmatprep.subr.bf16.mxu1 %v5379_v62 }
 0xe6f   : > { %v5262_v18 = vpack.i.bf16 %v3053_v17, %v3050_v15  ;;  %v5374_v15 = vld [vmem:[%s5960_s23 + $0xe8] ss:$16 sps:$4 sm:$0xff]   ;;  %v5382_v17 = vld [vmem:[%s5960_s23 + $0xcc] ss:$16 sps:$4 sm:$0xff]  }
 0xe70   : > { %v5123_v25 = vpop.f32.mrf.mxu1 }
 0xe71   : > { %5263 = vrot.lane.b32.xlu0 %v5262_v18, %s5732_s22  ;;  %v5377_v18 = vld [vmem:[%s5960_s23 + $0xc0] ss:$16 sps:$4 sm:$0xff]   ;;  %v5380_v25 = vld [vmem:[%s5960_s23 + $0xc8] ss:$16 sps:$4 sm:$0xff]  }
 0xe72   : > { %3528 = vmatpush1.bf16.msra.mxu1 %v5377_v18 }
 0xe73   : > { %3529 = vmatprep.subr.bf16.mxu1 %v5385_v27 }
 0xe76   : > { %3530 = vmatpush1.bf16.msra.mxu1 %v5383_v16 }
 0xe77   : > { %3531 = vmatprep.subr.bf16.mxu1 %v5391_v29  ;;  %v3309_v29 = vsub.s32 3, %v6039_v22 }
 0xe7a   : > { %3532 = vmatpush1.bf16.msra.mxu1 %v5389_v32 }
 0xe7b   : > { %3533 = vmatprep.subr.bf16.mxu1 %v5397_v10 }
 0xedb   : > { %v5259_v33 = vpop.permute.xlu1 %5258 }
 0xedc   : > { %v5261_v23 = vunpack.i.h.bf16 %v5259_v33  ;;  %v5260_v37 = vunpack.i.l.bf16 %v5259_v33  ;;  %v5392_v33 = vld [vmem:[%s5960_s23 + $0x88] ss:$16 sps:$4 sm:$0xff]  }
 0xede   : > { %v3115_v49 = vsel %vm3114_vm4, %v3110_v38, %v5260_v37  ;;  %v3116_v42 = vsel %vm3114_vm4, %v3111_v39, %v5261_v23  ;;  %v5395_v23 = vld [vmem:[%s5960_s23 + $0x60] ss:$16 sps:$4 sm:$0xff]   ;;  %v5398_v37 = vld [vmem:[%s5960_s23 + $0x68] ss:$16 sps:$4 sm:$0xff]   ;;  %v5403_v39 = vld [vmem:[%s5960_s23 + $0x44] ss:$16 sps:$4 sm:$0xff]  }
 0xedf   : > { %v3119_v47 = vpack.c.bf16 %v3116_v42, %v3115_v49  ;;  %3534 = vmatpush1.bf16.msra.mxu1 %v5395_v23  ;;  %v5401_v38 = vld [vmem:[%s5960_s23 + $0x40] ss:$16 sps:$4 sm:$0xff]   ;;  %v5409_v49 = vld [vmem:[%s5960_s23 + $0x24] ss:$16 sps:$4 sm:$0xff]   ;;  %v5412_v42 = vld [vmem:[%s5960_s23 + $0x2c] ss:$16 sps:$4 sm:$0xff]  }
 0xee0   : > { %3535 = vmatprep.subr.bf16.mxu1 %v5403_v39 }
 0xee1   : > { %5140 = vmatprep.mubr.bf16.mxu0 %v3119_v47  ;;  %v5410_v47 = vld [vmem:[%s5960_s23 + $0x28] ss:$16 sps:$4 sm:$0xff]  }
 0xee3   : > { %v5264_v53 = vpop.permute.xlu0 %5263  ;;  %3536 = vmatpush1.bf16.msra.mxu1 %v5401_v38 }
 0xee4   : > { %v5266_v55 = vunpack.i.h.bf16 %v5264_v53  ;;  %v5265_v24 = vunpack.i.l.bf16 %v5264_v53  ;;  %3537 = vmatprep.subr.bf16.mxu1 %v5409_v49  ;;  %v5416_v53 = vld [vmem:[%s5960_s23 + $0x8] ss:$16 sps:$4 sm:$0xff]  }
 0xee6   : > { %v3118_v4 = vsel %vm3114_vm4, %v3113_v3, %v5266_v55  ;;  %v3117_v43 = vsel %vm3114_vm4, %v3112_v63, %v5265_v24 }
 0xee7   : > { %v3120_v54 = vpack.c.bf16 %v3118_v4, %v3117_v43  ;;  %3538 = vmatpush1.bf16.msra.mxu1 %v5407_v51 }
 0xee8   : > { %3539 = vmatprep.subr.bf16.mxu1 %v5415_v61 }
 0xee9   : > { %5141 = vmatmul.mubr.bf16.vlgmr.msra.gmra.mxu0 %v3120_v54 }
 0xeea   : > { %3579 = vmatpush1.bf16.msra.mxu0 %v5374_v15  ;;  %3610 = vmatprep.mubr.bf16.mxu0 %v5735_v40 }
 0xeeb   : > { %3580 = vmatprep.subr.bf16.mxu0 %v5382_v17  ;;  %3540 = vmatpush1.bf16.msra.mxu1 %v5413_v41  ;;  %v5420_v41 = vld [vmem:[%s5978_s19 + $0x38] sm:$0xff]  }
 0xeee   : > { %3581 = vmatpush1.bf16.msra.mxu0 %v5380_v25  ;;  %v3301_v25 = vsub.s32 2, %v6039_v22 }
 0xeef   : > { %3582 = vmatprep.subr.bf16.mxu0 %v5388_v28 }
 0xef2   : > { %3583 = vmatpush1.bf16.msra.mxu0 %v5386_v21  ;;  %v3302_v21 = vrot.slane %v6506_v58, %v3301_v25 }
 0xef3   : > { %3584 = vmatprep.subr.bf16.mxu0 %v5394_v31 }
 0xef6   : > { %3585 = vmatpush1.bf16.msra.mxu0 %v5392_v33 }
 0xef7   : > { %3586 = vmatprep.subr.bf16.mxu0 %v5400_v34  ;;  %v3310_v34 = vrot.slane %v6506_v58, %v3309_v29 }
 0xefa   : > { %3587 = vmatpush1.bf16.msra.mxu0 %v5398_v37 }
 0xefb   : > { %3588 = vmatprep.subr.bf16.mxu0 %v5406_v26 }
 0xefe   : > { %3589 = vmatpush1.bf16.msra.mxu0 %v5404_v35 }
 0xeff   : > { %3590 = vmatprep.subr.bf16.mxu0 %v5412_v42 }
 0xf02   : > { %3591 = vmatpush1.bf16.msra.mxu0 %v5410_v47 }
 0xf03   : > { %3592 = vmatprep.subr.bf16.mxu0 %v5418_v59  ;;  %v5419_v59 = vld [vmem:[%s5978_s19 + $0x78] sm:$0xff]  }
 0xf04   : > { %4732 = vmatprep.subr.bf16.mxu1 %v5419_v59 }
 0xf06   : > { %3593 = vmatpush1.bf16.msra.mxu0 %v5416_v53  ;;  %v6589_v53 = vld [vmem:[%s5978_s19 + $0xb8] sm:$0xff]  }
 0xfa9   : > { %v5142_v57 = vpop.f32.mrf.mxu0 }
 0xfaa   : > { %v3232_v46 = vadd.f32 %v5142_v57, %v3140_v0 }
 0xfab   : > { %v3223_v44 = vpop.f32.mrf.mxu0 }
 0xfac   : > { %v3224_v45 = vadd.f32 %v3223_v44, %v3140_v0  ;;  %v6514_v1 = vadd.f32 %v5565_v60, %v3232_v46 }
 0xfad   : > { %v5143_v12 = vpop.f32.mrf.mxu0 }
 0xfae   : > { %v6509_v48 = vadd.f32 %v5564_v30, %v3224_v45  ;;  %v3257_v20 = vmul.f32 %v6514_v1, %v6514_v1  ;;  %v3235_v7 = vadd.f32 %v5143_v12, %v3140_v0 }
 0xfaf   : > { %v3226_v50 = vpop.f32.mrf.mxu0 }
 0xfb0   : > { %v3227_v52 = vadd.f32 %v3226_v50, %v3140_v0  ;;  %3242 = vadd.xlane.f32.xlu1 %v6509_v48  ;;  %v3255_v56 = vmul.f32 %v6509_v48, %v6509_v48  ;;  %v6524_v36 = vadd.f32 %v5567_v19, %v3235_v7 }
 0xfb2   : > { %3259 = vadd.xlane.f32.xlu0 %v3255_v56  ;;  %v6516_v6 = vadd.f32 %v5566_v5, %v3227_v52  ;;  %v3258_v9 = vmul.f32 %v6524_v36, %v6524_v36 }
 0xfb4   : > { %3246 = vadd.xlane.f32.xlu1 %v6514_v1  ;;  %v3256_v8 = vmul.f32 %v6516_v6, %v6516_v6 }
 0xfb6   : > { %3244 = vadd.xlane.f32.xlu0 %v6516_v6 }
 0xfb8   : > { %3263 = vadd.xlane.f32.xlu1 %v3257_v20 }
 0xfba   : > { %3261 = vadd.xlane.f32.xlu0 %v3256_v8 }
 0xfbe   : > { %3248 = vadd.xlane.f32.xlu0 %v6524_v36 }
 0xfc2   : > { %3265 = vadd.xlane.f32.xlu0 %v3258_v9 }
0x1039   : > { %v3243_v55 = vpop.xlane.xlu1 %3242 }
0x103a   : > { %v3251_v24 = vmul.f32 0.0078125, %v3243_v55  ;;  %v5423_v55 = vld [vmem:[%s5978_s19 + $0x70] sm:$0xff]  }
0x103b   : > { %v3260_v63 = vpop.xlane.xlu0 %3259 }
0x103c   : > { %v3271_v3 = vmul.f32 %v3251_v24, %v3251_v24  ;;  %v3267_v4 = vmul.f32 0.0078125, %v3260_v63  ;;  %v3283_v28 = vsub.f32 %v6509_v48, %v3251_v24  ;;  %v5424_v24 = vld [vmem:[%s5978_s19 + $0x30] sm:$0xff]  }
0x103d   : > { %v3247_v43 = vpop.xlane.xlu1 %3246  ;;  %v6595_v63 = vld [vmem:[%s5978_s19 + $0xf0] sm:$0xff]  }
0x103e   : > { %v3275_v54 = vsub.f32 %v3267_v4, %v3271_v3  ;;  %v3253_v2 = vmul.f32 0.0078125, %v3247_v43  ;;  %v6598_v3 = vld [vmem:[%s5978_s19 + $0xb0] sm:$0xff]   ;;  %v5427_v4 = vld [vmem:[%s5978_s19 + $0x68] sm:$0xff]  }
0x103f   : > { %v3245_v57 = vpop.xlane.xlu0 %3244  ;;  %v5428_v43 = vld [vmem:[%s5978_s19 + $0x28] sm:$0xff]  }
0x1040   : > { %v3279_v0 = vmax.f32 %v3275_v54, 0.0  ;;  %v3252_v44 = vmul.f32 0.0078125, %v3245_v57  ;;  %v3273_v46 = vmul.f32 %v3253_v2, %v3253_v2  ;;  %v3285_v37 = vsub.f32 %v6514_v1, %v3253_v2  ;;  %v6605_v54 = vld [vmem:[%s5978_s19 + $0xe8] sm:$0xff]   ;;  %v5431_v57 = vld [vmem:[%s5978_s19 + $0x60] sm:$0xff]  }
0x1041   : > { %v3264_v45 = vpop.xlane.xlu1 %3263  ;;  %v6608_v2 = vld [vmem:[%s5978_s19 + $0xa8] sm:$0xff]  }
0x1042   : > { %v3287_v12 = vadd.f32 1e-12, %v3279_v0  ;;  %v3269_v30 = vmul.f32 0.0078125, %v3264_v45  ;;  %v3272_v52 = vmul.f32 %v3252_v44, %v3252_v44  ;;  %v3284_v31 = vsub.f32 %v6516_v6, %v3252_v44  ;;  %v5432_v0 = vld [vmem:[%s5978_s19 + $0x20] sm:$0xff]  }
0x1043   : > { %v3262_v50 = vpop.xlane.xlu0 %3261  ;;  %v6615_v44 = vld [vmem:[%s5978_s19 + $0xe0] sm:$0xff]  }
0x1044   : > { %v3277_v56 = vsub.f32 %v3269_v30, %v3273_v46  ;;  %v3268_v60 = vmul.f32 0.0078125, %v3262_v50  ;;  %5515 = vrsqrt.f32 %v3287_v12  ;;  %v6618_v45 = vld [vmem:[%s5978_s19 + $0xa0] sm:$0xff]   ;;  %v5435_v12 = vld [vmem:[%s5978_s19 + $0x58] sm:$0xff]  }
0x1045   : > { %v5436_v46 = vld [vmem:[%s5978_s19 + $0x18] sm:$0xff]  }
0x1046   : > { %v3281_v5 = vmax.f32 %v3277_v56, 0.0  ;;  %v3276_v20 = vsub.f32 %v3268_v60, %v3272_v52  ;;  %v6625_v30 = vld [vmem:[%s5978_s19 + $0xd8] sm:$0xff]   ;;  %v5439_v52 = vld [vmem:[%s5978_s19 + $0x50] sm:$0xff]  }
0x1047   : > { %v3249_v7 = vpop.xlane.xlu0 %3248  ;;  %v6628_v50 = vld [vmem:[%s5978_s19 + $0x98] sm:$0xff]   ;;  %v5440_v56 = vld [vmem:[%s5978_s19 + $0x10] sm:$0xff]  }
0x1048   : > { %v3280_v8 = vmax.f32 %v3276_v20, 0.0  ;;  %v3254_v19 = vmul.f32 0.0078125, %v3249_v7  ;;  %v3289_v9 = vadd.f32 1e-12, %v3281_v5  ;;  %v6635_v60 = vld [vmem:[%s5978_s19 + $0xd0] sm:$0xff]   ;;  %v5443_v20 = vld [vmem:[%s5978_s19 + $0x48] sm:$0xff]  }
0x1049   : > { %v6638_v5 = vld [vmem:[%s5978_s19 + $0x90] sm:$0xff]   ;;  %v5444_v7 = vld [vmem:[%s5978_s19 + $0x8] sm:$0xff]  }
0x104a   : > { %v3288_v11 = vadd.f32 1e-12, %v3280_v8  ;;  %v3274_v14 = vmul.f32 %v3254_v19, %v3254_v19  ;;  %v3286_v26 = vsub.f32 %v6524_v36, %v3254_v19  ;;  %v6645_v8 = vld [vmem:[%s5978_s19 + $0xc8] sm:$0xff]  }
0x104b   : > { %v3266_v13 = vpop.xlane.xlu0 %3265  ;;  %v6648_v19 = vld [vmem:[%s5978_s19 + $0x88] sm:$0xff]  }
0x104c   : > { %5517 = vrsqrt.f32 %v3288_v11  ;;  %v3270_v15 = vmul.f32 0.0078125, %v3266_v13  ;;  %v5448_v11 = vld [vmem:[%s5978_s19] sm:$0xff]  }
0x104d   : > { %5519 = vrsqrt.f32 %v3289_v9  ;;  %v5447_v9 = vld [vmem:[%s5978_s19 + $0x40] sm:$0xff]  }
0x104e   : > { %v3278_v62 = vsub.f32 %v3270_v15, %v3274_v14  ;;  %v6655_v13 = vld [vmem:[%s5978_s19 + $0xc0] sm:$0xff]   ;;  %v3351_v15 = vsub.s32 4, %v6039_v22 }
0x104f   : > { %v6658_v14 = vld [vmem:[%s5978_s19 + $0x80] sm:$0xff]  }
0x1050   : > { %v3282_v17 = vmax.f32 %v3278_v62, 0.0  ;;  %v524_v62 = vld [vmem:[%s5971_s18 + $0x18] sm:$0xff] }
0x1051   : > { %v5516_v27 = vpop.eup %5515 }
0x1052   : > { %v3290_v18 = vadd.f32 1e-12, %v3282_v17  ;;  %v3295_v16 = vmul.f32 %v5516_v27, %v3283_v28  ;;  %v6665_v17 = vrot.slane %v6506_v58, %v3351_v15  ;;  %v5569_v27 = vld [vmem:[%s5971_s18 + $0x8] sm:$0xff] }
0x1053   : > { %v6671_v28 = vrot.slane %v5569_v27, %v3351_v15 }
0x1054   : > { %5521 = vrsqrt.f32 %v3290_v18  ;;  %v3303_v10 = vmul.f32 %v3302_v21, %v3295_v16  ;;  %v5568_v18 = vld [vmem:[%s5971_s18 + $0x10] sm:$0xff]  ;;  %v6673_v16 = vrot.slane %v524_v62, %v3351_v15 }
0x1055   : > { %v6668_v25 = vrot.slane %v5568_v18, %v3351_v15 }
0x1056   : > { %v6570_v39 = vadd.f32 %v3310_v34, %v3303_v10 }
0x1059   : > { %v5518_v32 = vpop.eup %5517 }
0x105a   : > { %v3296_v33 = vmul.f32 %v5518_v32, %v3284_v31  ;;  %v5520_v23 = vpop.eup %5519 }
0x105b   : > { %v3297_v35 = vmul.f32 %v5520_v23, %v3285_v37 }
0x105c   : > { %v3304_v38 = vmul.f32 %v3302_v21, %v3296_v33 }
0x105d   : > { %v3305_v1 = vmul.f32 %v3302_v21, %v3297_v35 }
0x105e   : > { %v6572_v48 = vadd.f32 %v3310_v34, %v3304_v38 }
0x105f   : > { %v6579_v47 = vadd.f32 %v3310_v34, %v3305_v1 }
0x1060   : > { %v3315_v6 = vpack.c.bf16 %v6572_v48, %v6570_v39 }
0x1061   : > { %v5522_v49 = vpop.eup %5521 }
0x1062   : > { %3558 = vmatmul.mubr.bf16.vlgmr.msra.gmra.mxu1 %v3315_v6  ;;  %3611 = vmatmul.mubr.bf16.vlgmr.msra.gmra.mxu0 %v3315_v6  ;;  %v3298_v42 = vmul.f32 %v5522_v49, %v3286_v26 }
0x1063   : > { %3567 = vmatprep.mubr.bf16.mxu1 %v5735_v40  ;;  %3620 = vmatprep.mubr.bf16.mxu0 %v5735_v40  ;;  %v5421_v40 = vld [vmem:[%s5978_s19 + $0xf8] sm:$0xff]  }
0x1064   : > { %v3306_v51 = vmul.f32 %v3302_v21, %v3298_v42  ;;  %4733 = vmatpush3.bf16.msra.mxu1 %v5420_v41  ;;  %4760 = vmatprep.subr.bf16.mxu0 %v5421_v40 }
0x1065   : > { %4761 = vmatpush3.bf16.msra.mxu0 %v6589_v53  ;;  %4734 = vmatprep.subr.bf16.mxu1 %v5423_v55 }
0x1066   : > { %v6581_v36 = vadd.f32 %v3310_v34, %v3306_v51  ;;  %4762 = vmatprep.subr.bf16.mxu0 %v6595_v63 }
0x1068   : > { %6889 = vst [vmem:[#allocation15_spill] sm:$0xff] %v6581_v36  ;;  %v3316_v61 = vpack.c.bf16 %v6581_v36, %v6579_v47  ;;  %4735 = vmatpush3.bf16.msra.mxu1 %v5424_v24 }
0x1069   : > { %4763 = vmatpush3.bf16.msra.mxu0 %v6598_v3  ;;  %4736 = vmatprep.subr.bf16.mxu1 %v5427_v4 }
0x106a   : > { %3568 = vmatmul.mubr.bf16.gmra.mxu1 %v3316_v61  ;;  %3621 = vmatmul.mubr.bf16.gmra.mxu0 %v3316_v61 }
0x106b   : > { %4764 = vmatprep.subr.bf16.mxu0 %v6605_v54 }
0x106c   : > { %4737 = vmatpush3.bf16.msra.mxu1 %v5428_v43 }
0x106d   : > { %4765 = vmatpush3.bf16.msra.mxu0 %v6608_v2  ;;  %4738 = vmatprep.subr.bf16.mxu1 %v5431_v57 }
0x106e   : > { %4766 = vmatprep.subr.bf16.mxu0 %v6615_v44 }
0x1070   : > { %4739 = vmatpush3.bf16.msra.mxu1 %v5432_v0 }
0x1071   : > { %4767 = vmatpush3.bf16.msra.mxu0 %v6618_v45  ;;  %4740 = vmatprep.subr.bf16.mxu1 %v5435_v12 }
0x1072   : > { %4768 = vmatprep.subr.bf16.mxu0 %v6625_v30 }
0x1074   : > { %4741 = vmatpush3.bf16.msra.mxu1 %v5436_v46 }
0x1075   : > { %4769 = vmatpush3.bf16.msra.mxu0 %v6628_v50  ;;  %4742 = vmatprep.subr.bf16.mxu1 %v5439_v52 }
0x1076   : > { %4770 = vmatprep.subr.bf16.mxu0 %v6635_v60 }
0x1078   : > { %4743 = vmatpush3.bf16.msra.mxu1 %v5440_v56 }
0x1079   : > { %4771 = vmatpush3.bf16.msra.mxu0 %v6638_v5  ;;  %4744 = vmatprep.subr.bf16.mxu1 %v5443_v20 }
0x107a   : > { %4772 = vmatprep.subr.bf16.mxu0 %v6645_v8 }
0x107c   : > { %4745 = vmatpush3.bf16.msra.mxu1 %v5444_v7 }
0x107d   : > { %4773 = vmatpush3.bf16.msra.mxu0 %v6648_v19  ;;  %4746 = vmatprep.subr.bf16.mxu1 %v5447_v9 }
0x107e   : > { %4774 = vmatprep.subr.bf16.mxu0 %v6655_v13 }
0x1080   : > { %4747 = vmatpush3.bf16.msra.mxu1 %v5448_v11 }
0x1081   : > { %4775 = vmatpush3.bf16.msra.mxu0 %v6658_v14  ;;  %5144 = vmatprep.subr.bf16.mxu1 %v5421_v40 }
0x1122   : > { %v3559_v21 = vpop.f32.mrf.mxu1  ;;  %v3612_v29 = vpop.f32.mrf.mxu0 }
0x1123   : > { %v6676_v31 = vadd.f32 %v3559_v21, %v6665_v17  ;;  %v6679_v32 = vadd.f32 %v3612_v29, %v6668_v25 }
0x1124   : > { %v3561_v33 = vpop.f32.mrf.mxu1  ;;  %v3614_v10 = vpop.f32.mrf.mxu0 }
0x1125   : > { %v3631_v34 = vmul.f32 %v6676_v31, %v6676_v31  ;;  %v3633_v23 = vmul.f32 %v6679_v32, %v6679_v32  ;;  %v6686_v37 = vadd.f32 %v3561_v33, %v6671_v28  ;;  %v6689_v38 = vadd.f32 %v3614_v10, %v6673_v16 }
0x1126   : > { %v3563_v35 = vpop.f32.mrf.mxu1  ;;  %v3616_v26 = vpop.f32.mrf.mxu0 }
0x1127   : > { %v3647_v6 = vmul.f32 %v3631_v34, %v6676_v31  ;;  %v3649_v49 = vmul.f32 %v3633_v23, %v6679_v32  ;;  %v3632_v42 = vmul.f32 %v6686_v37, %v6686_v37  ;;  %v3634_v1 = vmul.f32 %v6689_v38, %v6689_v38 }
0x1128   : > { %v6698_v51 = vadd.f32 %v3563_v35, %v6665_v17  ;;  %v6701_v61 = vadd.f32 %v3616_v26, %v6668_v25  ;;  %v3565_v59 = vpop.f32.mrf.mxu1  ;;  %v3618_v41 = vpop.f32.mrf.mxu0 }
0x1129   : > { %v3663_v40 = vmul.f32 0.044715, %v3647_v6  ;;  %v3665_v55 = vmul.f32 0.044715, %v3649_v49  ;;  %v3648_v24 = vmul.f32 %v3632_v42, %v6686_v37  ;;  %v3650_v4 = vmul.f32 %v3634_v1, %v6689_v38 }
0x112a   : > { %v3635_v43 = vmul.f32 %v6698_v51, %v6698_v51  ;;  %v3637_v57 = vmul.f32 %v6701_v61, %v6701_v61  ;;  %v6710_v0 = vadd.f32 %v3565_v59, %v6671_v28  ;;  %v6713_v12 = vadd.f32 %v3618_v41, %v6673_v16  ;;  %v3569_v46 = vpop.f32.mrf.mxu1  ;;  %v3622_v52 = vpop.f32.mrf.mxu0 }
0x112b   : > { %v3679_v56 = vadd.f32 %v3663_v40, %v6676_v31  ;;  %v3681_v20 = vadd.f32 %v3665_v55, %v6679_v32  ;;  %v3664_v7 = vmul.f32 0.044715, %v3648_v24  ;;  %v3666_v9 = vmul.f32 0.044715, %v3650_v4 }
0x112c   : > { %v3651_v11 = vmul.f32 %v3635_v43, %v6698_v51  ;;  %v3653_v15 = vmul.f32 %v3637_v57, %v6701_v61  ;;  %v3636_v62 = vmul.f32 %v6710_v0, %v6710_v0  ;;  %v3638_v18 = vmul.f32 %v6713_v12, %v6713_v12  ;;  %v3571_v10 = vpop.f32.mrf.mxu1  ;;  %v3624_v6 = vpop.f32.mrf.mxu0 }
0x112d   : > { %v3695_v27 = vmul.f32 0.7978846, %v3679_v56  ;;  %v3697_v21 = vmul.f32 0.7978846, %v3681_v20  ;;  %v3680_v29 = vadd.f32 %v3664_v7, %v6686_v37  ;;  %v3682_v33 = vadd.f32 %v3666_v9, %v6689_v38 }
0x112e   : > { %v3667_v34 = vmul.f32 0.044715, %v3651_v11  ;;  %v3669_v23 = vmul.f32 0.044715, %v3653_v15  ;;  %v3652_v35 = vmul.f32 %v3636_v62, %v6710_v0  ;;  %v3654_v26 = vmul.f32 %v3638_v18, %v6713_v12  ;;  %v3573_v4 = vpop.f32.mrf.mxu1  ;;  %v3626_v20 = vpop.f32.mrf.mxu0 }
0x112f   : > { %v3696_v49 = vmul.f32 0.7978846, %v3680_v29  ;;  %v3698_v42 = vmul.f32 0.7978846, %v3682_v33  ;;  %v6728_v1 = vadd.f32 %v3569_v46, %v6665_v17  ;;  %5523 = vtanh.f32 %v3695_v27 }
0x1130   : > { %v3683_v59 = vadd.f32 %v3667_v34, %v6698_v51  ;;  %v3685_v41 = vadd.f32 %v3669_v23, %v6701_v61  ;;  %v3668_v40 = vmul.f32 0.044715, %v3652_v35  ;;  %v3670_v55 = vmul.f32 0.044715, %v3654_v26  ;;  %v3575_v29 = vpop.f32.mrf.mxu1  ;;  %v3628_v23 = vpop.f32.mrf.mxu0 }
0x1131   : > { %5525 = vtanh.f32 %v3696_v49  ;;  %v3639_v24 = vmul.f32 %v6728_v1, %v6728_v1  ;;  %v6738_v9 = vadd.f32 %v3571_v10, %v6671_v28  ;;  %v6741_v15 = vadd.f32 %v3624_v6, %v6673_v16 }
0x1132   : > { %5527 = vtanh.f32 %v3697_v21  ;;  %v3699_v43 = vmul.f32 0.7978846, %v3683_v59  ;;  %v3701_v57 = vmul.f32 0.7978846, %v3685_v41  ;;  %v3684_v56 = vadd.f32 %v3668_v40, %v6710_v0 }
0x1133   : > { %5529 = vtanh.f32 %v3698_v42  ;;  %v3686_v46 = vadd.f32 %v3670_v55, %v6713_v12  ;;  %v3655_v7 = vmul.f32 %v3639_v24, %v6728_v1  ;;  %v6744_v62 = vadd.f32 %v3573_v4, %v6665_v17 }
0x1134   : > { %5531 = vtanh.f32 %v3699_v43  ;;  %v3700_v11 = vmul.f32 0.7978846, %v3684_v56  ;;  %v6747_v21 = vadd.f32 %v3622_v52, %v6668_v25  ;;  %v3640_v33 = vmul.f32 %v6738_v9, %v6738_v9 }
0x1135   : > { %5533 = vtanh.f32 %v3701_v57  ;;  %v3702_v18 = vmul.f32 0.7978846, %v3686_v46  ;;  %v3671_v27 = vmul.f32 0.044715, %v3655_v7  ;;  %v3642_v10 = vmul.f32 %v6741_v15, %v6741_v15 }
0x1136   : > { %5535 = vtanh.f32 %v3700_v11  ;;  %v3643_v34 = vmul.f32 %v6744_v62, %v6744_v62  ;;  %v6757_v35 = vadd.f32 %v3626_v20, %v6668_v25  ;;  %v3656_v52 = vmul.f32 %v3640_v33, %v6738_v9 }
0x1137   : > { %5537 = vtanh.f32 %v3702_v18  ;;  %v3687_v17 = vadd.f32 %v3671_v27, %v6728_v1  ;;  %v3658_v26 = vmul.f32 %v3642_v10, %v6741_v15  ;;  %v6763_v49 = vadd.f32 %v3575_v29, %v6671_v28 }
0x1138   : > { %v3659_v6 = vmul.f32 %v3643_v34, %v6744_v62  ;;  %v3641_v42 = vmul.f32 %v6747_v21, %v6747_v21  ;;  %v6768_v59 = vadd.f32 %v3628_v23, %v6673_v16  ;;  %v3672_v41 = vmul.f32 0.044715, %v3656_v52 }
0x1139   : > { %v3674_v40 = vmul.f32 0.044715, %v3658_v26  ;;  %v3644_v25 = vmul.f32 %v6763_v49, %v6763_v49  ;;  %v3703_v24 = vmul.f32 0.7978846, %v3687_v17  ;;  %v3645_v4 = vmul.f32 %v6757_v35, %v6757_v35 }
0x113a   : > { %v3675_v55 = vmul.f32 0.044715, %v3659_v6  ;;  %v3646_v28 = vmul.f32 %v6768_v59, %v6768_v59  ;;  %v3688_v43 = vadd.f32 %v3672_v41, %v6738_v9  ;;  %v3657_v46 = vmul.f32 %v3641_v42, %v6747_v21 }
0x113b   : > { %v3690_v57 = vadd.f32 %v3674_v40, %v6741_v15  ;;  %v3660_v56 = vmul.f32 %v3644_v25, %v6763_v49  ;;  %5539 = vtanh.f32 %v3703_v24  ;;  %v3661_v10 = vmul.f32 %v3645_v4, %v6757_v35 }
0x113c   : > { %v3691_v16 = vadd.f32 %v3675_v55, %v6744_v62  ;;  %v5524_v20 = vpop.eup %5523  ;;  %v3662_v7 = vmul.f32 %v3646_v28, %v6768_v59  ;;  %v3704_v18 = vmul.f32 0.7978846, %v3688_v43  ;;  %v3673_v41 = vmul.f32 0.044715, %v3657_v46 }
0x113d   : > { %v3706_v27 = vmul.f32 0.7978846, %v3690_v57  ;;  %v3676_v34 = vmul.f32 0.044715, %v3660_v56  ;;  %v3727_v6 = vadd.f32 1.0, %v5524_v20 }
0x113e   : > { %v5526_v11 = vpop.eup %5525  ;;  %v3707_v33 = vmul.f32 0.7978846, %v3691_v16  ;;  %5541 = vtanh.f32 %v3704_v18  ;;  %v3678_v17 = vmul.f32 0.044715, %v3662_v7  ;;  %v3677_v4 = vmul.f32 0.044715, %v3661_v10 }
0x113f   : > { %v5528_v29 = vpop.eup %5527  ;;  %v3728_v52 = vadd.f32 1.0, %v5526_v11  ;;  %5543 = vtanh.f32 %v3706_v27  ;;  %v3692_v42 = vadd.f32 %v3676_v34, %v6763_v49  ;;  %v3743_v46 = vmul.f32 0.5, %v3727_v6 }
0x1140   : > { %v5530_v23 = vpop.eup %5529  ;;  %v3729_v55 = vadd.f32 1.0, %v5528_v29  ;;  %5545 = vtanh.f32 %v3707_v33  ;;  %v3694_v24 = vadd.f32 %v3678_v17, %v6768_v59  ;;  %v3689_v6 = vadd.f32 %v3673_v41, %v6747_v21 }
0x1141   : > { %v5532_v26 = vpop.eup %5531  ;;  %v3708_v57 = vmul.f32 0.7978846, %v3692_v42  ;;  %v3744_v16 = vmul.f32 0.5, %v3728_v52  ;;  %v3730_v20 = vadd.f32 1.0, %v5530_v23  ;;  %v3759_v23 = vmul.f32 %v3743_v46, %v6676_v31 }
0x1142   : > { %v5534_v40 = vpop.eup %5533  ;;  %v3731_v25 = vadd.f32 1.0, %v5532_v26  ;;  %v3710_v11 = vmul.f32 0.7978846, %v3694_v24  ;;  %v3745_v36 = vmul.f32 0.5, %v3729_v55  ;;  %v3693_v26 = vadd.f32 %v3677_v4, %v6757_v35 }
0x1143   : > { %v5536_v28 = vpop.eup %5535  ;;  %v3733_v43 = vadd.f32 1.0, %v5534_v40  ;;  %5547 = vtanh.f32 %v3708_v57  ;;  %v3746_v33 = vmul.f32 0.5, %v3730_v20  ;;  %v3760_v42 = vmul.f32 %v3744_v16, %v6686_v37 }
0x1144   : > { %v5538_v56 = vpop.eup %5537  ;;  %v3747_v7 = vmul.f32 0.5, %v3731_v25  ;;  %v3732_v18 = vadd.f32 1.0, %v5536_v28  ;;  %5549 = vtanh.f32 %v3710_v11  ;;  %v3761_v24 = vmul.f32 %v3745_v36, %v6679_v32 }
0x1145   : > { %v3749_v27 = vmul.f32 0.5, %v3733_v43  ;;  %v3734_v34 = vadd.f32 1.0, %v5538_v56  ;;  %v3762_v55 = vmul.f32 %v3746_v33, %v6689_v38  ;;  %v3709_v43 = vmul.f32 0.7978846, %v3693_v26 }
0x1146   : > { %v3748_v29 = vmul.f32 0.5, %v3732_v18  ;;  %v3763_v17 = vmul.f32 %v3747_v7, %v6698_v51  ;;  %v3705_v16 = vmul.f32 0.7978846, %v3689_v6 }
0x1147   : > { %v3750_v10 = vmul.f32 0.5, %v3734_v34  ;;  %v3765_v52 = vmul.f32 %v3749_v27, %v6701_v61  ;;  %5551 = vtanh.f32 %v3709_v43 }
0x1148   : > { %v3764_v40 = vmul.f32 %v3748_v29, %v6710_v0  ;;  %v3775_v28 = vpack.c.bf16 %v3763_v17, %v3759_v23  ;;  %v5540_v57 = vpop.eup %5539  ;;  %5553 = vtanh.f32 %v3705_v16 }
0x1149   : > { %v3766_v25 = vmul.f32 %v3750_v10, %v6713_v12  ;;  %v3777_v61 = vpack.c.bf16 %v3765_v52, %v3761_v24  ;;  %v3735_v32 = vadd.f32 1.0, %v5540_v57 }
0x114a   : > { %v3776_v51 = vpack.c.bf16 %v3764_v40, %v3760_v42 }
0x114b   : > { %v3778_v4 = vpack.c.bf16 %v3766_v25, %v3762_v55  ;;  %v5542_v37 = vpop.eup %5541 }
0x114c   : > { %4075 = vmatprep.mubr.bf16.mxu1 %v3776_v51  ;;  %v5544_v31 = vpop.eup %5543  ;;  %v3736_v36 = vadd.f32 1.0, %v5542_v37 }
0x114d   : > { %4124 = vmatprep.mubr.bf16.mxu0 %v3778_v4  ;;  %4076 = vmatmul.mubr.bf16.vlgmr.msra.gmra.mxu1 %v3775_v28  ;;  %v5546_v38 = vpop.eup %5545  ;;  %v3738_v12 = vadd.f32 1.0, %v5544_v31 }
0x114e   : > { %5152 = vmatpush3.bf16.msra.mxu1 %v6589_v53  ;;  %4125 = vmatmul.mubr.bf16.vlgmr.msra.gmra.mxu0 %v3777_v61  ;;  %v3739_v0 = vadd.f32 1.0, %v5546_v38  ;;  %v3752_v18 = vmul.f32 0.5, %v3736_v36  ;;  %v3751_v53 = vmul.f32 0.5, %v3735_v32 }
0x114f   : > { %5145 = vmatprep.subr.bf16.mxu1 %v6595_v63  ;;  %v3754_v27 = vmul.f32 0.5, %v3738_v12 }
0x1150   : > { %v5548_v41 = vpop.eup %5547  ;;  %v3755_v56 = vmul.f32 0.5, %v3739_v0  ;;  %v3768_v29 = vmul.f32 %v3752_v18, %v6738_v9 }
0x1151   : > { %v5550_v7 = vpop.eup %5549  ;;  %v3740_v11 = vadd.f32 1.0, %v5548_v41  ;;  %v3770_v26 = vmul.f32 %v3754_v27, %v6741_v15 }
0x1152   : > { %5153 = vmatpush3.bf16.msra.mxu1 %v6598_v3  ;;  %v3742_v20 = vadd.f32 1.0, %v5550_v7  ;;  %v3771_v63 = vmul.f32 %v3755_v56, %v6744_v62  ;;  %v3767_v3 = vmul.f32 %v3751_v53, %v6728_v1  ;;  %v6890_v53 = vld [vmem:[#allocation15_spill] sm:$0xff] }
0x1153   : > { %5146 = vmatprep.subr.bf16.mxu1 %v6605_v54  ;;  %v3756_v46 = vmul.f32 0.5, %v3740_v11 }
0x1154   : > { %v3758_v34 = vmul.f32 0.5, %v3742_v20  ;;  %v3779_v10 = vpack.c.bf16 %v3771_v63, %v3767_v3 }
0x1155   : > { %v3772_v33 = vmul.f32 %v3756_v46, %v6763_v49 }
0x1156   : > { %5154 = vmatpush3.bf16.msra.mxu1 %v6608_v2  ;;  %v3774_v17 = vmul.f32 %v3758_v34, %v6768_v59  ;;  %v5552_v2 = vpop.eup %5551 }
0x1157   : > { %5147 = vmatprep.subr.bf16.mxu1 %v6615_v44  ;;  %v3780_v54 = vpack.c.bf16 %v3772_v33, %v3768_v29  ;;  %v5554_v9 = vpop.eup %5553  ;;  %v3741_v44 = vadd.f32 1.0, %v5552_v2 }
0x1158   : > { %v3782_v62 = vpack.c.bf16 %v3774_v17, %v3770_v26  ;;  %v3737_v1 = vadd.f32 1.0, %v5554_v9 }
0x1159   : > { %4083 = vmatprep.mubr.bf16.mxu1 %v3780_v54  ;;  %v3757_v15 = vmul.f32 0.5, %v3741_v44 }
0x115a   : > { %5155 = vmatpush3.bf16.msra.mxu1 %v6618_v45  ;;  %v3753_v45 = vmul.f32 0.5, %v3737_v1 }
0x115b   : > { %5148 = vmatprep.subr.bf16.mxu1 %v6625_v30  ;;  %4084 = vmatmul.mubr.bf16.gmra.mxu1 %v3779_v10  ;;  %v3773_v30 = vmul.f32 %v3757_v15, %v6757_v35 }
0x115c   : > { %4132 = vmatprep.mubr.bf16.mxu1 %v3782_v62  ;;  %v3769_v49 = vmul.f32 %v3753_v45, %v6747_v21  ;;  %v4203_v45 = vsub.s32 6, %v6039_v22 }
0x115e   : > { %5156 = vmatpush3.bf16.msra.mxu1 %v6628_v50  ;;  %v3781_v50 = vpack.c.bf16 %v3773_v30, %v3769_v49  ;;  %v4211_v30 = vsub.s32 7, %v6039_v22 }
0x115f   : > { %5149 = vmatprep.subr.bf16.mxu1 %v6635_v60  ;;  %v3849_v60 = vsub.s32 5, %v6039_v22 }
0x1161   : > { %v3850_v52 = vrot.slane %v6506_v58, %v3849_v60 }
0x1162   : > { %5157 = vmatpush3.bf16.msra.mxu1 %v6638_v5 }
0x1163   : > { %5150 = vmatprep.subr.bf16.mxu1 %v6645_v8 }
0x1166   : > { %5158 = vmatpush3.bf16.msra.mxu1 %v6648_v19 }
0x1167   : > { %5151 = vmatprep.subr.bf16.mxu1 %v6655_v13 }
0x116a   : > { %5159 = vmatpush3.bf16.msra.mxu1 %v6658_v14 }
0x116d   : > { %4133 = vmatmul.mubr.bf16.vlgmr.msra.gmra.mxu1 %v3781_v50  ;;  %v5570_v50 = vld [vmem:[%s5971_s18] sm:$0xff] }
0x116e   : > { %v4204_v60 = vrot.slane %v5570_v50, %v4203_v45 }
0x120d   : > { %v4748_v59 = vpop.f32.mrf.mxu1 }
0x120e   : > { %v4776_v5 = vpop.f32.mrf.mxu0 }
0x120f   : > { %v4749_v8 = vpop.f32.mrf.mxu1 }
0x1210   : > { %v4750_v42 = vadd.f32 %v4749_v8, %v4748_v59  ;;  %v4777_v40 = vpop.f32.mrf.mxu0 }
0x1211   : > { %v4751_v19 = vpop.f32.mrf.mxu1  ;;  %v4778_v35 = vadd.f32 %v4777_v40, %v4776_v5  ;;  %v4212_v5 = vrot.slane %v5570_v50, %v4211_v30 }
0x1212   : > { %v4078_v23 = vadd.f32 %v4750_v42, %v3850_v52  ;;  %v4779_v6 = vpop.f32.mrf.mxu0 }
0x1213   : > { %v4752_v13 = vpop.f32.mrf.mxu1 }
0x1214   : > { %v4127_v55 = vadd.f32 %v4778_v35, %v4078_v23  ;;  %v4753_v21 = vadd.f32 %v4752_v13, %v4751_v19  ;;  %v4780_v25 = vpop.f32.mrf.mxu0 }
0x1215   : > { %v4781_v24 = vadd.f32 %v4780_v25, %v4779_v6 }
0x1216   : > { %v4081_v14 = vadd.f32 %v4753_v21, %v3850_v52  ;;  %v4141_v51 = vadd.f32 %v4127_v55, %v6570_v39 }
0x1218   : > { %v4130_v28 = vadd.f32 %v4781_v24, %v4081_v14  ;;  %4145 = vadd.xlane.f32.xlu1 %v4141_v51  ;;  %v4157_v58 = vmul.f32 %v4141_v51, %v4141_v51 }
0x121a   : > { %v4142_v43 = vadd.f32 %v4130_v28, %v6572_v48 }
0x121b   : > { %v4754_v57 = vpop.f32.mrf.mxu1 }
0x121c   : > { %4147 = vadd.xlane.f32.xlu0 %v4142_v43  ;;  %4161 = vadd.xlane.f32.xlu1 %v4157_v58  ;;  %v4158_v4 = vmul.f32 %v4142_v43, %v4142_v43 }
0x121d   : > { %v4755_v61 = vpop.f32.mrf.mxu1 }
0x121e   : > { %v4756_v31 = vadd.f32 %v4755_v61, %v4754_v57 }
0x121f   : > { %v4757_v37 = vpop.f32.mrf.mxu1 }
0x1220   : > { %4163 = vadd.xlane.f32.xlu0 %v4158_v4  ;;  %v4086_v32 = vadd.f32 %v4756_v31, %v3850_v52 }
0x1221   : > { %v4758_v16 = vpop.f32.mrf.mxu1 }
0x1222   : > { %v4759_v0 = vadd.f32 %v4758_v16, %v4757_v37 }
0x1224   : > { %v4089_v7 = vadd.f32 %v4759_v0, %v3850_v52 }
0x122d   : > { %v4782_v38 = vpop.f32.mrf.mxu1 }
0x122f   : > { %v4783_v36 = vpop.f32.mrf.mxu1 }
0x1230   : > { %v4784_v12 = vadd.f32 %v4783_v36, %v4782_v38 }
0x1231   : > { %v4785_v39 = vpop.f32.mrf.mxu1 }
0x1232   : > { %v4135_v41 = vadd.f32 %v4784_v12, %v4086_v32 }
0x1233   : > { %v4786_v56 = vpop.f32.mrf.mxu1 }
0x1234   : > { %v4787_v48 = vadd.f32 %v4786_v56, %v4785_v39  ;;  %v6823_v11 = vadd.f32 %v4135_v41, %v6579_v47 }
0x1236   : > { %v4138_v18 = vadd.f32 %v4787_v48, %v4089_v7  ;;  %4149 = vadd.xlane.f32.xlu1 %v6823_v11  ;;  %v4159_v46 = vmul.f32 %v6823_v11, %v6823_v11 }
0x1238   : > { %v6827_v20 = vadd.f32 %v4138_v18, %v6890_v53 }
0x123a   : > { %4151 = vadd.xlane.f32.xlu0 %v6827_v20  ;;  %4165 = vadd.xlane.f32.xlu1 %v4159_v46  ;;  %v4160_v27 = vmul.f32 %v6827_v20, %v6827_v20 }
0x123e   : > { %4167 = vadd.xlane.f32.xlu0 %v4160_v27 }
0x12a1   : > { %v4146_v63 = vpop.xlane.xlu1 %4145 }
0x12a2   : > { %v4153_v34 = vmul.f32 0.0078125, %v4146_v63 }
0x12a4   : > { %v4173_v33 = vmul.f32 %v4153_v34, %v4153_v34  ;;  %v4185_v49 = vsub.f32 %v4141_v51, %v4153_v34 }
0x12a5   : > { %v4148_v47 = vpop.xlane.xlu0 %4147  ;;  %v4162_v29 = vpop.xlane.xlu1 %4161 }
0x12a6   : > { %v4154_v3 = vmul.f32 0.0078125, %v4148_v47  ;;  %v4169_v17 = vmul.f32 0.0078125, %v4162_v29 }
0x12a8   : > { %v4177_v54 = vsub.f32 %v4169_v17, %v4173_v33  ;;  %v4174_v10 = vmul.f32 %v4154_v3, %v4154_v3  ;;  %v4186_v8 = vsub.f32 %v4142_v43, %v4154_v3 }
0x12a9   : > { %v4164_v26 = vpop.xlane.xlu0 %4163 }
0x12aa   : > { %v4181_v62 = vmax.f32 %v4177_v54, 0.0  ;;  %v4170_v2 = vmul.f32 0.0078125, %v4164_v26 }
0x12ac   : > { %v4189_v9 = vadd.f32 1e-12, %v4181_v62  ;;  %v4178_v44 = vsub.f32 %v4170_v2, %v4174_v10 }
0x12ae   : > { %5555 = vrsqrt.f32 %v4189_v9  ;;  %v4182_v1 = vmax.f32 %v4178_v44, 0.0 }
0x12b0   : > { %v4190_v15 = vadd.f32 1e-12, %v4182_v1 }
0x12b2   : > { %5557 = vrsqrt.f32 %v4190_v15 }
0x12bb   : > { %v5556_v59 = vpop.eup %5555 }
0x12bc   : > { %v4197_v52 = vmul.f32 %v5556_v59, %v4185_v49 }
0x12be   : > { %v4205_v42 = vmul.f32 %v4204_v60, %v4197_v52 }
0x12bf   : > { %v5558_v40 = vpop.eup %5557  ;;  %v4150_v19 = vpop.xlane.xlu1 %4149 }
0x12c0   : > { %v4213_v23 = vadd.f32 %v4212_v5, %v4205_v42  ;;  %v4198_v35 = vmul.f32 %v5558_v40, %v4186_v8  ;;  %v4155_v6 = vmul.f32 0.0078125, %v4150_v19 }
0x12c2   : > { %4217 = vst [vmem:[#allocation2 + $0x10] sm:$0xff] %v4213_v23  ;;  %v4206_v13 = vmul.f32 %v4204_v60, %v4198_v35  ;;  %v4175_v14 = vmul.f32 %v4155_v6, %v4155_v6  ;;  %v4187_v31 = vsub.f32 %v6823_v11, %v4155_v6 }
0x12c3   : > { %v4152_v55 = vpop.xlane.xlu0 %4151  ;;  %v4166_v21 = vpop.xlane.xlu1 %4165 }
0x12c4   : > { %v4214_v25 = vadd.f32 %v4212_v5, %v4206_v13  ;;  %v4156_v22 = vmul.f32 0.0078125, %v4152_v55  ;;  %v4171_v24 = vmul.f32 0.0078125, %v4166_v21 }
0x12c6   : > { %4218 = vst [vmem:[#allocation2] sm:$0xff] %v4214_v25  ;;  %v4179_v51 = vsub.f32 %v4171_v24, %v4175_v14  ;;  %v4176_v58 = vmul.f32 %v4156_v22, %v4156_v22  ;;  %v4188_v32 = vsub.f32 %v6827_v20, %v4156_v22 }
0x12c7   : > { %v4168_v28 = vpop.xlane.xlu0 %4167 }
0x12c8   : > { %v4183_v4 = vmax.f32 %v4179_v51, 0.0  ;;  %v4172_v43 = vmul.f32 0.0078125, %v4168_v28 }
0x12ca   : > { %v4191_v57 = vadd.f32 1e-12, %v4183_v4  ;;  %v4180_v61 = vsub.f32 %v4172_v43, %v4176_v58 }
0x12cc   : > { %5559 = vrsqrt.f32 %v4191_v57  ;;  %v4184_v37 = vmax.f32 %v4180_v61, 0.0 }
0x12ce   : > { %v4192_v16 = vadd.f32 1e-12, %v4184_v37 }
0x12d0   : > { %5561 = vrsqrt.f32 %v4192_v16 }
0x12d9   : > { %v5560_v38 = vpop.eup %5559 }
0x12da   : > { %v4199_v36 = vmul.f32 %v5560_v38, %v4187_v31 }
0x12dc   : > { %v4207_v0 = vmul.f32 %v4204_v60, %v4199_v36 }
0x12dd   : > { %v5562_v12 = vpop.eup %5561 }
0x12de   : > { %v4215_v39 = vadd.f32 %v4212_v5, %v4207_v0  ;;  %v4200_v41 = vmul.f32 %v5562_v12, %v4188_v32 }
0x12e0   : > { %4219 = vst [vmem:[#allocation2 + $0x18] sm:$0xff] %v4215_v39  ;;  %v4208_v56 = vmul.f32 %v4204_v60, %v4200_v41  ;;  %4224 = sbr.rel (%p4561_p5) target bundleno = 4839 (0x12e7), region = 72 }
0x12e2   : > { %v4216_v7 = vadd.f32 %v4212_v5, %v4208_v56 }
0x12e4   : > { %4220 = vst [vmem:[#allocation2 + $0x8] sm:$0xff] %v4216_v7 }
0x12e5   : > { %4225 = vst [vmem:[#allocation9] sm:$0xff] %v4213_v23  ;;  %4226 = vst [vmem:[#allocation9 + $0x8] sm:$0xff] %v4214_v25 }
0x12e6   : > { %4227 = vst [vmem:[#allocation9 + $0x10] sm:$0xff] %v4215_v39  ;;  %4228 = vst [vmem:[#allocation9 + $0x18] sm:$0xff] %v4216_v7 }
0x12e7 PF: > { %p5182_p6 = scmp.eq.s32.totalorder %s5803_s9, 1  ;;  %s5736_s5 = smov [#allocation9]  }
0x12e8   : > { %s4235_s23 = sshll.u32 %s5736_s5, 4  ;;  %s4236_s23 = int_to_ptr.vmem [resolvable:$true] %s4235_s23 }
0x12e9   : > { %s5655_s18 = scalar_lea.vmem %s4236_s23, 512  ;;  %p5662_p12 = scmp.lt.s32.totalorder %s4236_s23, %s4236_s23 }
0x12ea   : > { %p5656_p9 = scmp.ne.s32.totalorder %s4236_s23, %s5655_s18  ;;  %p5663_p0 = scmp.lt.s32.totalorder %s5655_s18, %s5655_s18 }
0x12ec   : > { %p5657_p11 = pnand %p5656_p9, %p5182_p6  ;;  %p5664_p1 = por %p5663_p0, %p5662_p12 }
0x12ee   : > { %p5658_p7 = pneg %p5657_p11 }
0x12f0   : > { %p5665_p2 = pnand %p5664_p1, %p5658_p7 }
0x12f2   : > { %5668 = shalt.err (!%p5665_p2)
}
0x12f3   : > { %s5737_s26 = smov 128   ;;  %s5738_s19 = smov 8  }
0x12f4   : > { %5168 = dma.vmem_to_hbm [thread:$0]  (%p5182_p6), %s4236_s23, 512, %s6873_s8, [#allocation5], %s5737_s26, %s5737_s26, %s5738_s19  }
0x12f5   : > { %5704 = dma.done.wait (%p5182_p6), [#allocation5], 512  }
0x12f6   : > { %5706 = vsyncadd (%p5182_p6), [#allocation5], 4294966784 }
0x12f7 PF: > { %s6891_s24 = sld [smem:[#allocation13_spill]]  ;;  %p22_p13 = scmp.ge.s32.totalorder %s5806_s10, 4  }
0x12f8   : > { %s6892_s29 = sld [smem:[#allocation14_spill]]  ;;  %s6893_s27 = smov %s5713_s28 }
0x12f9   : > { %s6895_s30 = smov %s5806_s10  ;;  %24 = sbr.rel (!%p22_p13) target bundleno = 8 (0x8), region = 127 }
0x12fd   : > { %s6894_s28 = smov %s6891_s24 }
0x12fe   :  { %4251 = vsyncpa [#allocation4], 1 }
0x12ff   :  { %4253 = vsyncpa [#allocation4 + $0x1], 1 }
0x1300   :  { %4254 = vsyncpa [#allocation7], 1 }
0x1301   :  { %4256 = vsyncpa [#allocation7 + $0x1], 1 }
0x1302   :  { %4257 = vsyncpa [#allocation5], 1 }
0x1303   :  { %4259 = vsyncpa [#allocation5 + $0x1], 1 }

</bundles_post_ra>
